<compile_context>
chip_gen: v7x
topology: tpu7x:2x2x1
jax: 0.10.0
libtpu: 0.0.40
codegen_flags: <defaults>
</compile_context>

<pallas_src>
import math

import jax
import jax.numpy as jnp
from jax import lax
from jax.experimental import pallas as pl
from jax.experimental.pallas import tpu as pltpu  # noqa: F401  (kept for TPU-specific tuning hooks)

# ----------------------- scaled-down ViT config ------------------------------
BATCH       = 2
IN_CHANS    = 3
IMG_SIZE    = 32            # CIFAR-like image (instead of 224)
PATCH       = 16            # same patch size as vit_base_patch16
EMBED_DIM   = 64            # scaled down from 768
DEPTH       = 2             # scaled down from 12
NUM_HEADS   = 4             # scaled down from 12
MLP_HIDDEN  = EMBED_DIM * 4
NUM_CLASSES = 100           # matches ViTClassifier(num_classes=100)
HEAD_DIM    = EMBED_DIM // NUM_HEADS
NUM_PATCHES = (IMG_SIZE // PATCH) ** 2
SEQ         = NUM_PATCHES + 1       # +1 cls token (= 5)
SEQ_PAD     = 8                     # pad tokens per image to a full sublane group
SEQ_PAD_LOG2 = 3
ROWS        = BATCH * SEQ_PAD       # 16 token rows total
PATCH_DIM   = IN_CHANS * PATCH * PATCH
NUM_CLASSES_PAD = 128               # lane-dense head output (sliced back to 100 in wrapper)
LN_EPS      = 1e-6
ATTN_SCALE  = 1.0 / math.sqrt(HEAD_DIM)
assert SEQ_PAD == (1 << SEQ_PAD_LOG2)

# Packed vector table layout: one row per (1, *) parameter, zero-padded to VEC_COLS lanes.
VEC_COLS      = MLP_HIDDEN          # 256: widest vector (fc1 bias); also >= 3*D and 128
VEC_PER_BLOCK = 8
R_G1, R_B1, R_BQKV, R_BPROJ, R_G2, R_B2, R_BFC1, R_BFC2 = range(VEC_PER_BLOCK)
R_NG  = DEPTH * VEC_PER_BLOCK + 0
R_NB  = DEPTH * VEC_PER_BLOCK + 1
R_HB  = DEPTH * VEC_PER_BLOCK + 2
VEC_ROWS = DEPTH * VEC_PER_BLOCK + 3


# ----------------------------- Pallas kernel ----------------------------------
def _layer_norm(v, g, b):
    # var = E[x^2] - E[x]^2: the two cross-lane reductions are independent and pipeline.
    mu = jnp.mean(v, axis=-1, keepdims=True)
    ms = jnp.mean(v * v, axis=-1, keepdims=True)
    var = ms - mu * mu
    return (v - mu) * lax.rsqrt(var + LN_EPS) * g + b


def _vit_kernel(patches_ref, pw_ref, add_ref, vecs_ref,
                wqkv_ref, wproj_ref, wfc1_ref, wfc2_ref, hw_ref, out_ref):
    vecs = vecs_ref[...]                                                     # (VEC_ROWS, 256)

    # Patch embedding; cls token, positional embedding and conv bias are folded
    # into add_ref by the wrapper (zero patch rows for cls/pad positions).
    x = jnp.dot(patches_ref[...], pw_ref[...],
                preferred_element_type=jnp.float32) + add_ref[...]           # (ROWS, D)

    # Static block-diagonal attention bias over the fused (batch*token) row axis:
    # queries only attend to keys of the same image, never to padded token slots.
    r = lax.broadcasted_iota(jnp.int32, (ROWS, ROWS), 0)
    c = lax.broadcasted_iota(jnp.int32, (ROWS, ROWS), 1)
    same_img = jnp.right_shift(r, SEQ_PAD_LOG2) == jnp.right_shift(c, SEQ_PAD_LOG2)
    key_ok = jnp.bitwise_and(c, SEQ_PAD - 1) < SEQ
    mask_bias = jnp.where(same_img & key_ok, 0.0, -1e30).astype(jnp.float32)  # (ROWS, ROWS)

    for d in range(DEPTH):                          # unrolled at trace time
        rb = d * VEC_PER_BLOCK
        g1    = vecs[rb + R_G1:rb + R_G1 + 1,       :EMBED_DIM]
        b1    = vecs[rb + R_B1:rb + R_B1 + 1,       :EMBED_DIM]
        bqkv  = vecs[rb + R_BQKV:rb + R_BQKV + 1,   :3 * EMBED_DIM]
        bproj = vecs[rb + R_BPROJ:rb + R_BPROJ + 1, :EMBED_DIM]
        g2    = vecs[rb + R_G2:rb + R_G2 + 1,       :EMBED_DIM]
        b2    = vecs[rb + R_B2:rb + R_B2 + 1,       :EMBED_DIM]
        bfc1  = vecs[rb + R_BFC1:rb + R_BFC1 + 1,   :MLP_HIDDEN]
        bfc2  = vecs[rb + R_BFC2:rb + R_BFC2 + 1,   :EMBED_DIM]
        wqkv  = wqkv_ref[d]                         # (D, 3D), q cols pre-scaled by 1/sqrt(Dh)
        wproj = wproj_ref[d]                        # (D, D)
        wfc1  = wfc1_ref[d]                         # (D, 4D)
        wfc2  = wfc2_ref[d]                         # (4D, D)

        # -------- multi-head self-attention, all images fused along rows --------
        h = _layer_norm(x, g1, b1)
        qkv = jnp.dot(h, wqkv, preferred_element_type=jnp.float32) + bqkv    # (ROWS, 3D)

        attn = jnp.zeros((ROWS, EMBED_DIM), jnp.float32)
        for hh in range(NUM_HEADS):                 # unrolled at trace time
            c0 = hh * HEAD_DIM
            q = qkv[:, c0:c0 + HEAD_DIM]
            k = qkv[:, EMBED_DIM + c0:EMBED_DIM + c0 + HEAD_DIM]
            v = qkv[:, 2 * EMBED_DIM + c0:2 * EMBED_DIM + c0 + HEAD_DIM]
            # q @ k^T via dot_general (contract last dims) -> (ROWS, ROWS)
            s = lax.dot_general(q, k, (((1,), (1,)), ((), ())),
                                preferred_element_type=jnp.float32)
            s = s + mask_bias
            s = s - jnp.max(s, axis=-1, keepdims=True)
            p = jnp.exp(s)
            p = p * pl.reciprocal(jnp.sum(p, axis=-1, keepdims=True), approx=True)
            ctx = jnp.dot(p, v, preferred_element_type=jnp.float32)          # (ROWS, HEAD_DIM)
            # Fold this head's slice of the output projection here so heads never need
            # to be concatenated back along lanes.
            attn = attn + jnp.dot(ctx, wproj[c0:c0 + HEAD_DIM, :],
                                  preferred_element_type=jnp.float32)
        x = x + attn + bproj                                                 # residual

        # --------------------------------- MLP ----------------------------------
        h = _layer_norm(x, g2, b2)
        h = jnp.dot(h, wfc1, preferred_element_type=jnp.float32) + bfc1
        # TODO(synk): timm's nn.GELU is exact (erf); tanh approximation used for robust Mosaic lowering.
        h = jax.nn.gelu(h, approximate=True)
        h = jnp.dot(h, wfc2, preferred_element_type=jnp.float32) + bfc2
        x = x + h                                                            # residual

    # Final LayerNorm + head on ALL rows (lane-dense unmasked (ROWS, 128) store);
    # the wrapper selects the cls rows (0 and SEQ_PAD) afterwards.
    hfin = _layer_norm(x, vecs[R_NG:R_NG + 1, :EMBED_DIM], vecs[R_NB:R_NB + 1, :EMBED_DIM])
    out_ref[...] = (jnp.dot(hfin, hw_ref[...], preferred_element_type=jnp.float32)
                    + vecs[R_HB:R_HB + 1, :NUM_CLASSES_PAD])


# ------------------------------ wrappers --------------------------------------
def patchify(x):
    # NCHW -> (B, Np, C*P*P), flattening order (c, ph, pw) matches conv weight flatten
    b, ch, h, w = x.shape
    hp, wp = h // PATCH, w // PATCH
    x = x.reshape(b, ch, hp, PATCH, wp, PATCH)
    x = x.transpose(0, 2, 4, 1, 3, 5)
    return x.reshape(b, hp * wp, ch * PATCH * PATCH)


def vit_forward(x, params):
    # Arrange patches into token-row layout: row 0 (cls) and rows >= SEQ (pad) are zero,
    # so one matmul produces the patch-embed contribution for every token row.
    patches = patchify(x)                                         # (B, Np, C*P*P)
    pa = jnp.zeros((BATCH, SEQ_PAD, PATCH_DIM), jnp.float32)
    pa = pa.at[:, 1:1 + NUM_PATCHES, :].set(patches)
    pa = pa.reshape(ROWS, PATCH_DIM)

    # Additive term per token row: cls_token + pos[0] for row 0, pos[i] + conv bias for
    # patch rows, zeros for pad rows.
    add = jnp.zeros((BATCH, SEQ_PAD, EMBED_DIM), jnp.float32)
    add = add.at[:, 0, :].set(params['cls_token'][0, 0] + params['pos_embed'][0, 0])
    add = add.at[:, 1:SEQ, :].set(params['pos_embed'][0, 1:SEQ] + params['patch_b'])
    add = add.reshape(ROWS, EMBED_DIM)

    # Pack all (1, *) vectors into one table and stack per-block matrices (31 -> 9 inputs).
    vecs = jnp.zeros((VEC_ROWS, VEC_COLS), jnp.float32)
    wqkv_l, wproj_l, wfc1_l, wfc2_l = [], [], [], []
    for d, blk in enumerate(params['blocks']):
        (g1, b1, wqkv, bqkv, wproj, bproj, g2, b2, wfc1, bfc1, wfc2, bfc2) = blk
        wqkv_t = wqkv.T                                            # (D, 3D), (in, out)
        wqkv_t = wqkv_t.at[:, :EMBED_DIM].multiply(ATTN_SCALE)     # fold 1/sqrt(Dh) into q
        bqkv_s = bqkv.at[:, :EMBED_DIM].multiply(ATTN_SCALE)
        rb = d * VEC_PER_BLOCK
        vecs = vecs.at[rb + R_G1,    :EMBED_DIM].set(g1[0])
        vecs = vecs.at[rb + R_B1,    :EMBED_DIM].set(b1[0])
        vecs = vecs.at[rb + R_BQKV,  :3 * EMBED_DIM].set(bqkv_s[0])
        vecs = vecs.at[rb + R_BPROJ, :EMBED_DIM].set(bproj[0])
        vecs = vecs.at[rb + R_G2,    :EMBED_DIM].set(g2[0])
        vecs = vecs.at[rb + R_B2,    :EMBED_DIM].set(b2[0])
        vecs = vecs.at[rb + R_BFC1,  :MLP_HIDDEN].set(bfc1[0])
        vecs = vecs.at[rb + R_BFC2,  :EMBED_DIM].set(bfc2[0])
        wqkv_l.append(wqkv_t)
        wproj_l.append(wproj.T)
        wfc1_l.append(wfc1.T)
        wfc2_l.append(wfc2.T)
    vecs = vecs.at[R_NG, :EMBED_DIM].set(params['norm_g'][0])
    vecs = vecs.at[R_NB, :EMBED_DIM].set(params['norm_b'][0])
    vecs = vecs.at[R_HB, :NUM_CLASSES].set(params['head_b'][0])

    wqkv_all  = jnp.stack(wqkv_l)     # (DEPTH, D, 3D)
    wproj_all = jnp.stack(wproj_l)    # (DEPTH, D, D)
    wfc1_all  = jnp.stack(wfc1_l)     # (DEPTH, D, 4D)
    wfc2_all  = jnp.stack(wfc2_l)     # (DEPTH, 4D, D)

    # Lane-dense head: pad classes 100 -> 128 with zeros, slice back after the kernel.
    head_w_t = jnp.zeros((EMBED_DIM, NUM_CLASSES_PAD), jnp.float32)
    head_w_t = head_w_t.at[:, :NUM_CLASSES].set(params['head_w'].T)

    out = pl.pallas_call(
        _vit_kernel,
        out_shape=jax.ShapeDtypeStruct((ROWS, NUM_CLASSES_PAD), jnp.float32),
    )(pa, params['patch_w'].T, add, vecs, wqkv_all, wproj_all, wfc1_all, wfc2_all, head_w_t)

    # cls-token rows are 0 and SEQ_PAD; classes are the first NUM_CLASSES lanes.
    return out[0::SEQ_PAD, :NUM_CLASSES]


# ---------------------------- parameter init ----------------------------------
def init_params(key):
    keys = jax.random.split(key, 8 + DEPTH)

    def nrm(k, shape):
        return jax.random.normal(k, shape, jnp.float32) * 0.02

    params = {
        'patch_w': nrm(keys[0], (EMBED_DIM, IN_CHANS * PATCH * PATCH)),
        'patch_b': jnp.zeros((1, EMBED_DIM), jnp.float32),
        'cls_token': nrm(keys[1], (1, 1, EMBED_DIM)),
        'pos_embed': nrm(keys[2], (1, SEQ, EMBED_DIM)),
        'norm_g': jnp.ones((1, EMBED_DIM), jnp.float32),
        'norm_b': jnp.zeros((1, EMBED_DIM), jnp.float32),
        'head_w': nrm(keys[3 + DEPTH], (NUM_CLASSES, EMBED_DIM)),
        'head_b': jnp.zeros((1, NUM_CLASSES), jnp.float32),
    }
    blocks = []
    for d in range(DEPTH):
        bk = jax.random.split(keys[3 + d], 4)
        blocks.append((
            jnp.ones((1, EMBED_DIM), jnp.float32),      # norm1 gamma
            jnp.zeros((1, EMBED_DIM), jnp.float32),     # norm1 beta
            nrm(bk[0], (3 * EMBED_DIM, EMBED_DIM)),     # qkv weight (PyTorch layout)
            jnp.zeros((1, 3 * EMBED_DIM), jnp.float32), # qkv bias
            nrm(bk[1], (EMBED_DIM, EMBED_DIM)),         # attn proj weight
            jnp.zeros((1, EMBED_DIM), jnp.float32),     # attn proj bias
            jnp.ones((1, EMBED_DIM), jnp.float32),      # norm2 gamma
            jnp.zeros((1, EMBED_DIM), jnp.float32),     # norm2 beta
            nrm(bk[2], (MLP_HIDDEN, EMBED_DIM)),        # mlp fc1 weight
            jnp.zeros((1, MLP_HIDDEN), jnp.float32),    # mlp fc1 bias
            nrm(bk[3], (EMBED_DIM, MLP_HIDDEN)),        # mlp fc2 weight
            jnp.zeros((1, EMBED_DIM), jnp.float32),     # mlp fc2 bias
        ))
    params['blocks'] = blocks
    return params


if __name__ == "__main__":
    root = jax.random.PRNGKey(0)
    pkey, xkey = jax.random.split(root)
    params = init_params(pkey)
    x = jax.random.normal(xkey, (BATCH, IN_CHANS, IMG_SIZE, IMG_SIZE), jnp.float32)

    logits = jax.jit(vit_forward)(x, params)
    logits = jax.block_until_ready(logits)
    assert logits.shape == (BATCH, NUM_CLASSES)
    assert bool(jnp.all(jnp.isfinite(logits)))
    print("KERNEL_OK")
</pallas_src>

<mosaic_0001>
module attributes {stable_mosaic.version = 11 : i64} {
  func.func @_vit_kernel(%arg0: memref<16x768xf32, #tpu.memory_space<vmem>>, %arg1: memref<768x64xf32, #tpu.memory_space<vmem>>, %arg2: memref<16x64xf32, #tpu.memory_space<vmem>>, %arg3: memref<19x256xf32, #tpu.memory_space<vmem>>, %arg4: memref<2x64x192xf32, #tpu.memory_space<vmem>>, %arg5: memref<2x64x64xf32, #tpu.memory_space<vmem>>, %arg6: memref<2x64x256xf32, #tpu.memory_space<vmem>>, %arg7: memref<2x256x64xf32, #tpu.memory_space<vmem>>, %arg8: memref<64x128xf32, #tpu.memory_space<vmem>>, %arg9: memref<16x128xf32, #tpu.memory_space<vmem>>) attributes {dimension_semantics = [], scalar_prefetch = 0 : i64, scratch_operands = 0 : i64, tpu.core_type = #tpu.core_type<tc>} {
    %c0 = arith.constant 0 : index
    %c0_0 = arith.constant 0 : index
    %0 = vector.load %arg3[%c0, %c0_0] : memref<19x256xf32, #tpu.memory_space<vmem>>, vector<19x256xf32>
    %c0_1 = arith.constant 0 : index
    %c0_2 = arith.constant 0 : index
    %1 = vector.load %arg0[%c0_1, %c0_2] : memref<16x768xf32, #tpu.memory_space<vmem>>, vector<16x768xf32>
    %c0_3 = arith.constant 0 : index
    %c0_4 = arith.constant 0 : index
    %2 = vector.load %arg1[%c0_3, %c0_4] : memref<768x64xf32, #tpu.memory_space<vmem>>, vector<768x64xf32>
    %cst = arith.constant dense<0.000000e+00> : vector<16x64xf32>
    %3 = tpu.matmul %1, %2, %cst {dimension_numbers = #tpu.dot_dimension_numbers<[1], [0], [0], [1], [0, 0, 1, 1], [], []>} : vector<16x768xf32>, vector<768x64xf32>, vector<16x64xf32> -> vector<16x64xf32>
    %c0_5 = arith.constant 0 : index
    %c0_6 = arith.constant 0 : index
    %4 = vector.load %arg2[%c0_5, %c0_6] : memref<16x64xf32, #tpu.memory_space<vmem>>, vector<16x64xf32>
    %5 = arith.addf %3, %4 : vector<16x64xf32>
    %6 = tpu.iota {dimensions = array<i32: 0>} : vector<16x16xi32>
    %7 = tpu.iota {dimensions = array<i32: 1>} : vector<16x16xi32>
    %c3_i32 = arith.constant 3 : i32
    %8 = vector.broadcast %c3_i32 : i32 to vector<16x16xi32>
    %9 = arith.shrsi %6, %8 : vector<16x16xi32>
    %c3_i32_7 = arith.constant 3 : i32
    %10 = vector.broadcast %c3_i32_7 : i32 to vector<16x16xi32>
    %11 = arith.shrsi %7, %10 : vector<16x16xi32>
    %12 = arith.cmpi eq, %9, %11 : vector<16x16xi32>
    %c7_i32 = arith.constant 7 : i32
    %13 = vector.broadcast %c7_i32 : i32 to vector<16x16xi32>
    %14 = arith.andi %7, %13 : vector<16x16xi32>
    %c5_i32 = arith.constant 5 : i32
    %15 = vector.broadcast %c5_i32 : i32 to vector<16x16xi32>
    %16 = arith.cmpi slt, %14, %15 : vector<16x16xi32>
    %17 = arith.andi %12, %16 : vector<16x16xi1>
    %cst_8 = arith.constant 0.000000e+00 : f32
    %cst_9 = arith.constant -1.000000e+30 : f32
    %18 = vector.broadcast %cst_8 : f32 to vector<16x16xf32>
    %19 = vector.broadcast %cst_9 : f32 to vector<16x16xf32>
    %20 = arith.select %17, %18, %19 : vector<16x16xi1>, vector<16x16xf32>
    %21 = vector.extract_strided_slice %0 {offsets = [0, 0], sizes = [1, 64], strides = [1, 1]} : vector<19x256xf32> to vector<1x64xf32>
    %22 = vector.extract_strided_slice %0 {offsets = [1, 0], sizes = [1, 64], strides = [1, 1]} : vector<19x256xf32> to vector<1x64xf32>
    %23 = vector.extract_strided_slice %0 {offsets = [2, 0], sizes = [1, 192], strides = [1, 1]} : vector<19x256xf32> to vector<1x192xf32>
    %24 = vector.extract_strided_slice %0 {offsets = [3, 0], sizes = [1, 64], strides = [1, 1]} : vector<19x256xf32> to vector<1x64xf32>
    %25 = vector.extract_strided_slice %0 {offsets = [4, 0], sizes = [1, 64], strides = [1, 1]} : vector<19x256xf32> to vector<1x64xf32>
    %26 = vector.extract_strided_slice %0 {offsets = [5, 0], sizes = [1, 64], strides = [1, 1]} : vector<19x256xf32> to vector<1x64xf32>
    %27 = vector.extract_strided_slice %0 {offsets = [6, 0], sizes = [1, 256], strides = [1, 1]} : vector<19x256xf32> to vector<1x256xf32>
    %28 = vector.extract_strided_slice %0 {offsets = [7, 0], sizes = [1, 64], strides = [1, 1]} : vector<19x256xf32> to vector<1x64xf32>
    %c0_10 = arith.constant 0 : index
    %c0_11 = arith.constant 0 : index
    %c0_12 = arith.constant 0 : index
    %29 = vector.load %arg4[%c0_10, %c0_11, %c0_12] : memref<2x64x192xf32, #tpu.memory_space<vmem>>, vector<1x64x192xf32>
    %30 = vector.shape_cast %29 : vector<1x64x192xf32> to vector<64x192xf32>
    %c0_13 = arith.constant 0 : index
    %c0_14 = arith.constant 0 : index
    %c0_15 = arith.constant 0 : index
    %31 = vector.load %arg5[%c0_13, %c0_14, %c0_15] : memref<2x64x64xf32, #tpu.memory_space<vmem>>, vector<1x64x64xf32>
    %32 = vector.shape_cast %31 : vector<1x64x64xf32> to vector<64x64xf32>
    %c0_16 = arith.constant 0 : index
    %c0_17 = arith.constant 0 : index
    %c0_18 = arith.constant 0 : index
    %33 = vector.load %arg6[%c0_16, %c0_17, %c0_18] : memref<2x64x256xf32, #tpu.memory_space<vmem>>, vector<1x64x256xf32>
    %34 = vector.shape_cast %33 : vector<1x64x256xf32> to vector<64x256xf32>
    %c0_19 = arith.constant 0 : index
    %c0_20 = arith.constant 0 : index
    %c0_21 = arith.constant 0 : index
    %35 = vector.load %arg7[%c0_19, %c0_20, %c0_21] : memref<2x256x64xf32, #tpu.memory_space<vmem>>, vector<1x256x64xf32>
    %36 = vector.shape_cast %35 : vector<1x256x64xf32> to vector<256x64xf32>
    %cst_22 = arith.constant dense<0.000000e+00> : vector<16xf32>
    %37 = vector.multi_reduction <add>, %5, %cst_22 [1] : vector<16x64xf32> to vector<16xf32>
    %38 = vector.shape_cast %37 : vector<16xf32> to vector<16x1xf32>
    %cst_23 = arith.constant 6.400000e+01 : f32
    %39 = vector.broadcast %cst_23 : f32 to vector<16x1xf32>
    %40 = arith.divf %38, %39 : vector<16x1xf32>
    %41 = arith.mulf %5, %5 : vector<16x64xf32>
    %cst_24 = arith.constant dense<0.000000e+00> : vector<16xf32>
    %42 = vector.multi_reduction <add>, %41, %cst_24 [1] : vector<16x64xf32> to vector<16xf32>
    %43 = vector.shape_cast %42 : vector<16xf32> to vector<16x1xf32>
    %cst_25 = arith.constant 6.400000e+01 : f32
    %44 = vector.broadcast %cst_25 : f32 to vector<16x1xf32>
    %45 = arith.divf %43, %44 : vector<16x1xf32>
    %46 = arith.mulf %40, %40 : vector<16x1xf32>
    %47 = arith.subf %45, %46 : vector<16x1xf32>
    %48 = vector.broadcast %40 : vector<16x1xf32> to vector<16x64xf32>
    %49 = arith.subf %5, %48 : vector<16x64xf32>
    %cst_26 = arith.constant 9.99999997E-7 : f32
    %50 = vector.broadcast %cst_26 : f32 to vector<16x1xf32>
    %51 = arith.addf %47, %50 : vector<16x1xf32>
    %52 = math.rsqrt %51 : vector<16x1xf32>
    %53 = vector.broadcast %52 : vector<16x1xf32> to vector<16x64xf32>
    %54 = arith.mulf %49, %53 : vector<16x64xf32>
    %55 = vector.broadcast %21 : vector<1x64xf32> to vector<16x64xf32>
    %56 = arith.mulf %54, %55 : vector<16x64xf32>
    %57 = vector.broadcast %22 : vector<1x64xf32> to vector<16x64xf32>
    %58 = arith.addf %56, %57 : vector<16x64xf32>
    %cst_27 = arith.constant dense<0.000000e+00> : vector<16x192xf32>
    %59 = tpu.matmul %58, %30, %cst_27 {dimension_numbers = #tpu.dot_dimension_numbers<[1], [0], [0], [1], [0, 0, 1, 1], [], []>} : vector<16x64xf32>, vector<64x192xf32>, vector<16x192xf32> -> vector<16x192xf32>
    %60 = vector.broadcast %23 : vector<1x192xf32> to vector<16x192xf32>
    %61 = arith.addf %59, %60 : vector<16x192xf32>
    %cst_28 = arith.constant 0.000000e+00 : f32
    %62 = vector.broadcast %cst_28 : f32 to vector<16x64xf32>
    %63 = vector.extract_strided_slice %61 {offsets = [0, 0], sizes = [16, 16], strides = [1, 1]} : vector<16x192xf32> to vector<16x16xf32>
    %64 = vector.extract_strided_slice %61 {offsets = [0, 64], sizes = [16, 16], strides = [1, 1]} : vector<16x192xf32> to vector<16x16xf32>
    %65 = vector.extract_strided_slice %61 {offsets = [0, 128], sizes = [16, 16], strides = [1, 1]} : vector<16x192xf32> to vector<16x16xf32>
    %cst_29 = arith.constant dense<0.000000e+00> : vector<16x16xf32>
    %66 = tpu.matmul %63, %64, %cst_29 {dimension_numbers = #tpu.dot_dimension_numbers<[1], [1], [0], [0], [0, 0, 1, 0], [], []>} : vector<16x16xf32>, vector<16x16xf32>, vector<16x16xf32> -> vector<16x16xf32>
    %67 = arith.addf %66, %20 : vector<16x16xf32>
    %cst_30 = arith.constant dense<0xFF800000> : vector<16xf32>
    %68 = vector.multi_reduction <maximumf>, %67, %cst_30 [1] : vector<16x16xf32> to vector<16xf32>
    %69 = vector.shape_cast %68 : vector<16xf32> to vector<16x1xf32>
    %70 = vector.broadcast %69 : vector<16x1xf32> to vector<16x16xf32>
    %71 = arith.subf %67, %70 : vector<16x16xf32>
    %72 = math.exp %71 : vector<16x16xf32>
    %cst_31 = arith.constant dense<0.000000e+00> : vector<16xf32>
    %73 = vector.multi_reduction <add>, %72, %cst_31 [1] : vector<16x16xf32> to vector<16xf32>
    %74 = vector.shape_cast %73 : vector<16xf32> to vector<16x1xf32>
    %75 = tpu.reciprocal %74 {approx = true} : vector<16x1xf32> -> vector<16x1xf32>
    %76 = vector.broadcast %75 : vector<16x1xf32> to vector<16x16xf32>
    %77 = arith.mulf %72, %76 : vector<16x16xf32>
    %cst_32 = arith.constant dense<0.000000e+00> : vector<16x16xf32>
    %78 = tpu.matmul %77, %65, %cst_32 {dimension_numbers = #tpu.dot_dimension_numbers<[1], [0], [0], [1], [0, 0, 1, 1], [], []>} : vector<16x16xf32>, vector<16x16xf32>, vector<16x16xf32> -> vector<16x16xf32>
    %79 = vector.extract_strided_slice %32 {offsets = [0, 0], sizes = [16, 64], strides = [1, 1]} : vector<64x64xf32> to vector<16x64xf32>
    %cst_33 = arith.constant dense<0.000000e+00> : vector<16x64xf32>
    %80 = tpu.matmul %78, %79, %cst_33 {dimension_numbers = #tpu.dot_dimension_numbers<[1], [0], [0], [1], [0, 0, 1, 1], [], []>} : vector<16x16xf32>, vector<16x64xf32>, vector<16x64xf32> -> vector<16x64xf32>
    %81 = arith.addf %62, %80 : vector<16x64xf32>
    %82 = vector.extract_strided_slice %61 {offsets = [0, 16], sizes = [16, 16], strides = [1, 1]} : vector<16x192xf32> to vector<16x16xf32>
    %83 = vector.extract_strided_slice %61 {offsets = [0, 80], sizes = [16, 16], strides = [1, 1]} : vector<16x192xf32> to vector<16x16xf32>
    %84 = vector.extract_strided_slice %61 {offsets = [0, 144], sizes = [16, 16], strides = [1, 1]} : vector<16x192xf32> to vector<16x16xf32>
    %cst_34 = arith.constant dense<0.000000e+00> : vector<16x16xf32>
    %85 = tpu.matmul %82, %83, %cst_34 {dimension_numbers = #tpu.dot_dimension_numbers<[1], [1], [0], [0], [0, 0, 1, 0], [], []>} : vector<16x16xf32>, vector<16x16xf32>, vector<16x16xf32> -> vector<16x16xf32>
    %86 = arith.addf %85, %20 : vector<16x16xf32>
    %cst_35 = arith.constant dense<0xFF800000> : vector<16xf32>
    %87 = vector.multi_reduction <maximumf>, %86, %cst_35 [1] : vector<16x16xf32> to vector<16xf32>
    %88 = vector.shape_cast %87 : vector<16xf32> to vector<16x1xf32>
    %89 = vector.broadcast %88 : vector<16x1xf32> to vector<16x16xf32>
    %90 = arith.subf %86, %89 : vector<16x16xf32>
    %91 = math.exp %90 : vector<16x16xf32>
    %cst_36 = arith.constant dense<0.000000e+00> : vector<16xf32>
    %92 = vector.multi_reduction <add>, %91, %cst_36 [1] : vector<16x16xf32> to vector<16xf32>
    %93 = vector.shape_cast %92 : vector<16xf32> to vector<16x1xf32>
    %94 = tpu.reciprocal %93 {approx = true} : vector<16x1xf32> -> vector<16x1xf32>
    %95 = vector.broadcast %94 : vector<16x1xf32> to vector<16x16xf32>
    %96 = arith.mulf %91, %95 : vector<16x16xf32>
    %cst_37 = arith.constant dense<0.000000e+00> : vector<16x16xf32>
    %97 = tpu.matmul %96, %84, %cst_37 {dimension_numbers = #tpu.dot_dimension_numbers<[1], [0], [0], [1], [0, 0, 1, 1], [], []>} : vector<16x16xf32>, vector<16x16xf32>, vector<16x16xf32> -> vector<16x16xf32>
    %98 = vector.extract_strided_slice %32 {offsets = [16, 0], sizes = [16, 64], strides = [1, 1]} : vector<64x64xf32> to vector<16x64xf32>
    %cst_38 = arith.constant dense<0.000000e+00> : vector<16x64xf32>
    %99 = tpu.matmul %97, %98, %cst_38 {dimension_numbers = #tpu.dot_dimension_numbers<[1], [0], [0], [1], [0, 0, 1, 1], [], []>} : vector<16x16xf32>, vector<16x64xf32>, vector<16x64xf32> -> vector<16x64xf32>
    %100 = arith.addf %81, %99 : vector<16x64xf32>
    %101 = vector.extract_strided_slice %61 {offsets = [0, 32], sizes = [16, 16], strides = [1, 1]} : vector<16x192xf32> to vector<16x16xf32>
    %102 = vector.extract_strided_slice %61 {offsets = [0, 96], sizes = [16, 16], strides = [1, 1]} : vector<16x192xf32> to vector<16x16xf32>
    %103 = vector.extract_strided_slice %61 {offsets = [0, 160], sizes = [16, 16], strides = [1, 1]} : vector<16x192xf32> to vector<16x16xf32>
    %cst_39 = arith.constant dense<0.000000e+00> : vector<16x16xf32>
    %104 = tpu.matmul %101, %102, %cst_39 {dimension_numbers = #tpu.dot_dimension_numbers<[1], [1], [0], [0], [0, 0, 1, 0], [], []>} : vector<16x16xf32>, vector<16x16xf32>, vector<16x16xf32> -> vector<16x16xf32>
    %105 = arith.addf %104, %20 : vector<16x16xf32>
    %cst_40 = arith.constant dense<0xFF800000> : vector<16xf32>
    %106 = vector.multi_reduction <maximumf>, %105, %cst_40 [1] : vector<16x16xf32> to vector<16xf32>
    %107 = vector.shape_cast %106 : vector<16xf32> to vector<16x1xf32>
    %108 = vector.broadcast %107 : vector<16x1xf32> to vector<16x16xf32>
    %109 = arith.subf %105, %108 : vector<16x16xf32>
    %110 = math.exp %109 : vector<16x16xf32>
    %cst_41 = arith.constant dense<0.000000e+00> : vector<16xf32>
    %111 = vector.multi_reduction <add>, %110, %cst_41 [1] : vector<16x16xf32> to vector<16xf32>
    %112 = vector.shape_cast %111 : vector<16xf32> to vector<16x1xf32>
    %113 = tpu.reciprocal %112 {approx = true} : vector<16x1xf32> -> vector<16x1xf32>
    %114 = vector.broadcast %113 : vector<16x1xf32> to vector<16x16xf32>
    %115 = arith.mulf %110, %114 : vector<16x16xf32>
    %cst_42 = arith.constant dense<0.000000e+00> : vector<16x16xf32>
    %116 = tpu.matmul %115, %103, %cst_42 {dimension_numbers = #tpu.dot_dimension_numbers<[1], [0], [0], [1], [0, 0, 1, 1], [], []>} : vector<16x16xf32>, vector<16x16xf32>, vector<16x16xf32> -> vector<16x16xf32>
    %117 = vector.extract_strided_slice %32 {offsets = [32, 0], sizes = [16, 64], strides = [1, 1]} : vector<64x64xf32> to vector<16x64xf32>
    %cst_43 = arith.constant dense<0.000000e+00> : vector<16x64xf32>
    %118 = tpu.matmul %116, %117, %cst_43 {dimension_numbers = #tpu.dot_dimension_numbers<[1], [0], [0], [1], [0, 0, 1, 1], [], []>} : vector<16x16xf32>, vector<16x64xf32>, vector<16x64xf32> -> vector<16x64xf32>
    %119 = arith.addf %100, %118 : vector<16x64xf32>
    %120 = vector.extract_strided_slice %61 {offsets = [0, 48], sizes = [16, 16], strides = [1, 1]} : vector<16x192xf32> to vector<16x16xf32>
    %121 = vector.extract_strided_slice %61 {offsets = [0, 112], sizes = [16, 16], strides = [1, 1]} : vector<16x192xf32> to vector<16x16xf32>
    %122 = vector.extract_strided_slice %61 {offsets = [0, 176], sizes = [16, 16], strides = [1, 1]} : vector<16x192xf32> to vector<16x16xf32>
    %cst_44 = arith.constant dense<0.000000e+00> : vector<16x16xf32>
    %123 = tpu.matmul %120, %121, %cst_44 {dimension_numbers = #tpu.dot_dimension_numbers<[1], [1], [0], [0], [0, 0, 1, 0], [], []>} : vector<16x16xf32>, vector<16x16xf32>, vector<16x16xf32> -> vector<16x16xf32>
    %124 = arith.addf %123, %20 : vector<16x16xf32>
    %cst_45 = arith.constant dense<0xFF800000> : vector<16xf32>
    %125 = vector.multi_reduction <maximumf>, %124, %cst_45 [1] : vector<16x16xf32> to vector<16xf32>
    %126 = vector.shape_cast %125 : vector<16xf32> to vector<16x1xf32>
    %127 = vector.broadcast %126 : vector<16x1xf32> to vector<16x16xf32>
    %128 = arith.subf %124, %127 : vector<16x16xf32>
    %129 = math.exp %128 : vector<16x16xf32>
    %cst_46 = arith.constant dense<0.000000e+00> : vector<16xf32>
    %130 = vector.multi_reduction <add>, %129, %cst_46 [1] : vector<16x16xf32> to vector<16xf32>
    %131 = vector.shape_cast %130 : vector<16xf32> to vector<16x1xf32>
    %132 = tpu.reciprocal %131 {approx = true} : vector<16x1xf32> -> vector<16x1xf32>
    %133 = vector.broadcast %132 : vector<16x1xf32> to vector<16x16xf32>
    %134 = arith.mulf %129, %133 : vector<16x16xf32>
    %cst_47 = arith.constant dense<0.000000e+00> : vector<16x16xf32>
    %135 = tpu.matmul %134, %122, %cst_47 {dimension_numbers = #tpu.dot_dimension_numbers<[1], [0], [0], [1], [0, 0, 1, 1], [], []>} : vector<16x16xf32>, vector<16x16xf32>, vector<16x16xf32> -> vector<16x16xf32>
    %136 = vector.extract_strided_slice %32 {offsets = [48, 0], sizes = [16, 64], strides = [1, 1]} : vector<64x64xf32> to vector<16x64xf32>
    %cst_48 = arith.constant dense<0.000000e+00> : vector<16x64xf32>
    %137 = tpu.matmul %135, %136, %cst_48 {dimension_numbers = #tpu.dot_dimension_numbers<[1], [0], [0], [1], [0, 0, 1, 1], [], []>} : vector<16x16xf32>, vector<16x64xf32>, vector<16x64xf32> -> vector<16x64xf32>
    %138 = arith.addf %119, %137 : vector<16x64xf32>
    %139 = arith.addf %5, %138 : vector<16x64xf32>
    %140 = vector.broadcast %24 : vector<1x64xf32> to vector<16x64xf32>
    %141 = arith.addf %139, %140 : vector<16x64xf32>
    %cst_49 = arith.constant dense<0.000000e+00> : vector<16xf32>
    %142 = vector.multi_reduction <add>, %141, %cst_49 [1] : vector<16x64xf32> to vector<16xf32>
    %143 = vector.shape_cast %142 : vector<16xf32> to vector<16x1xf32>
    %cst_50 = arith.constant 6.400000e+01 : f32
    %144 = vector.broadcast %cst_50 : f32 to vector<16x1xf32>
    %145 = arith.divf %143, %144 : vector<16x1xf32>
    %146 = arith.mulf %141, %141 : vector<16x64xf32>
    %cst_51 = arith.constant dense<0.000000e+00> : vector<16xf32>
    %147 = vector.multi_reduction <add>, %146, %cst_51 [1] : vector<16x64xf32> to vector<16xf32>
    %148 = vector.shape_cast %147 : vector<16xf32> to vector<16x1xf32>
    %cst_52 = arith.constant 6.400000e+01 : f32
    %149 = vector.broadcast %cst_52 : f32 to vector<16x1xf32>
    %150 = arith.divf %148, %149 : vector<16x1xf32>
    %151 = arith.mulf %145, %145 : vector<16x1xf32>
    %152 = arith.subf %150, %151 : vector<16x1xf32>
    %153 = vector.broadcast %145 : vector<16x1xf32> to vector<16x64xf32>
    %154 = arith.subf %141, %153 : vector<16x64xf32>
    %cst_53 = arith.constant 9.99999997E-7 : f32
    %155 = vector.broadcast %cst_53 : f32 to vector<16x1xf32>
    %156 = arith.addf %152, %155 : vector<16x1xf32>
    %157 = math.rsqrt %156 : vector<16x1xf32>
    %158 = vector.broadcast %157 : vector<16x1xf32> to vector<16x64xf32>
    %159 = arith.mulf %154, %158 : vector<16x64xf32>
    %160 = vector.broadcast %25 : vector<1x64xf32> to vector<16x64xf32>
    %161 = arith.mulf %159, %160 : vector<16x64xf32>
    %162 = vector.broadcast %26 : vector<1x64xf32> to vector<16x64xf32>
    %163 = arith.addf %161, %162 : vector<16x64xf32>
    %cst_54 = arith.constant dense<0.000000e+00> : vector<16x256xf32>
    %164 = tpu.matmul %163, %34, %cst_54 {dimension_numbers = #tpu.dot_dimension_numbers<[1], [0], [0], [1], [0, 0, 1, 1], [], []>} : vector<16x64xf32>, vector<64x256xf32>, vector<16x256xf32> -> vector<16x256xf32>
    %165 = vector.broadcast %27 : vector<1x256xf32> to vector<16x256xf32>
    %166 = arith.addf %164, %165 : vector<16x256xf32>
    %167 = arith.mulf %166, %166 : vector<16x256xf32>
    %168 = arith.mulf %166, %167 : vector<16x256xf32>
    %cst_55 = arith.constant 4.471500e-02 : f32
    %169 = vector.broadcast %cst_55 : f32 to vector<16x256xf32>
    %170 = arith.mulf %169, %168 : vector<16x256xf32>
    %171 = arith.addf %166, %170 : vector<16x256xf32>
    %cst_56 = arith.constant 0.797884583 : f32
    %172 = vector.broadcast %cst_56 : f32 to vector<16x256xf32>
    %173 = arith.mulf %172, %171 : vector<16x256xf32>
    %174 = math.tanh %173 : vector<16x256xf32>
    %cst_57 = arith.constant 1.000000e+00 : f32
    %175 = vector.broadcast %cst_57 : f32 to vector<16x256xf32>
    %176 = arith.addf %175, %174 : vector<16x256xf32>
    %cst_58 = arith.constant 5.000000e-01 : f32
    %177 = vector.broadcast %cst_58 : f32 to vector<16x256xf32>
    %178 = arith.mulf %177, %176 : vector<16x256xf32>
    %179 = arith.mulf %166, %178 : vector<16x256xf32>
    %cst_59 = arith.constant dense<0.000000e+00> : vector<16x64xf32>
    %180 = tpu.matmul %179, %36, %cst_59 {dimension_numbers = #tpu.dot_dimension_numbers<[1], [0], [0], [1], [0, 0, 1, 1], [], []>} : vector<16x256xf32>, vector<256x64xf32>, vector<16x64xf32> -> vector<16x64xf32>
    %181 = vector.broadcast %28 : vector<1x64xf32> to vector<16x64xf32>
    %182 = arith.addf %180, %181 : vector<16x64xf32>
    %183 = arith.addf %141, %182 : vector<16x64xf32>
    %184 = vector.extract_strided_slice %0 {offsets = [8, 0], sizes = [1, 64], strides = [1, 1]} : vector<19x256xf32> to vector<1x64xf32>
    %185 = vector.extract_strided_slice %0 {offsets = [9, 0], sizes = [1, 64], strides = [1, 1]} : vector<19x256xf32> to vector<1x64xf32>
    %186 = vector.extract_strided_slice %0 {offsets = [10, 0], sizes = [1, 192], strides = [1, 1]} : vector<19x256xf32> to vector<1x192xf32>
    %187 = vector.extract_strided_slice %0 {offsets = [11, 0], sizes = [1, 64], strides = [1, 1]} : vector<19x256xf32> to vector<1x64xf32>
    %188 = vector.extract_strided_slice %0 {offsets = [12, 0], sizes = [1, 64], strides = [1, 1]} : vector<19x256xf32> to vector<1x64xf32>
    %189 = vector.extract_strided_slice %0 {offsets = [13, 0], sizes = [1, 64], strides = [1, 1]} : vector<19x256xf32> to vector<1x64xf32>
    %190 = vector.extract_strided_slice %0 {offsets = [14, 0], sizes = [1, 256], strides = [1, 1]} : vector<19x256xf32> to vector<1x256xf32>
    %191 = vector.extract_strided_slice %0 {offsets = [15, 0], sizes = [1, 64], strides = [1, 1]} : vector<19x256xf32> to vector<1x64xf32>
    %c1 = arith.constant 1 : index
    %c0_60 = arith.constant 0 : index
    %c0_61 = arith.constant 0 : index
    %192 = vector.load %arg4[%c1, %c0_60, %c0_61] : memref<2x64x192xf32, #tpu.memory_space<vmem>>, vector<1x64x192xf32>
    %193 = vector.shape_cast %192 : vector<1x64x192xf32> to vector<64x192xf32>
    %c1_62 = arith.constant 1 : index
    %c0_63 = arith.constant 0 : index
    %c0_64 = arith.constant 0 : index
    %194 = vector.load %arg5[%c1_62, %c0_63, %c0_64] : memref<2x64x64xf32, #tpu.memory_space<vmem>>, vector<1x64x64xf32>
    %195 = vector.shape_cast %194 : vector<1x64x64xf32> to vector<64x64xf32>
    %c1_65 = arith.constant 1 : index
    %c0_66 = arith.constant 0 : index
    %c0_67 = arith.constant 0 : index
    %196 = vector.load %arg6[%c1_65, %c0_66, %c0_67] : memref<2x64x256xf32, #tpu.memory_space<vmem>>, vector<1x64x256xf32>
    %197 = vector.shape_cast %196 : vector<1x64x256xf32> to vector<64x256xf32>
    %c1_68 = arith.constant 1 : index
    %c0_69 = arith.constant 0 : index
    %c0_70 = arith.constant 0 : index
    %198 = vector.load %arg7[%c1_68, %c0_69, %c0_70] : memref<2x256x64xf32, #tpu.memory_space<vmem>>, vector<1x256x64xf32>
    %199 = vector.shape_cast %198 : vector<1x256x64xf32> to vector<256x64xf32>
    %cst_71 = arith.constant dense<0.000000e+00> : vector<16xf32>
    %200 = vector.multi_reduction <add>, %183, %cst_71 [1] : vector<16x64xf32> to vector<16xf32>
    %201 = vector.shape_cast %200 : vector<16xf32> to vector<16x1xf32>
    %cst_72 = arith.constant 6.400000e+01 : f32
    %202 = vector.broadcast %cst_72 : f32 to vector<16x1xf32>
    %203 = arith.divf %201, %202 : vector<16x1xf32>
    %204 = arith.mulf %183, %183 : vector<16x64xf32>
    %cst_73 = arith.constant dense<0.000000e+00> : vector<16xf32>
    %205 = vector.multi_reduction <add>, %204, %cst_73 [1] : vector<16x64xf32> to vector<16xf32>
    %206 = vector.shape_cast %205 : vector<16xf32> to vector<16x1xf32>
    %cst_74 = arith.constant 6.400000e+01 : f32
    %207 = vector.broadcast %cst_74 : f32 to vector<16x1xf32>
    %208 = arith.divf %206, %207 : vector<16x1xf32>
    %209 = arith.mulf %203, %203 : vector<16x1xf32>
    %210 = arith.subf %208, %209 : vector<16x1xf32>
    %211 = vector.broadcast %203 : vector<16x1xf32> to vector<16x64xf32>
    %212 = arith.subf %183, %211 : vector<16x64xf32>
    %cst_75 = arith.constant 9.99999997E-7 : f32
    %213 = vector.broadcast %cst_75 : f32 to vector<16x1xf32>
    %214 = arith.addf %210, %213 : vector<16x1xf32>
    %215 = math.rsqrt %214 : vector<16x1xf32>
    %216 = vector.broadcast %215 : vector<16x1xf32> to vector<16x64xf32>
    %217 = arith.mulf %212, %216 : vector<16x64xf32>
    %218 = vector.broadcast %184 : vector<1x64xf32> to vector<16x64xf32>
    %219 = arith.mulf %217, %218 : vector<16x64xf32>
    %220 = vector.broadcast %185 : vector<1x64xf32> to vector<16x64xf32>
    %221 = arith.addf %219, %220 : vector<16x64xf32>
    %cst_76 = arith.constant dense<0.000000e+00> : vector<16x192xf32>
    %222 = tpu.matmul %221, %193, %cst_76 {dimension_numbers = #tpu.dot_dimension_numbers<[1], [0], [0], [1], [0, 0, 1, 1], [], []>} : vector<16x64xf32>, vector<64x192xf32>, vector<16x192xf32> -> vector<16x192xf32>
    %223 = vector.broadcast %186 : vector<1x192xf32> to vector<16x192xf32>
    %224 = arith.addf %222, %223 : vector<16x192xf32>
    %cst_77 = arith.constant 0.000000e+00 : f32
    %225 = vector.broadcast %cst_77 : f32 to vector<16x64xf32>
    %226 = vector.extract_strided_slice %224 {offsets = [0, 0], sizes = [16, 16], strides = [1, 1]} : vector<16x192xf32> to vector<16x16xf32>
    %227 = vector.extract_strided_slice %224 {offsets = [0, 64], sizes = [16, 16], strides = [1, 1]} : vector<16x192xf32> to vector<16x16xf32>
    %228 = vector.extract_strided_slice %224 {offsets = [0, 128], sizes = [16, 16], strides = [1, 1]} : vector<16x192xf32> to vector<16x16xf32>
    %cst_78 = arith.constant dense<0.000000e+00> : vector<16x16xf32>
    %229 = tpu.matmul %226, %227, %cst_78 {dimension_numbers = #tpu.dot_dimension_numbers<[1], [1], [0], [0], [0, 0, 1, 0], [], []>} : vector<16x16xf32>, vector<16x16xf32>, vector<16x16xf32> -> vector<16x16xf32>
    %230 = arith.addf %229, %20 : vector<16x16xf32>
    %cst_79 = arith.constant dense<0xFF800000> : vector<16xf32>
    %231 = vector.multi_reduction <maximumf>, %230, %cst_79 [1] : vector<16x16xf32> to vector<16xf32>
    %232 = vector.shape_cast %231 : vector<16xf32> to vector<16x1xf32>
    %233 = vector.broadcast %232 : vector<16x1xf32> to vector<16x16xf32>
    %234 = arith.subf %230, %233 : vector<16x16xf32>
    %235 = math.exp %234 : vector<16x16xf32>
    %cst_80 = arith.constant dense<0.000000e+00> : vector<16xf32>
    %236 = vector.multi_reduction <add>, %235, %cst_80 [1] : vector<16x16xf32> to vector<16xf32>
    %237 = vector.shape_cast %236 : vector<16xf32> to vector<16x1xf32>
    %238 = tpu.reciprocal %237 {approx = true} : vector<16x1xf32> -> vector<16x1xf32>
    %239 = vector.broadcast %238 : vector<16x1xf32> to vector<16x16xf32>
    %240 = arith.mulf %235, %239 : vector<16x16xf32>
    %cst_81 = arith.constant dense<0.000000e+00> : vector<16x16xf32>
    %241 = tpu.matmul %240, %228, %cst_81 {dimension_numbers = #tpu.dot_dimension_numbers<[1], [0], [0], [1], [0, 0, 1, 1], [], []>} : vector<16x16xf32>, vector<16x16xf32>, vector<16x16xf32> -> vector<16x16xf32>
    %242 = vector.extract_strided_slice %195 {offsets = [0, 0], sizes = [16, 64], strides = [1, 1]} : vector<64x64xf32> to vector<16x64xf32>
    %cst_82 = arith.constant dense<0.000000e+00> : vector<16x64xf32>
    %243 = tpu.matmul %241, %242, %cst_82 {dimension_numbers = #tpu.dot_dimension_numbers<[1], [0], [0], [1], [0, 0, 1, 1], [], []>} : vector<16x16xf32>, vector<16x64xf32>, vector<16x64xf32> -> vector<16x64xf32>
    %244 = arith.addf %225, %243 : vector<16x64xf32>
    %245 = vector.extract_strided_slice %224 {offsets = [0, 16], sizes = [16, 16], strides = [1, 1]} : vector<16x192xf32> to vector<16x16xf32>
    %246 = vector.extract_strided_slice %224 {offsets = [0, 80], sizes = [16, 16], strides = [1, 1]} : vector<16x192xf32> to vector<16x16xf32>
    %247 = vector.extract_strided_slice %224 {offsets = [0, 144], sizes = [16, 16], strides = [1, 1]} : vector<16x192xf32> to vector<16x16xf32>
    %cst_83 = arith.constant dense<0.000000e+00> : vector<16x16xf32>
    %248 = tpu.matmul %245, %246, %cst_83 {dimension_numbers = #tpu.dot_dimension_numbers<[1], [1], [0], [0], [0, 0, 1, 0], [], []>} : vector<16x16xf32>, vector<16x16xf32>, vector<16x16xf32> -> vector<16x16xf32>
    %249 = arith.addf %248, %20 : vector<16x16xf32>
    %cst_84 = arith.constant dense<0xFF800000> : vector<16xf32>
    %250 = vector.multi_reduction <maximumf>, %249, %cst_84 [1] : vector<16x16xf32> to vector<16xf32>
    %251 = vector.shape_cast %250 : vector<16xf32> to vector<16x1xf32>
    %252 = vector.broadcast %251 : vector<16x1xf32> to vector<16x16xf32>
    %253 = arith.subf %249, %252 : vector<16x16xf32>
    %254 = math.exp %253 : vector<16x16xf32>
    %cst_85 = arith.constant dense<0.000000e+00> : vector<16xf32>
    %255 = vector.multi_reduction <add>, %254, %cst_85 [1] : vector<16x16xf32> to vector<16xf32>
    %256 = vector.shape_cast %255 : vector<16xf32> to vector<16x1xf32>
    %257 = tpu.reciprocal %256 {approx = true} : vector<16x1xf32> -> vector<16x1xf32>
    %258 = vector.broadcast %257 : vector<16x1xf32> to vector<16x16xf32>
    %259 = arith.mulf %254, %258 : vector<16x16xf32>
    %cst_86 = arith.constant dense<0.000000e+00> : vector<16x16xf32>
    %260 = tpu.matmul %259, %247, %cst_86 {dimension_numbers = #tpu.dot_dimension_numbers<[1], [0], [0], [1], [0, 0, 1, 1], [], []>} : vector<16x16xf32>, vector<16x16xf32>, vector<16x16xf32> -> vector<16x16xf32>
    %261 = vector.extract_strided_slice %195 {offsets = [16, 0], sizes = [16, 64], strides = [1, 1]} : vector<64x64xf32> to vector<16x64xf32>
    %cst_87 = arith.constant dense<0.000000e+00> : vector<16x64xf32>
    %262 = tpu.matmul %260, %261, %cst_87 {dimension_numbers = #tpu.dot_dimension_numbers<[1], [0], [0], [1], [0, 0, 1, 1], [], []>} : vector<16x16xf32>, vector<16x64xf32>, vector<16x64xf32> -> vector<16x64xf32>
    %263 = arith.addf %244, %262 : vector<16x64xf32>
    %264 = vector.extract_strided_slice %224 {offsets = [0, 32], sizes = [16, 16], strides = [1, 1]} : vector<16x192xf32> to vector<16x16xf32>
    %265 = vector.extract_strided_slice %224 {offsets = [0, 96], sizes = [16, 16], strides = [1, 1]} : vector<16x192xf32> to vector<16x16xf32>
    %266 = vector.extract_strided_slice %224 {offsets = [0, 160], sizes = [16, 16], strides = [1, 1]} : vector<16x192xf32> to vector<16x16xf32>
    %cst_88 = arith.constant dense<0.000000e+00> : vector<16x16xf32>
    %267 = tpu.matmul %264, %265, %cst_88 {dimension_numbers = #tpu.dot_dimension_numbers<[1], [1], [0], [0], [0, 0, 1, 0], [], []>} : vector<16x16xf32>, vector<16x16xf32>, vector<16x16xf32> -> vector<16x16xf32>
    %268 = arith.addf %267, %20 : vector<16x16xf32>
    %cst_89 = arith.constant dense<0xFF800000> : vector<16xf32>
    %269 = vector.multi_reduction <maximumf>, %268, %cst_89 [1] : vector<16x16xf32> to vector<16xf32>
    %270 = vector.shape_cast %269 : vector<16xf32> to vector<16x1xf32>
    %271 = vector.broadcast %270 : vector<16x1xf32> to vector<16x16xf32>
    %272 = arith.subf %268, %271 : vector<16x16xf32>
    %273 = math.exp %272 : vector<16x16xf32>
    %cst_90 = arith.constant dense<0.000000e+00> : vector<16xf32>
    %274 = vector.multi_reduction <add>, %273, %cst_90 [1] : vector<16x16xf32> to vector<16xf32>
    %275 = vector.shape_cast %274 : vector<16xf32> to vector<16x1xf32>
    %276 = tpu.reciprocal %275 {approx = true} : vector<16x1xf32> -> vector<16x1xf32>
    %277 = vector.broadcast %276 : vector<16x1xf32> to vector<16x16xf32>
    %278 = arith.mulf %273, %277 : vector<16x16xf32>
    %cst_91 = arith.constant dense<0.000000e+00> : vector<16x16xf32>
    %279 = tpu.matmul %278, %266, %cst_91 {dimension_numbers = #tpu.dot_dimension_numbers<[1], [0], [0], [1], [0, 0, 1, 1], [], []>} : vector<16x16xf32>, vector<16x16xf32>, vector<16x16xf32> -> vector<16x16xf32>
    %280 = vector.extract_strided_slice %195 {offsets = [32, 0], sizes = [16, 64], strides = [1, 1]} : vector<64x64xf32> to vector<16x64xf32>
    %cst_92 = arith.constant dense<0.000000e+00> : vector<16x64xf32>
    %281 = tpu.matmul %279, %280, %cst_92 {dimension_numbers = #tpu.dot_dimension_numbers<[1], [0], [0], [1], [0, 0, 1, 1], [], []>} : vector<16x16xf32>, vector<16x64xf32>, vector<16x64xf32> -> vector<16x64xf32>
    %282 = arith.addf %263, %281 : vector<16x64xf32>
    %283 = vector.extract_strided_slice %224 {offsets = [0, 48], sizes = [16, 16], strides = [1, 1]} : vector<16x192xf32> to vector<16x16xf32>
    %284 = vector.extract_strided_slice %224 {offsets = [0, 112], sizes = [16, 16], strides = [1, 1]} : vector<16x192xf32> to vector<16x16xf32>
    %285 = vector.extract_strided_slice %224 {offsets = [0, 176], sizes = [16, 16], strides = [1, 1]} : vector<16x192xf32> to vector<16x16xf32>
    %cst_93 = arith.constant dense<0.000000e+00> : vector<16x16xf32>
    %286 = tpu.matmul %283, %284, %cst_93 {dimension_numbers = #tpu.dot_dimension_numbers<[1], [1], [0], [0], [0, 0, 1, 0], [], []>} : vector<16x16xf32>, vector<16x16xf32>, vector<16x16xf32> -> vector<16x16xf32>
    %287 = arith.addf %286, %20 : vector<16x16xf32>
    %cst_94 = arith.constant dense<0xFF800000> : vector<16xf32>
    %288 = vector.multi_reduction <maximumf>, %287, %cst_94 [1] : vector<16x16xf32> to vector<16xf32>
    %289 = vector.shape_cast %288 : vector<16xf32> to vector<16x1xf32>
    %290 = vector.broadcast %289 : vector<16x1xf32> to vector<16x16xf32>
    %291 = arith.subf %287, %290 : vector<16x16xf32>
    %292 = math.exp %291 : vector<16x16xf32>
    %cst_95 = arith.constant dense<0.000000e+00> : vector<16xf32>
    %293 = vector.multi_reduction <add>, %292, %cst_95 [1] : vector<16x16xf32> to vector<16xf32>
    %294 = vector.shape_cast %293 : vector<16xf32> to vector<16x1xf32>
    %295 = tpu.reciprocal %294 {approx = true} : vector<16x1xf32> -> vector<16x1xf32>
    %296 = vector.broadcast %295 : vector<16x1xf32> to vector<16x16xf32>
    %297 = arith.mulf %292, %296 : vector<16x16xf32>
    %cst_96 = arith.constant dense<0.000000e+00> : vector<16x16xf32>
    %298 = tpu.matmul %297, %285, %cst_96 {dimension_numbers = #tpu.dot_dimension_numbers<[1], [0], [0], [1], [0, 0, 1, 1], [], []>} : vector<16x16xf32>, vector<16x16xf32>, vector<16x16xf32> -> vector<16x16xf32>
    %299 = vector.extract_strided_slice %195 {offsets = [48, 0], sizes = [16, 64], strides = [1, 1]} : vector<64x64xf32> to vector<16x64xf32>
    %cst_97 = arith.constant dense<0.000000e+00> : vector<16x64xf32>
    %300 = tpu.matmul %298, %299, %cst_97 {dimension_numbers = #tpu.dot_dimension_numbers<[1], [0], [0], [1], [0, 0, 1, 1], [], []>} : vector<16x16xf32>, vector<16x64xf32>, vector<16x64xf32> -> vector<16x64xf32>
    %301 = arith.addf %282, %300 : vector<16x64xf32>
    %302 = arith.addf %183, %301 : vector<16x64xf32>
    %303 = vector.broadcast %187 : vector<1x64xf32> to vector<16x64xf32>
    %304 = arith.addf %302, %303 : vector<16x64xf32>
    %cst_98 = arith.constant dense<0.000000e+00> : vector<16xf32>
    %305 = vector.multi_reduction <add>, %304, %cst_98 [1] : vector<16x64xf32> to vector<16xf32>
    %306 = vector.shape_cast %305 : vector<16xf32> to vector<16x1xf32>
    %cst_99 = arith.constant 6.400000e+01 : f32
    %307 = vector.broadcast %cst_99 : f32 to vector<16x1xf32>
    %308 = arith.divf %306, %307 : vector<16x1xf32>
    %309 = arith.mulf %304, %304 : vector<16x64xf32>
    %cst_100 = arith.constant dense<0.000000e+00> : vector<16xf32>
    %310 = vector.multi_reduction <add>, %309, %cst_100 [1] : vector<16x64xf32> to vector<16xf32>
    %311 = vector.shape_cast %310 : vector<16xf32> to vector<16x1xf32>
    %cst_101 = arith.constant 6.400000e+01 : f32
    %312 = vector.broadcast %cst_101 : f32 to vector<16x1xf32>
    %313 = arith.divf %311, %312 : vector<16x1xf32>
    %314 = arith.mulf %308, %308 : vector<16x1xf32>
    %315 = arith.subf %313, %314 : vector<16x1xf32>
    %316 = vector.broadcast %308 : vector<16x1xf32> to vector<16x64xf32>
    %317 = arith.subf %304, %316 : vector<16x64xf32>
    %cst_102 = arith.constant 9.99999997E-7 : f32
    %318 = vector.broadcast %cst_102 : f32 to vector<16x1xf32>
    %319 = arith.addf %315, %318 : vector<16x1xf32>
    %320 = math.rsqrt %319 : vector<16x1xf32>
    %321 = vector.broadcast %320 : vector<16x1xf32> to vector<16x64xf32>
    %322 = arith.mulf %317, %321 : vector<16x64xf32>
    %323 = vector.broadcast %188 : vector<1x64xf32> to vector<16x64xf32>
    %324 = arith.mulf %322, %323 : vector<16x64xf32>
    %325 = vector.broadcast %189 : vector<1x64xf32> to vector<16x64xf32>
    %326 = arith.addf %324, %325 : vector<16x64xf32>
    %cst_103 = arith.constant dense<0.000000e+00> : vector<16x256xf32>
    %327 = tpu.matmul %326, %197, %cst_103 {dimension_numbers = #tpu.dot_dimension_numbers<[1], [0], [0], [1], [0, 0, 1, 1], [], []>} : vector<16x64xf32>, vector<64x256xf32>, vector<16x256xf32> -> vector<16x256xf32>
    %328 = vector.broadcast %190 : vector<1x256xf32> to vector<16x256xf32>
    %329 = arith.addf %327, %328 : vector<16x256xf32>
    %330 = arith.mulf %329, %329 : vector<16x256xf32>
    %331 = arith.mulf %329, %330 : vector<16x256xf32>
    %cst_104 = arith.constant 4.471500e-02 : f32
    %332 = vector.broadcast %cst_104 : f32 to vector<16x256xf32>
    %333 = arith.mulf %332, %331 : vector<16x256xf32>
    %334 = arith.addf %329, %333 : vector<16x256xf32>
    %cst_105 = arith.constant 0.797884583 : f32
    %335 = vector.broadcast %cst_105 : f32 to vector<16x256xf32>
    %336 = arith.mulf %335, %334 : vector<16x256xf32>
    %337 = math.tanh %336 : vector<16x256xf32>
    %cst_106 = arith.constant 1.000000e+00 : f32
    %338 = vector.broadcast %cst_106 : f32 to vector<16x256xf32>
    %339 = arith.addf %338, %337 : vector<16x256xf32>
    %cst_107 = arith.constant 5.000000e-01 : f32
    %340 = vector.broadcast %cst_107 : f32 to vector<16x256xf32>
    %341 = arith.mulf %340, %339 : vector<16x256xf32>
    %342 = arith.mulf %329, %341 : vector<16x256xf32>
    %cst_108 = arith.constant dense<0.000000e+00> : vector<16x64xf32>
    %343 = tpu.matmul %342, %199, %cst_108 {dimension_numbers = #tpu.dot_dimension_numbers<[1], [0], [0], [1], [0, 0, 1, 1], [], []>} : vector<16x256xf32>, vector<256x64xf32>, vector<16x64xf32> -> vector<16x64xf32>
    %344 = vector.broadcast %191 : vector<1x64xf32> to vector<16x64xf32>
    %345 = arith.addf %343, %344 : vector<16x64xf32>
    %346 = arith.addf %304, %345 : vector<16x64xf32>
    %347 = vector.extract_strided_slice %0 {offsets = [16, 0], sizes = [1, 64], strides = [1, 1]} : vector<19x256xf32> to vector<1x64xf32>
    %348 = vector.extract_strided_slice %0 {offsets = [17, 0], sizes = [1, 64], strides = [1, 1]} : vector<19x256xf32> to vector<1x64xf32>
    %cst_109 = arith.constant dense<0.000000e+00> : vector<16xf32>
    %349 = vector.multi_reduction <add>, %346, %cst_109 [1] : vector<16x64xf32> to vector<16xf32>
    %350 = vector.shape_cast %349 : vector<16xf32> to vector<16x1xf32>
    %cst_110 = arith.constant 6.400000e+01 : f32
    %351 = vector.broadcast %cst_110 : f32 to vector<16x1xf32>
    %352 = arith.divf %350, %351 : vector<16x1xf32>
    %353 = arith.mulf %346, %346 : vector<16x64xf32>
    %cst_111 = arith.constant dense<0.000000e+00> : vector<16xf32>
    %354 = vector.multi_reduction <add>, %353, %cst_111 [1] : vector<16x64xf32> to vector<16xf32>
    %355 = vector.shape_cast %354 : vector<16xf32> to vector<16x1xf32>
    %cst_112 = arith.constant 6.400000e+01 : f32
    %356 = vector.broadcast %cst_112 : f32 to vector<16x1xf32>
    %357 = arith.divf %355, %356 : vector<16x1xf32>
    %358 = arith.mulf %352, %352 : vector<16x1xf32>
    %359 = arith.subf %357, %358 : vector<16x1xf32>
    %360 = vector.broadcast %352 : vector<16x1xf32> to vector<16x64xf32>
    %361 = arith.subf %346, %360 : vector<16x64xf32>
    %cst_113 = arith.constant 9.99999997E-7 : f32
    %362 = vector.broadcast %cst_113 : f32 to vector<16x1xf32>
    %363 = arith.addf %359, %362 : vector<16x1xf32>
    %364 = math.rsqrt %363 : vector<16x1xf32>
    %365 = vector.broadcast %364 : vector<16x1xf32> to vector<16x64xf32>
    %366 = arith.mulf %361, %365 : vector<16x64xf32>
    %367 = vector.broadcast %347 : vector<1x64xf32> to vector<16x64xf32>
    %368 = arith.mulf %366, %367 : vector<16x64xf32>
    %369 = vector.broadcast %348 : vector<1x64xf32> to vector<16x64xf32>
    %370 = arith.addf %368, %369 : vector<16x64xf32>
    %c0_114 = arith.constant 0 : index
    %c0_115 = arith.constant 0 : index
    %371 = vector.load %arg8[%c0_114, %c0_115] : memref<64x128xf32, #tpu.memory_space<vmem>>, vector<64x128xf32>
    %cst_116 = arith.constant dense<0.000000e+00> : vector<16x128xf32>
    %372 = tpu.matmul %370, %371, %cst_116 {dimension_numbers = #tpu.dot_dimension_numbers<[1], [0], [0], [1], [0, 0, 1, 1], [], []>} : vector<16x64xf32>, vector<64x128xf32>, vector<16x128xf32> -> vector<16x128xf32>
    %373 = vector.extract_strided_slice %0 {offsets = [18, 0], sizes = [1, 128], strides = [1, 1]} : vector<19x256xf32> to vector<1x128xf32>
    %374 = vector.broadcast %373 : vector<1x128xf32> to vector<16x128xf32>
    %375 = arith.addf %372, %374 : vector<16x128xf32>
    %c0_117 = arith.constant 0 : index
    %c0_118 = arith.constant 0 : index
    %376 = vector.load %arg9[%c0_117, %c0_118] : memref<16x128xf32, #tpu.memory_space<vmem>>, vector<16x128xf32>
    tpu.vector_store %arg9[%c0_117, %c0_118], %375 {strides = array<i32>} : memref<16x128xf32, #tpu.memory_space<vmem>>, vector<16x128xf32>,
    return
  }
}

</mosaic_0001>

<bundles_post_ra>
// kernel: vit_forward.1
= control target key start
LH: loop header
LB: loop body
LE: loop exit
PB: predicated region body
PF: predicated region fallthrough
CT: control target
= control target key end

     0   :  { %vm460_vm0 = vcmask 523264   ;;  %vm601_vm1 = vcmask 130048   ;;  %s4879_s28 = smov 64   ;;  %s4880_s29 = smov 112   ;;  %s6137_s1 = inlined_call_operand.vmem [shape: f32[768,64], index: 1, kind: input, shape index: {}]   ;;  %s6138_s0 = inlined_call_operand.vmem [shape: f32[16,768], index: 0, kind: input, shape index: {}]   ;;  %s6139_s2 = inlined_call_operand.vmem [shape: f32[16,64], index: 2, kind: input, shape index: {}]   ;;  %s6140_s4 = inlined_call_operand.vmem [shape: f32[2,64,192], index: 4, kind: input, shape index: {}]   ;;  %s6141_s3 = inlined_call_operand.vmem [shape: f32[19,256], index: 3, kind: input, shape index: {}]   ;;  %s6142_s5 = inlined_call_operand.vmem [shape: f32[2,64,64], index: 5, kind: input, shape index: {}]   ;;  %s6143_s6 = inlined_call_operand.vmem [shape: f32[2,64,256], index: 6, kind: input, shape index: {}]   ;;  %s6144_s7 = inlined_call_operand.vmem [shape: f32[2,256,64], index: 7, kind: input, shape index: {}]   ;;  %s6145_s8 = inlined_call_operand.vmem [shape: f32[64,128], index: 8, kind: input, shape index: {}]   ;;  %s6146_s9 = inlined_call_operand.vmem [shape: f32[16,128], index: 9, kind: output, shape index: {}]  }
   0x1   :  { %v65_v0 = vld [vmem:[%s6137_s1 + $0x80] sm:$0xff]  ;;  %v66_v1 = vld [vmem:[%s6137_s1 + $0x88] sm:$0xff]  ;;  %v67_v11 = vld [vmem:[%s6137_s1 + $0x90] sm:$0xff]  ;;  %s4882_s30 = smov 48   ;;  %s4883_s10 = smov 32  }
   0x2   :  { %v49_v2 = vld [vmem:[%s6137_s1] sm:$0xff]  ;;  %v4335_v3 = vpack.c.bf16 %v66_v1, %v65_v0  ;;  %v50_v4 = vld [vmem:[%s6137_s1 + $0x8] sm:$0xff]  ;;  %v68_v13 = vld [vmem:[%s6137_s1 + $0x98] sm:$0xff]  ;;  %s4884_s11 = smov 96   ;;  %s4885_s12 = smov 80  }
   0x3   :  { %v97_v5 = vld [vmem:[%s6137_s1 + $0x180] sm:$0xff]  ;;  %v98_v6 = vld [vmem:[%s6137_s1 + $0x188] sm:$0xff]  ;;  %v4337_v7 = vpack.c.bf16 %v50_v4, %v49_v2  ;;  %v51_v14 = vld [vmem:[%s6137_s1 + $0x10] sm:$0xff]  ;;  %v4339_v16 = vpack.c.bf16 %v68_v13, %v67_v11  ;;  %s4886_s13 = smov 16  }
   0x4   :  { %v4367_v8 = vpack.c.bf16 %v98_v6, %v97_v5  ;;  %v81_v9 = vld [vmem:[%s6137_s1 + $0x100] sm:$0xff]  ;;  %v82_v10 = vld [vmem:[%s6137_s1 + $0x108] sm:$0xff]  ;;  %4336 = vmatprep.subr.bf16.mxu0 %v4335_v3  ;;  %v52_v15 = vld [vmem:[%s6137_s1 + $0x18] sm:$0xff] }
   0x5   :  { %v4369_v12 = vpack.c.bf16 %v82_v10, %v81_v9  ;;  %4338 = vmatpush3.bf16.msra.mxu0 %v4337_v7  ;;  %v4341_v17 = vpack.c.bf16 %v52_v15, %v51_v14  ;;  %v99_v18 = vld [vmem:[%s6137_s1 + $0x190] sm:$0xff]  ;;  %v100_v19 = vld [vmem:[%s6137_s1 + $0x198] sm:$0xff]  ;;  %v69_v23 = vld [vmem:[%s6137_s1 + $0xa0] sm:$0xff] }
   0x6   :  { %4368 = vmatprep.subr.bf16.mxu1 %v4367_v8  ;;  %v83_v20 = vld [vmem:[%s6137_s1 + $0x110] sm:$0xff]  ;;  %v4371_v21 = vpack.c.bf16 %v100_v19, %v99_v18  ;;  %v84_v22 = vld [vmem:[%s6137_s1 + $0x118] sm:$0xff]  ;;  %v70_v24 = vld [vmem:[%s6137_s1 + $0xa8] sm:$0xff]  ;;  %4340 = vmatprep.subr.bf16.mxu0 %v4339_v16 }
   0x7   :  { %4370 = vmatpush3.bf16.msra.mxu1 %v4369_v12  ;;  %v4373_v25 = vpack.c.bf16 %v84_v22, %v83_v20  ;;  %v4343_v26 = vpack.c.bf16 %v70_v24, %v69_v23  ;;  %v53_v27 = vld [vmem:[%s6137_s1 + $0x20] sm:$0xff]  ;;  %v54_v28 = vld [vmem:[%s6137_s1 + $0x28] sm:$0xff]  ;;  %v71_v35 = vld [vmem:[%s6137_s1 + $0xb0] sm:$0xff] }
   0x8   :  { %v101_v29 = vld [vmem:[%s6137_s1 + $0x1a0] sm:$0xff]  ;;  %4372 = vmatprep.subr.bf16.mxu1 %v4371_v21  ;;  %v102_v30 = vld [vmem:[%s6137_s1 + $0x1a8] sm:$0xff]  ;;  %v4345_v33 = vpack.c.bf16 %v54_v28, %v53_v27  ;;  %v72_v36 = vld [vmem:[%s6137_s1 + $0xb8] sm:$0xff] }
   0x9   :  { %v85_v31 = vld [vmem:[%s6137_s1 + $0x120] sm:$0xff]  ;;  %v86_v32 = vld [vmem:[%s6137_s1 + $0x128] sm:$0xff]  ;;  %4342 = vmatpush3.bf16.msra.mxu0 %v4341_v17  ;;  %v4375_v34 = vpack.c.bf16 %v102_v30, %v101_v29  ;;  %v55_v37 = vld [vmem:[%s6137_s1 + $0x30] sm:$0xff]  ;;  %v4347_v39 = vpack.c.bf16 %v72_v36, %v71_v35 }
   0xa   :  { %4344 = vmatprep.subr.bf16.mxu0 %v4343_v26  ;;  %v4377_v38 = vpack.c.bf16 %v86_v32, %v85_v31  ;;  %v56_v40 = vld [vmem:[%s6137_s1 + $0x38] sm:$0xff]  ;;  %v103_v41 = vld [vmem:[%s6137_s1 + $0x1b0] sm:$0xff]  ;;  %v73_v46 = vld [vmem:[%s6137_s1 + $0xc0] sm:$0xff] }
   0xb   :  { %4374 = vmatpush3.bf16.msra.mxu1 %v4373_v25  ;;  %v104_v42 = vld [vmem:[%s6137_s1 + $0x1b8] sm:$0xff]  ;;  %v87_v44 = vld [vmem:[%s6137_s1 + $0x130] sm:$0xff]  ;;  %v74_v47 = vld [vmem:[%s6137_s1 + $0xc8] sm:$0xff]  ;;  %v4349_v48 = vpack.c.bf16 %v56_v40, %v55_v37 }
   0xc   :  { %4376 = vmatprep.subr.bf16.mxu1 %v4375_v34  ;;  %v4379_v43 = vpack.c.bf16 %v104_v42, %v103_v41  ;;  %v88_v45 = vld [vmem:[%s6137_s1 + $0x138] sm:$0xff]  ;;  %v105_v49 = vld [vmem:[%s6137_s1 + $0x1c0] sm:$0xff]  ;;  %v106_v50 = vld [vmem:[%s6137_s1 + $0x1c8] sm:$0xff]  ;;  %v4351_v52 = vpack.c.bf16 %v74_v47, %v73_v46 }
   0xd   :  { %4346 = vmatpush3.bf16.msra.mxu0 %v4345_v33  ;;  %v4381_v51 = vpack.c.bf16 %v88_v45, %v87_v44  ;;  %v57_v53 = vld [vmem:[%s6137_s1 + $0x40] sm:$0xff]  ;;  %v58_v54 = vld [vmem:[%s6137_s1 + $0x48] sm:$0xff]  ;;  %v4383_v56 = vpack.c.bf16 %v106_v50, %v105_v49  ;;  %v75_v58 = vld [vmem:[%s6137_s1 + $0xd0] sm:$0xff] }
   0xe   :  { %4348 = vmatprep.subr.bf16.mxu0 %v4347_v39  ;;  %v89_v55 = vld [vmem:[%s6137_s1 + $0x140] sm:$0xff]  ;;  %v90_v57 = vld [vmem:[%s6137_s1 + $0x148] sm:$0xff]  ;;  %v76_v59 = vld [vmem:[%s6137_s1 + $0xd8] sm:$0xff]  ;;  %v4353_v62 = vpack.c.bf16 %v58_v54, %v57_v53 }
   0xf   :  { %4378 = vmatpush3.bf16.msra.mxu1 %v4377_v38  ;;  %v107_v60 = vld [vmem:[%s6137_s1 + $0x1d0] sm:$0xff]  ;;  %v108_v61 = vld [vmem:[%s6137_s1 + $0x1d8] sm:$0xff]  ;;  %v4385_v63 = vpack.c.bf16 %v90_v57, %v89_v55  ;;  %v4355_v0 = vpack.c.bf16 %v76_v59, %v75_v58  ;;  %v77_v6 = vld [vmem:[%s6137_s1 + $0xe0] sm:$0xff] }
  0x10   :  { %4380 = vmatprep.subr.bf16.mxu1 %v4379_v43  ;;  %v59_v1 = vld [vmem:[%s6137_s1 + $0x50] sm:$0xff]  ;;  %v60_v2 = vld [vmem:[%s6137_s1 + $0x58] sm:$0xff]  ;;  %v4387_v4 = vpack.c.bf16 %v108_v61, %v107_v60  ;;  %v78_v7 = vld [vmem:[%s6137_s1 + $0xe8] sm:$0xff] }
  0x11   :  { %4350 = vmatpush3.bf16.msra.mxu0 %v4349_v48  ;;  %v91_v3 = vld [vmem:[%s6137_s1 + $0x150] sm:$0xff]  ;;  %v92_v5 = vld [vmem:[%s6137_s1 + $0x158] sm:$0xff]  ;;  %v109_v8 = vld [vmem:[%s6137_s1 + $0x1e0] sm:$0xff]  ;;  %v4357_v10 = vpack.c.bf16 %v60_v2, %v59_v1  ;;  %v4359_v14 = vpack.c.bf16 %v78_v7, %v77_v6 }
  0x12   :  { %4352 = vmatprep.subr.bf16.mxu0 %v4351_v52  ;;  %v110_v9 = vld [vmem:[%s6137_s1 + $0x1e8] sm:$0xff]  ;;  %v61_v11 = vld [vmem:[%s6137_s1 + $0x60] sm:$0xff]  ;;  %v4389_v13 = vpack.c.bf16 %v92_v5, %v91_v3  ;;  %v79_v19 = vld [vmem:[%s6137_s1 + $0xf0] sm:$0xff] }
  0x13   :  { %4382 = vmatpush3.bf16.msra.mxu1 %v4381_v51  ;;  %v38_v12 = vld [vmem:[%s6138_s0 + $0x8] sm:$0xff]  ;;  %v93_v16 = vld [vmem:[%s6137_s1 + $0x160] sm:$0xff]  ;;  %v4391_v18 = vpack.c.bf16 %v110_v9, %v109_v8  ;;  %v80_v20 = vld [vmem:[%s6137_s1 + $0xf8] sm:$0xff] }
  0x14   :  { %4384 = vmatprep.subr.bf16.mxu1 %v4383_v56  ;;  %v62_v15 = vld [vmem:[%s6137_s1 + $0x68] sm:$0xff]  ;;  %211 = vmatprep.mubr.f32.mxu0 %v38_v12  ;;  %v40_v21 = vld [vmem:[%s6138_s0 + $0x18] sm:$0xff]  ;;  %v111_v22 = vld [vmem:[%s6137_s1 + $0x1f0] sm:$0xff]  ;;  %v4363_v26 = vpack.c.bf16 %v80_v20, %v79_v19 }
  0x15   :  { %4354 = vmatpush3.bf16.msra.mxu0 %v4353_v62  ;;  %v94_v17 = vld [vmem:[%s6137_s1 + $0x168] sm:$0xff]  ;;  %v112_v23 = vld [vmem:[%s6137_s1 + $0x1f8] sm:$0xff]  ;;  %286 = vmatprep.mubr.f32.mxu1 %v40_v21  ;;  %v4361_v24 = vpack.c.bf16 %v62_v15, %v61_v11  ;;  %v63_v27 = vld [vmem:[%s6137_s1 + $0x70] sm:$0xff] }
  0x16   :  { %4356 = vmatprep.subr.bf16.mxu0 %v4355_v0  ;;  %v4393_v25 = vpack.c.bf16 %v94_v17, %v93_v16  ;;  %v64_v28 = vld [vmem:[%s6137_s1 + $0x78] sm:$0xff]  ;;  %v95_v29 = vld [vmem:[%s6137_s1 + $0x170] sm:$0xff]  ;;  %v4395_v30 = vpack.c.bf16 %v112_v23, %v111_v22  ;;  %v129_v32 = vld [vmem:[%s6137_s1 + $0x280] sm:$0xff] }
  0x17   :  { %4386 = vmatpush3.bf16.msra.mxu1 %v4385_v63  ;;  %v96_v31 = vld [vmem:[%s6137_s1 + $0x178] sm:$0xff]  ;;  %v130_v33 = vld [vmem:[%s6137_s1 + $0x288] sm:$0xff]  ;;  %v4365_v34 = vpack.c.bf16 %v64_v28, %v63_v27  ;;  %v113_v37 = vld [vmem:[%s6137_s1 + $0x200] sm:$0xff] }
  0x18   :  { %4388 = vmatprep.subr.bf16.mxu1 %v4387_v4  ;;  %v4397_v35 = vpack.c.bf16 %v96_v31, %v95_v29  ;;  %v4399_v36 = vpack.c.bf16 %v130_v33, %v129_v32  ;;  %v114_v38 = vld [vmem:[%s6137_s1 + $0x208] sm:$0xff]  ;;  %v131_v39 = vld [vmem:[%s6137_s1 + $0x290] sm:$0xff]  ;;  %v132_v40 = vld [vmem:[%s6137_s1 + $0x298] sm:$0xff] }
  0x19   :  { %4358 = vmatpush3.bf16.msra.mxu0 %v4357_v10  ;;  %v37_v41 = vld [vmem:[%s6138_s0] sm:$0xff]  ;;  %v4401_v42 = vpack.c.bf16 %v114_v38, %v113_v37  ;;  %v39_v43 = vld [vmem:[%s6138_s0 + $0x10] sm:$0xff]  ;;  %v4403_v44 = vpack.c.bf16 %v132_v40, %v131_v39  ;;  %v116_v46 = vld [vmem:[%s6137_s1 + $0x218] sm:$0xff] }
  0x1a   :  { %4360 = vmatprep.subr.bf16.mxu0 %v4359_v14  ;;  %v115_v45 = vld [vmem:[%s6137_s1 + $0x210] sm:$0xff]  ;;  %v133_v47 = vld [vmem:[%s6137_s1 + $0x2a0] sm:$0xff]  ;;  %v134_v48 = vld [vmem:[%s6137_s1 + $0x2a8] sm:$0xff] }
  0x1b   :  { %4390 = vmatpush3.bf16.msra.mxu1 %v4389_v13  ;;  %v44_v49 = vld [vmem:[%s6138_s0 + $0x38] sm:$0xff]  ;;  %v46_v50 = vld [vmem:[%s6138_s0 + $0x48] sm:$0xff]  ;;  %v4405_v51 = vpack.c.bf16 %v116_v46, %v115_v45  ;;  %v43_v52 = vld [vmem:[%s6138_s0 + $0x30] sm:$0xff]  ;;  %v4407_v53 = vpack.c.bf16 %v134_v48, %v133_v47 }
  0x1c   :  { %4392 = vmatprep.subr.bf16.mxu1 %v4391_v18  ;;  %v117_v54 = vld [vmem:[%s6137_s1 + $0x220] sm:$0xff]  ;;  %v118_v55 = vld [vmem:[%s6137_s1 + $0x228] sm:$0xff]  ;;  %v135_v57 = vld [vmem:[%s6137_s1 + $0x2b0] sm:$0xff] }
  0x1d   :  { %4362 = vmatpush3.bf16.msra.mxu0 %v4361_v24  ;;  %v45_v56 = vld [vmem:[%s6138_s0 + $0x40] sm:$0xff]  ;;  %v136_v58 = vld [vmem:[%s6137_s1 + $0x2b8] sm:$0xff]  ;;  %v42_v59 = vld [vmem:[%s6138_s0 + $0x28] sm:$0xff]  ;;  %v4409_v60 = vpack.c.bf16 %v118_v55, %v117_v54 }
  0x1e   :  { %4364 = vmatprep.subr.bf16.mxu0 %v4363_v26  ;;  %v4411_v61 = vpack.c.bf16 %v136_v58, %v135_v57  ;;  %v119_v62 = vld [vmem:[%s6137_s1 + $0x230] sm:$0xff]  ;;  %v120_v63 = vld [vmem:[%s6137_s1 + $0x238] sm:$0xff]  ;;  %v137_v0 = vld [vmem:[%s6137_s1 + $0x2c0] sm:$0xff] }
  0x1f   :  { %4394 = vmatpush3.bf16.msra.mxu1 %v4393_v25  ;;  %v138_v1 = vld [vmem:[%s6137_s1 + $0x2c8] sm:$0xff]  ;;  %v4413_v2 = vpack.c.bf16 %v120_v63, %v119_v62  ;;  %v121_v4 = vld [vmem:[%s6137_s1 + $0x240] sm:$0xff]  ;;  %v139_v6 = vld [vmem:[%s6137_s1 + $0x2d0] sm:$0xff] }
  0x20   :  { %4396 = vmatprep.subr.bf16.mxu1 %v4395_v30  ;;  %v4415_v3 = vpack.c.bf16 %v138_v1, %v137_v0  ;;  %v122_v5 = vld [vmem:[%s6137_s1 + $0x248] sm:$0xff]  ;;  %v140_v7 = vld [vmem:[%s6137_s1 + $0x2d8] sm:$0xff]  ;;  %v123_v10 = vld [vmem:[%s6137_s1 + $0x250] sm:$0xff] }
  0x21   :  { %4366 = vmatpush3.bf16.msra.mxu0 %v4365_v34  ;;  %v4417_v8 = vpack.c.bf16 %v122_v5, %v121_v4  ;;  %v4419_v9 = vpack.c.bf16 %v140_v7, %v139_v6  ;;  %v124_v11 = vld [vmem:[%s6137_s1 + $0x258] sm:$0xff]  ;;  %v141_v12 = vld [vmem:[%s6137_s1 + $0x2e0] sm:$0xff]  ;;  %v142_v13 = vld [vmem:[%s6137_s1 + $0x2e8] sm:$0xff] }
  0x22   :  { %4400 = vmatprep.subr.bf16.mxu0 %v4399_v36  ;;  %v4421_v14 = vpack.c.bf16 %v124_v11, %v123_v10  ;;  %v4423_v15 = vpack.c.bf16 %v142_v13, %v141_v12  ;;  %v125_v16 = vld [vmem:[%s6137_s1 + $0x260] sm:$0xff]  ;;  %v126_v17 = vld [vmem:[%s6137_s1 + $0x268] sm:$0xff]  ;;  %v143_v18 = vld [vmem:[%s6137_s1 + $0x2f0] sm:$0xff] }
  0x23   :  { %4398 = vmatpush3.bf16.msra.mxu1 %v4397_v35  ;;  %v144_v19 = vld [vmem:[%s6137_s1 + $0x2f8] sm:$0xff]  ;;  %v4425_v20 = vpack.c.bf16 %v126_v17, %v125_v16  ;;  %v127_v22 = vld [vmem:[%s6137_s1 + $0x270] sm:$0xff]  ;;  %v41_v25 = vld [vmem:[%s6138_s0 + $0x20] sm:$0xff] }
  0x24   :  { %212 = vmatmul.mubr.f32.vlgmr.msra.gmra.mrb[0].mxu0 %v37_v41  ;;  %v4427_v21 = vpack.c.bf16 %v144_v19, %v143_v18  ;;  %v128_v23 = vld [vmem:[%s6137_s1 + $0x278] sm:$0xff]  ;;  %v47_v27 = vld [vmem:[%s6138_s0 + $0x50] sm:$0xff]  ;;  %v145_v29 = vld [vmem:[%s6139_s2] sm:$0xff] }
  0x25   :  { %4402 = vmatpush3.bf16.msra.mxu0 %v4401_v42  ;;  %216 = vmatprep.mubr.f32.mxu0 %v44_v49  ;;  %v4429_v24 = vpack.c.bf16 %v128_v23, %v127_v22  ;;  %v48_v26 = vld [vmem:[%s6138_s0 + $0x58] sm:$0xff]  ;;  %v146_v37 = vld [vmem:[%s6139_s2 + $0x8] sm:$0xff]  ;;  %v388_v63 = vld [vmem:[%s6140_s4] sm:$0xff] }
  0x26   :  { %287 = vmatmul.mubr.f32.vlgmr.msra.gmra.mrb[0].mxu1 %v39_v43  ;;  %4404 = vmatprep.subr.bf16.mxu0 %v4403_v44  ;;  %v390_v0 = vld [vmem:[%s6140_s4 + $0x10] sm:$0xff]  ;;  %v392_v5 = vld [vmem:[%s6140_s4 + $0x20] sm:$0xff]  ;;  %vm5384_vm2 = vmpackc.low %vm601_vm1, %vm601_vm1 }
  0x27   :  { %291 = vmatprep.mubr.f32.mxu1 %v46_v50  ;;  %v4433_v1 = vpack.c.bf16 %v390_v0, %v388_v63  ;;  %v394_v6 = vld [vmem:[%s6140_s4 + $0x30] sm:$0xff]  ;;  %v396_v11 = vld [vmem:[%s6140_s4 + $0x40] sm:$0xff] }
  0x28   :  { %217 = vmatmul.mubr.f32.gmra.mrb[2].mxu0 %v43_v52  ;;  %v4437_v7 = vpack.c.bf16 %v394_v6, %v392_v5  ;;  %v398_v12 = vld [vmem:[%s6140_s4 + $0x50] sm:$0xff]  ;;  %v400_v17 = vld [vmem:[%s6140_s4 + $0x60] sm:$0xff] }
  0x29   :  { %4406 = vmatpush3.bf16.msra.mxu0 %v4405_v51  ;;  %361 = vmatprep.mubr.f32.mxu0 %v42_v59  ;;  %v4441_v13 = vpack.c.bf16 %v398_v12, %v396_v11  ;;  %v402_v18 = vld [vmem:[%s6140_s4 + $0x70] sm:$0xff] }
  0x2a   :  { %292 = vmatmul.mubr.f32.gmra.mrb[2].mxu1 %v45_v56  ;;  %4408 = vmatprep.subr.bf16.mxu0 %v4407_v53  ;;  %v4445_v19 = vpack.c.bf16 %v402_v18, %v400_v17 }
  0x2d   :  { %4410 = vmatpush3.bf16.msra.mxu0 %v4409_v60  ;;  %v389_v60 = vld [vmem:[%s6140_s4 + $0x8] sm:$0xff] }
  0x2e   :  { %4412 = vmatprep.subr.bf16.mxu0 %v4411_v61  ;;  %v391_v61 = vld [vmem:[%s6140_s4 + $0x18] sm:$0xff] }
  0x2f   :  { %v4431_v62 = vpack.c.bf16 %v391_v61, %v389_v60 }
  0x31   :  { %4414 = vmatpush3.bf16.msra.mxu0 %v4413_v2  ;;  %4432 = vmatprep.subr.bf16.mxu1 %v4431_v62  ;;  %v393_v2 = vld [vmem:[%s6140_s4 + $0x28] sm:$0xff] }
  0x32   :  { %4416 = vmatprep.subr.bf16.mxu0 %v4415_v3  ;;  %4434 = vmatpush1.bf16.msra.mxu1 %v4433_v1  ;;  %v395_v3 = vld [vmem:[%s6140_s4 + $0x38] sm:$0xff] }
  0x33   :  { %v4435_v4 = vpack.c.bf16 %v395_v3, %v393_v2 }
  0x35   :  { %4418 = vmatpush3.bf16.msra.mxu0 %v4417_v8  ;;  %4436 = vmatprep.subr.bf16.mxu1 %v4435_v4  ;;  %v397_v8 = vld [vmem:[%s6140_s4 + $0x48] sm:$0xff] }
  0x36   :  { %4420 = vmatprep.subr.bf16.mxu0 %v4419_v9  ;;  %4438 = vmatpush1.bf16.msra.mxu1 %v4437_v7  ;;  %v399_v9 = vld [vmem:[%s6140_s4 + $0x58] sm:$0xff] }
  0x37   :  { %v4439_v10 = vpack.c.bf16 %v399_v9, %v397_v8  ;;  %v3758_v8 = vld [vmem:[%s6142_s5 + $0x40] sm:$0xff] }
  0x39   :  { %4422 = vmatpush3.bf16.msra.mxu0 %v4421_v14  ;;  %4440 = vmatprep.subr.bf16.mxu1 %v4439_v10  ;;  %v401_v14 = vld [vmem:[%s6140_s4 + $0x68] sm:$0xff] }
  0x3a   :  { %4424 = vmatprep.subr.bf16.mxu0 %v4423_v15  ;;  %4442 = vmatpush1.bf16.msra.mxu1 %v4441_v13  ;;  %v403_v15 = vld [vmem:[%s6140_s4 + $0x78] sm:$0xff] }
  0x3b   :  { %v4443_v16 = vpack.c.bf16 %v403_v15, %v401_v14 }
  0x3d   :  { %4426 = vmatpush3.bf16.msra.mxu0 %v4425_v20  ;;  %4444 = vmatprep.subr.bf16.mxu1 %v4443_v16  ;;  %v4878_v20 = vmov 0.0   ;;  %v4881_v16 = vmov -1e+30  }
  0x3e   :  { %4428 = vmatprep.subr.bf16.mxu0 %v4427_v21  ;;  %4446 = vmatpush1.bf16.msra.mxu1 %v4445_v19 }
  0x3f   :  { %582 = vmatprep.mubr.f32.mxu1 %v4878_v20 }
  0x41   :  { %4430 = vmatpush3.bf16.msra.mxu0 %v4429_v24 }
  0x44   :  { %362 = vmatmul.mubr.f32.vlgmr.msra.gmra.mrb[4].mxu0 %v41_v25 }
  0x45   :  { %366 = vmatprep.mubr.f32.mxu0 %v48_v26 }
  0x48   :  { %367 = vmatmul.mubr.f32.gmra.mrb[6].mxu0 %v47_v27 }
  0xf7   :  { %v3884_v28 = vpop.f32.mrb[0].mxu0 }
  0xf8   :  { %v3885_v30 = vpop.f32.mrb[1].mxu0 }
  0xf9   :  { %v3922_v31 = vpop.f32.mrb[0].mxu1  ;;  %v3886_v32 = vadd.f32 %v3885_v30, %v3884_v28 }
  0xfa   :  { %v3923_v33 = vpop.f32.mrb[1].mxu1 }
  0xfb   :  { %v3924_v34 = vadd.f32 %v3923_v33, %v3922_v31  ;;  %v214_v35 = vadd.f32 %v3886_v32, %v145_v29  ;;  %v3887_v36 = vpop.f32.mrb[2].mxu0  ;;  %v372_v29 = vlaneseq }
  0xfc   :  { %v3888_v38 = vpop.f32.mrb[3].mxu0 }
  0xfd   :  { %v3925_v39 = vpop.f32.mrb[2].mxu1  ;;  %v289_v40 = vadd.f32 %v3924_v34, %v214_v35  ;;  %v3889_v41 = vadd.f32 %v3888_v38, %v3887_v36  ;;  %v5330_v35 = vshrl.u32 %v372_v29, 7  ;;  %v5338_v38 = vld [vmem:[%s6141_s3] sm:$0xff]  ;;  %v376_v10 = vand.u32 127, %v372_v29 }
  0xfe   :  { %v3926_v42 = vpop.f32.mrb[3].mxu1 }
  0xff   :  { %v3927_v43 = vadd.f32 %v3926_v42, %v3925_v39  ;;  %v219_v44 = vadd.f32 %v3889_v41, %v146_v37  ;;  %v5333_v37 = vsub.s32 0, %v5330_v35  ;;  %v5341_v39 = vsub.s32 1, %v5330_v35 }
 0x100   :  { %v374_v11 = vadd.s32 8, %v5330_v35  ;;  %v379_v12 = vshra.s32 %v376_v10, 3  ;;  %v382_v13 = vand.u32 7, %v376_v10  ;;  %v377_v14 = vshra.s32 %v5330_v35, 3 }
 0x101   :  { %v294_v45 = vadd.f32 %v3927_v43, %v219_v44  ;;  %v495_v41 = vrot.slane %v5338_v38, %v5333_v37  ;;  %v501_v44 = vrot.slane %v5338_v38, %v5341_v39 }
 0x102   :  { %v378_v15 = vshra.s32 %v374_v11, 3  ;;  %vm383_vm3 = vcmp.lt.s32.totalorder %v382_v13, 5  ;;  %vm380_vm4 = vcmp.eq.s32.totalorder %v377_v14, %v379_v12 }
 0x103   :  { %vm384_vm6 = vmand %vm380_vm4, %vm383_vm3 }
 0x104   :  { %vm381_vm5 = vcmp.eq.s32.totalorder %v378_v15, %v379_v12  ;;  %v5396_v17 = vsel %vm384_vm6, 0.0, %v4881_v16  ;;  %v407_v15 = vld [vmem:[%s6142_s5 + $0x18] sm:$0xff] }
 0x105   :  { %vm385_vm7 = vmand %vm381_vm5, %vm383_vm3 }
 0x106   :  { %v5398_v19 = vsel %vm385_vm7, 0.0, %v4881_v16 }
 0x117   :  { %v3960_v46 = vpop.f32.mrb[4].mxu0 }
 0x118   :  { %v3961_v47 = vpop.f32.mrb[5].mxu0 }
 0x119   :  { %v3962_v48 = vadd.f32 %v3961_v47, %v3960_v46 }
 0x11b   :  { %v5267_v49 = vadd.f32 %v3962_v48, %v289_v40  ;;  %v3963_v50 = vpop.f32.mrb[6].mxu0 }
 0x11c   :  { %v3964_v51 = vpop.f32.mrb[7].mxu0 }
 0x11d   :  { %v3965_v52 = vadd.f32 %v3964_v51, %v3963_v50  ;;  %v461_v53 = vsel %vm460_vm0, %v5267_v49, 0.0  ;;  %v470_v54 = vmul.f32 %v5267_v49, %v5267_v49 }
 0x11e   :  { %462 = vadd.xlane.f32.xlu0 %v461_v53  ;;  %v5353_v53 = vsub.s32 2, %v5330_v35 }
 0x11f   :  { %v5273_v55 = vadd.f32 %v3965_v52, %v294_v45  ;;  %v472_v57 = vsel %vm460_vm0, %v470_v54, 0.0 }
 0x120   :  { %v507_v54 = vrot.slane %v5338_v38, %v5353_v53 }
 0x121   :  { %v464_v56 = vsel %vm460_vm0, %v5273_v55, 0.0  ;;  %v471_v58 = vmul.f32 %v5273_v55, %v5273_v55 }
 0x122   :  { %465 = vadd.xlane.f32.xlu1 %v464_v56  ;;  %473 = vadd.xlane.f32.xlu0 %v472_v57  ;;  %v5360_v56 = vld [vmem:[%s6141_s3 + $0x8] sm:$0xff] }
 0x123   :  { %v475_v59 = vsel %vm460_vm0, %v471_v58, 0.0  ;;  %v511_v60 = vrot.slane %v5360_v56, %v5353_v53 }
 0x126   :  { %476 = vadd.xlane.f32.xlu1 %v475_v59 }
 0x1ab   :  { %v463_v21 = vpop.xlane.xlu0 %462 }
 0x1ac   :  { %v468_v22 = vmul.f32 0.015625, %v463_v21 }
 0x1ae   :  { %v480_v25 = vmul.f32 %v468_v22, %v468_v22  ;;  %v484_v40 = vsub.f32 %v5267_v49, %v468_v22 }
 0x1af   :  { %v466_v23 = vpop.xlane.xlu1 %465  ;;  %v474_v24 = vpop.xlane.xlu0 %473 }
 0x1b0   :  { %v469_v26 = vmul.f32 0.015625, %v466_v23  ;;  %v478_v27 = vmul.f32 0.015625, %v474_v24 }
 0x1b2   :  { %v482_v28 = vsub.f32 %v478_v27, %v480_v25  ;;  %v481_v31 = vmul.f32 %v469_v26, %v469_v26  ;;  %v485_v45 = vsub.f32 %v5273_v55, %v469_v26 }
 0x1b3   :  { %v477_v30 = vpop.xlane.xlu1 %476 }
 0x1b4   :  { %v486_v32 = vadd.f32 1e-06, %v482_v28  ;;  %v479_v33 = vmul.f32 0.015625, %v477_v30 }
 0x1b6   :  { %4778 = vrsqrt.f32 %v486_v32  ;;  %v483_v34 = vsub.f32 %v479_v33, %v481_v31 }
 0x1b8   :  { %v487_v36 = vadd.f32 1e-06, %v483_v34 }
 0x1ba   :  { %4780 = vrsqrt.f32 %v487_v36 }
 0x1c0   :  { %v4779_v42 = vpop.eup %4778 }
 0x1c1   :  { %v490_v43 = vmul.f32 %v4779_v42, %v484_v40 }
 0x1c3   :  { %v496_v46 = vmul.f32 %v495_v41, %v490_v43 }
 0x1c4   :  { %v4781_v47 = vpop.eup %4780 }
 0x1c5   :  { %v502_v48 = vadd.f32 %v501_v44, %v496_v46  ;;  %v491_v50 = vmul.f32 %v4781_v47, %v485_v45 }
 0x1c7   :  { %3706 = vmatmul.mubr.msk.f32.vlgmr.msra.gmra.mrb[4].mxu1 %vm460_vm0, %v502_v48  ;;  %v497_v51 = vmul.f32 %v495_v41, %v491_v50 }
 0x1c8   :  { %588 = vmatprep.mubr.f32.mxu1 %v4878_v20 }
 0x1c9   :  { %v503_v52 = vadd.f32 %v501_v44, %v497_v51 }
 0x1cb   :  { %3707 = vmatmul.mubr.msk.f32.gmra.mrb[6].mxu1 %vm460_vm0, %v503_v52 }
 0x29a   :  { %v584_v57 = vpop.f32.mrb[4].mxu1 }
 0x29b   :  { %v5362_v58 = vadd.f32 %v584_v57, %v507_v54  ;;  %v586_v59 = vpop.f32.mrb[5].mxu1 }
 0x29c   :  { %v587_v0 = vadd.f32 %v586_v59, %v511_v60 }
 0x29d   :  { %4152 = vmatprep.mubr.msk.f32.mxu0 %vm601_vm1, %v5362_v58 }
 0x29e   :  { %v590_v61 = vpop.f32.mrb[6].mxu1 }
 0x29f   :  { %v5368_v62 = vadd.f32 %v590_v61, %v507_v54  ;;  %v592_v63 = vpop.f32.mrb[7].mxu1 }
 0x2a0   :  { %v593_v1 = vadd.f32 %v592_v63, %v511_v60 }
 0x2a1   :  { %v5372_v2 = vpack.i.bf16 %v5368_v62, %v5362_v58 }
 0x2a2   :  { %v4453_v3 = vpack.c.bf16 %v593_v1, %v587_v0  ;;  %v5376_v4 = vpack.i.bf16 %v593_v1, %v587_v0 }
 0x2a3   :  { %4709 = vrot.lane.b32.xlu0 %v5372_v2, %s4879_s28 }
 0x2a4   :  { %4454 = vmatprep.subr.bf16.mxu1 %v4453_v3 }
 0x2a5   :  { %4456 = vmatpush3.bf16.msra.mxu1 %v4453_v3 }
 0x2a7   :  { %788 = vrot.lane.b32.xlu0 %v5362_v58, %s4880_s29 }
 0x2ab   :  { %790 = vrot.lane.b32.xlu0 %v5368_v62, %s4880_s29 }
 0x315   :  { %v4710_v5 = vpop.permute.xlu0 %4709 }
 0x316   :  { %v4712_v6 = vunpack.i.h.bf16 %v4710_v5  ;;  %v4711_v7 = vunpack.i.l.bf16 %v4710_v5 }
 0x318   :  { %v4447_v9 = vpack.c.bf16 %v4712_v6, %v4711_v7 }
 0x319   :  { %v789_v51 = vpop.permute.xlu0 %788 }
 0x31a   :  { %4449 = vmatprep.subr.msk.bf16.mxu0 %vm5384_vm2, %v4447_v9 }
 0x31b   :  { %4452 = vmatpush3.bf16.xpose.msk.msra.mxu0 %vm5384_vm2, %v4447_v9 }
 0x31d   :  { %v791_v52 = vpop.permute.xlu0 %790 }
 0x322   :  { %4153 = vmatmul.mubr.msk.f32.vlgmr.msra.gmra.mrb[8].mxu0 %vm601_vm1, %v5368_v62 }
 0x3f5   :  { %v4154_v18 = vpop.f32.mrb[8].mxu0 }
 0x3f6   :  { %v676_v21 = vpop.f32.mrb[9].mxu0  ;;  %v682_v23 = vadd.f32 %v4154_v18, %v5398_v19 }
 0x3f7   :  { %v677_v22 = vadd.f32 %v676_v21, %v5396_v17 }
 0x3f8   :  { %v688_v25 = vsel %vm601_vm1, %v682_v23, -inf }
 0x3f9   :  { %v685_v24 = vsel %vm601_vm1, %v677_v22, -inf }
 0x3fa   :  { %686 = vmax.xlane.f32.xlu1 %v685_v24 }
 0x3fe   :  { %689 = vmax.xlane.f32.xlu1 %v688_v25 }
 0x487   :  { %v687_v26 = vpop.xlane.xlu1 %686 }
 0x488   :  { %v691_v27 = vsub.f32 %v677_v22, %v687_v26 }
 0x48a   :  { %v693_v30 = vmul.f32 1.442695, %v691_v27 }
 0x48b   :  { %v690_v28 = vpop.xlane.xlu1 %689 }
 0x48c   :  { %v692_v29 = vsub.f32 %v682_v23, %v690_v28 }
 0x48e   :  { %v695_v31 = vmul.f32 1.442695, %v692_v29 }
 0x490   :  { %4782 = vpow2.f32 %v695_v31 }
 0x491   :  { %4784 = vpow2.f32 %v693_v30 }
 0x49a   :  { %v4783_v32 = vpop.eup %4782 }
 0x49b   :  { %v700_v33 = vsel %vm601_vm1, %v4783_v32, 0.0  ;;  %v4785_v34 = vpop.eup %4784 }
 0x49c   :  { %701 = vadd.xlane.f32.xlu1 %v700_v33  ;;  %v697_v36 = vsel %vm601_vm1, %v4785_v34, 0.0 }
 0x4a0   :  { %698 = vadd.xlane.f32.xlu1 %v697_v36 }
 0x4b1   :  { %4714 = vrot.lane.b32.xlu1 %v5372_v2, %s4882_s30 }
 0x529   :  { %v702_v40 = vpop.xlane.xlu1 %701 }
 0x52a   :  { %4786 = vrcp.f32 %v702_v40 }
 0x52d   :  { %v699_v41 = vpop.xlane.xlu1 %698 }
 0x52e   :  { %4788 = vrcp.f32 %v699_v41 }
 0x531   :  { %v4715_v42 = vpop.permute.xlu1 %4714 }
 0x532   :  { %v4717_v43 = vunpack.i.h.bf16 %v4715_v42  ;;  %v4716_v44 = vunpack.i.l.bf16 %v4715_v42 }
 0x534   :  { %v4457_v45 = vpack.c.bf16 %v4717_v43, %v4716_v44  ;;  %v4787_v46 = vpop.eup %4786  ;;  %v404_v44 = vld [vmem:[%s6142_s5] sm:$0xff] }
 0x535   :  { %v706_v50 = vmul.f32 %v4787_v46, %v4783_v32 }
 0x536   :  { %4459 = vmatprep.subr.msk.bf16.mxu1 %vm5384_vm2, %v4457_v45 }
 0x538   :  { %v4789_v47 = vpop.eup %4788 }
 0x539   :  { %v705_v48 = vmul.f32 %v4789_v47, %v4785_v34 }
 0x53b   :  { %4159 = vmatprep.mubr.msk.f32.mxu1 %vm601_vm1, %v705_v48 }
 0x53c   :  { %4160 = vmatmul.mubr.msk.f32.vlgmr.msra.gmra.mrb[8].mxu1 %vm601_vm1, %v706_v50 }
 0x53d   :  { %4462 = vmatpush3.bf16.xpose.msk.msra.mxu1 %vm5384_vm2, %v4457_v45  ;;  %4166 = vmatprep.mubr.msk.f32.mxu1 %vm601_vm1, %v789_v51  ;;  %v405_v45 = vld [vmem:[%s6142_s5 + $0x8] sm:$0xff] }
 0x53e   :  { %v4471_v46 = vpack.c.bf16 %v405_v45, %v404_v44 }
 0x544   :  { %4167 = vmatmul.mubr.msk.f32.vlgmr.msra.gmra.mrb[10].mxu1 %vm601_vm1, %v791_v52 }
 0x60f   :  { %v5416_v54 = vpop.f32.mrb[8].mxu1 }
 0x610   :  { %v5418_v57 = vpop.f32.mrb[9].mxu1 }
 0x617   :  { %v4168_v59 = vpop.f32.mrb[10].mxu1 }
 0x618   :  { %v876_v60 = vadd.f32 %v4168_v59, %v5398_v19  ;;  %v870_v61 = vpop.f32.mrb[11].mxu1 }
 0x619   :  { %v871_v63 = vadd.f32 %v870_v61, %v5396_v17 }
 0x61a   :  { %v882_v0 = vsel %vm601_vm1, %v876_v60, -inf }
 0x61b   :  { %883 = vmax.xlane.f32.xlu1 %v882_v0  ;;  %v879_v1 = vsel %vm601_vm1, %v871_v63, -inf }
 0x61c   :  { %880 = vmax.xlane.f32.xlu0 %v879_v1 }
 0x62c   :  { %4724 = vrot.lane.b32.xlu1 %v5372_v2, %s4883_s10 }
 0x630   :  { %1152 = vrot.lane.b32.xlu1 %v5362_v58, %s4884_s11 }
 0x634   :  { %1154 = vrot.lane.b32.xlu1 %v5368_v62, %s4884_s11 }
 0x638   :  { %1435 = vrot.lane.b32.xlu1 %v5362_v58, %s4885_s12  ;;  %v406_v58 = vld [vmem:[%s6142_s5 + $0x10] sm:$0xff] }
 0x639   :  { %v4467_v16 = vpack.c.bf16 %v407_v15, %v406_v58 }
 0x63b   :  { %4468 = vmatprep.subr.bf16.mxu1 %v4467_v16 }
 0x63c   :  { %4470 = vmatpush3.bf16.msra.mxu1 %v4467_v16 }
 0x63d   :  { %4472 = vmatprep.subr.bf16.mxu1 %v4471_v46 }
 0x6a8   :  { %v884_v3 = vpop.xlane.xlu1 %883 }
 0x6a9   :  { %v886_v5 = vsub.f32 %v876_v60, %v884_v3  ;;  %v881_v6 = vpop.xlane.xlu0 %880 }
 0x6aa   :  { %v885_v7 = vsub.f32 %v871_v63, %v881_v6 }
 0x6ab   :  { %v889_v9 = vmul.f32 1.442695, %v886_v5 }
 0x6ac   :  { %v887_v10 = vmul.f32 1.442695, %v885_v7  ;;  %v4725_v22 = vpop.permute.xlu1 %4724 }
 0x6ad   :  { %4790 = vpow2.f32 %v889_v9  ;;  %v4727_v23 = vunpack.i.h.bf16 %v4725_v22  ;;  %v4726_v24 = vunpack.i.l.bf16 %v4725_v22  ;;  %v409_v22 = vld [vmem:[%s6142_s5 + $0x28] sm:$0xff] }
 0x6ae   :  { %4792 = vpow2.f32 %v887_v10 }
 0x6af   :  { %v4475_v27 = vpack.c.bf16 %v4727_v23, %v4726_v24 }
 0x6b0   :  { %v1153_v33 = vpop.permute.xlu1 %1152 }
 0x6b4   :  { %v1155_v41 = vpop.permute.xlu1 %1154 }
 0x6b7   :  { %v4791_v11 = vpop.eup %4790 }
 0x6b8   :  { %v894_v12 = vsel %vm601_vm1, %v4791_v11, 0.0  ;;  %v4793_v13 = vpop.eup %4792  ;;  %v1436_v42 = vpop.permute.xlu1 %1435 }
 0x6b9   :  { %895 = vadd.xlane.f32.xlu0 %v894_v12  ;;  %v891_v14 = vsel %vm601_vm1, %v4793_v13, 0.0 }
 0x6bd   :  { %892 = vadd.xlane.f32.xlu0 %v891_v14 }
 0x6d3   :  { %4719 = vrot.lane.b32.xlu0 %v5376_v4, %s4880_s29 }
 0x6d7   :  { %4729 = vrot.lane.b32.xlu0 %v5372_v2, %s4886_s13 }
 0x6db   :  { %1437 = vrot.lane.b32.xlu0 %v5368_v62, %s4885_s12 }
 0x746   :  { %v896_v18 = vpop.xlane.xlu0 %895 }
 0x747   :  { %4794 = vrcp.f32 %v896_v18 }
 0x74a   :  { %v893_v21 = vpop.xlane.xlu0 %892 }
 0x74b   :  { %4796 = vrcp.f32 %v893_v21  ;;  %v408_v21 = vld [vmem:[%s6142_s5 + $0x20] sm:$0xff] }
 0x74e   :  { %v4720_v2 = vpop.permute.xlu0 %4719 }
 0x74f   :  { %v4722_v62 = vunpack.i.h.bf16 %v4720_v2  ;;  %v4721_v25 = vunpack.i.l.bf16 %v4720_v2  ;;  %v4485_v2 = vpack.c.bf16 %v409_v22, %v408_v21  ;;  %v414_v21 = vld [vmem:[%s6143_s6 + $0x10] sm:$0xff] }
 0x751   :  { %v4463_v26 = vpack.c.bf16 %v4722_v62, %v4721_v25  ;;  %v4795_v28 = vpop.eup %4794 }
 0x752   :  { %v4730_v30 = vpop.permute.xlu0 %4729  ;;  %v900_v32 = vmul.f32 %v4795_v28, %v4791_v11 }
 0x753   :  { %4464 = vmatprep.subr.bf16.mxu0 %v4463_v26  ;;  %v4732_v34 = vunpack.i.h.bf16 %v4730_v30  ;;  %v4731_v36 = vunpack.i.l.bf16 %v4730_v30 }
 0x754   :  { %4466 = vmatpush3.bf16.msra.mxu0 %v4463_v26 }
 0x755   :  { %v4797_v29 = vpop.eup %4796  ;;  %4477 = vmatprep.subr.msk.bf16.mxu0 %vm5384_vm2, %v4475_v27  ;;  %v4489_v40 = vpack.c.bf16 %v4732_v34, %v4731_v36 }
 0x756   :  { %v899_v31 = vmul.f32 %v4797_v29, %v4793_v13  ;;  %v1438_v43 = vpop.permute.xlu0 %1437 }
 0x758   :  { %4173 = vmatprep.mubr.msk.f32.mxu0 %vm601_vm1, %v899_v31 }
 0x759   :  { %4174 = vmatmul.mubr.msk.f32.vlgmr.msra.gmra.mrb[10].mxu0 %vm601_vm1, %v900_v32 }
 0x75a   :  { %4194 = vmatprep.mubr.msk.f32.mxu0 %vm601_vm1, %v1153_v33 }
 0x75d   :  { %4480 = vmatpush3.bf16.xpose.msk.msra.mxu0 %vm5384_vm2, %v4475_v27 }
 0x75e   :  { %4491 = vmatprep.subr.msk.bf16.mxu0 %vm5384_vm2, %v4489_v40 }
 0x764   :  { %4195 = vmatmul.mubr.msk.f32.vlgmr.msra.gmra.mrb[12].mxu0 %vm601_vm1, %v1155_v41 }
 0x765   :  { %4494 = vmatpush3.bf16.xpose.msk.msra.mxu0 %vm5384_vm2, %v4489_v40  ;;  %4215 = vmatprep.mubr.msk.f32.mxu0 %vm601_vm1, %v1436_v42 }
 0x76c   :  { %4216 = vmatmul.mubr.msk.f32.vlgmr.msra.gmra.mrb[14].mxu0 %vm601_vm1, %v1438_v43 }
 0x76d   :  { %1846 = vmatprep.mubr.f32.mxu0 %v4878_v20 }
 0x82c   :  { %v4175_v47 = vpop.f32.mrb[10].mxu0 }
 0x82d   :  { %v981_v48 = vpop.f32.mrb[11].mxu0 }
 0x82e   :  { %4180 = vmatprep.mubr.msk.f32.mxu1 %vm601_vm1, %v981_v48  ;;  %v410_v48 = vld [vmem:[%s6142_s5 + $0x30] sm:$0xff] }
 0x82f   :  { %4181 = vmatmul.mubr.msk.f32.vlgmr.msra.gmra.mrb[12].mxu1 %vm601_vm1, %v4175_v47 }
 0x830   :  { %4187 = vmatprep.mubr.msk.f32.mxu1 %vm601_vm1, %v5418_v57  ;;  %4474 = vmatpush3.bf16.msra.mxu1 %v4471_v46 }
 0x837   :  { %4188 = vmatmul.mubr.msk.f32.vlgmr.msra.gmra.mrb[12].mxu1 %vm601_vm1, %v5416_v54  ;;  %v4196_v50 = vpop.f32.mrb[12].mxu0 }
 0x838   :  { %v1240_v51 = vadd.f32 %v4196_v50, %v5398_v19  ;;  %v1234_v52 = vpop.f32.mrb[13].mxu0  ;;  %v411_v50 = vld [vmem:[%s6142_s5 + $0x38] sm:$0xff] }
 0x839   :  { %v1235_v59 = vadd.f32 %v1234_v52, %v5396_v17 }
 0x83a   :  { %v1246_v60 = vsel %vm601_vm1, %v1240_v51, -inf }
 0x83b   :  { %1247 = vmax.xlane.f32.xlu0 %v1246_v60  ;;  %v1243_v61 = vsel %vm601_vm1, %v1235_v59, -inf  ;;  %v4499_v60 = vpack.c.bf16 %v411_v50, %v410_v48 }
 0x83c   :  { %1244 = vmax.xlane.f32.xlu1 %v1243_v61 }
 0x83f   :  { %v4217_v63 = vpop.f32.mrb[14].mxu0 }
 0x840   :  { %v1517_v0 = vpop.f32.mrb[15].mxu0  ;;  %v1523_v15 = vadd.f32 %v4217_v63, %v5398_v19 }
 0x842   :  { %v1529_v18 = vsel %vm601_vm1, %v1523_v15, -inf }
 0x84d   :  { %4734 = vrot.lane.b32.xlu1 %v5376_v4, %s4884_s11 }
 0x851   :  { %4739 = vrot.lane.b32.xlu1 %v5376_v4, %s4885_s12  ;;  %v1518_v4 = vadd.f32 %v1517_v0, %v5396_v17 }
 0x853   :  { %v1526_v16 = vsel %vm601_vm1, %v1518_v4, -inf }
 0x8c8   :  { %v1248_v54 = vpop.xlane.xlu0 %1247 }
 0x8c9   :  { %v1250_v57 = vsub.f32 %v1240_v51, %v1248_v54  ;;  %v1245_v1 = vpop.xlane.xlu1 %1244 }
 0x8ca   :  { %v1249_v3 = vsub.f32 %v1235_v59, %v1245_v1  ;;  %v1722_v1 = vsub.s32 3, %v5330_v35 }
 0x8cb   :  { %v1253_v5 = vmul.f32 1.442695, %v1250_v57 }
 0x8cc   :  { %v1251_v6 = vmul.f32 1.442695, %v1249_v3 }
 0x8cd   :  { %v4735_v7 = vpop.permute.xlu1 %4734 }
 0x8ce   :  { %4798 = vpow2.f32 %v1251_v6  ;;  %v4737_v9 = vunpack.i.h.bf16 %v4735_v7  ;;  %v4736_v10 = vunpack.i.l.bf16 %v4735_v7 }
 0x8cf   :  { %4800 = vpow2.f32 %v1253_v5  ;;  %v1723_v5 = vrot.slane %v5338_v38, %v1722_v1 }
 0x8d0   :  { %v4481_v11 = vpack.c.bf16 %v4737_v9, %v4736_v10 }
 0x8d1   :  { %v4740_v27 = vpop.permute.xlu1 %4739 }
 0x8d2   :  { %4482 = vmatprep.subr.bf16.mxu1 %v4481_v11  ;;  %v4742_v32 = vunpack.i.h.bf16 %v4740_v27  ;;  %v4741_v33 = vunpack.i.l.bf16 %v4740_v27  ;;  %v421_v27 = vld [vmem:[%s6143_s6 + $0x48] sm:$0xff] }
 0x8d3   :  { %4484 = vmatpush3.bf16.msra.mxu1 %v4481_v11 }
 0x8d4   :  { %4486 = vmatprep.subr.bf16.mxu1 %v4485_v2  ;;  %v4495_v41 = vpack.c.bf16 %v4742_v32, %v4741_v33  ;;  %v425_v33 = vld [vmem:[%s6143_s6 + $0x68] sm:$0xff] }
 0x8d8   :  { %v4799_v12 = vpop.eup %4798 }
 0x8d9   :  { %v1255_v13 = vsel %vm601_vm1, %v4799_v12, 0.0  ;;  %v4801_v14 = vpop.eup %4800 }
 0x8da   :  { %1256 = vadd.xlane.f32.xlu0 %v1255_v13  ;;  %v1258_v58 = vsel %vm601_vm1, %v4801_v14, 0.0 }
 0x8de   :  { %1259 = vadd.xlane.f32.xlu0 %v1258_v58  ;;  %v413_v58 = vld [vmem:[%s6143_s6 + $0x8] sm:$0xff] }
 0x8e2   :  { %1527 = vmax.xlane.f32.xlu0 %v1526_v16 }
 0x8e6   :  { %1530 = vmax.xlane.f32.xlu0 %v1529_v18  ;;  %v412_v18 = vld [vmem:[%s6143_s6] sm:$0xff] }
 0x8e7   :  { %v4505_v22 = vpack.c.bf16 %v414_v21, %v412_v18  ;;  %v428_v21 = vld [vmem:[%s6144_s7] sm:$0xff] }
 0x967   :  { %v1257_v23 = vpop.xlane.xlu0 %1256 }
 0x968   :  { %4802 = vrcp.f32 %v1257_v23  ;;  %v419_v23 = vld [vmem:[%s6143_s6 + $0x38] sm:$0xff] }
 0x96b   :  { %v1260_v24 = vpop.xlane.xlu0 %1259 }
 0x96c   :  { %4804 = vrcp.f32 %v1260_v24 }
 0x96f   :  { %v1528_v62 = vpop.xlane.xlu0 %1527 }
 0x970   :  { %v1532_v25 = vsub.f32 %v1518_v4, %v1528_v62  ;;  %v416_v62 = vld [vmem:[%s6143_s6 + $0x20] sm:$0xff] }
 0x972   :  { %v4803_v26 = vpop.eup %4802  ;;  %v1534_v28 = vmul.f32 1.442695, %v1532_v25  ;;  %v418_v25 = vld [vmem:[%s6143_s6 + $0x30] sm:$0xff] }
 0x973   :  { %v1531_v29 = vpop.xlane.xlu0 %1530  ;;  %v1263_v30 = vmul.f32 %v4803_v26, %v4799_v12  ;;  %v4509_v26 = vpack.c.bf16 %v418_v25, %v416_v62  ;;  %v430_v25 = vld [vmem:[%s6144_s7 + $0x10] sm:$0xff] }
 0x974   :  { %4806 = vpow2.f32 %v1534_v28  ;;  %v1533_v31 = vsub.f32 %v1523_v15, %v1531_v29  ;;  %v415_v15 = vld [vmem:[%s6143_s6 + $0x18] sm:$0xff] }
 0x975   :  { %4201 = vmatprep.mubr.msk.f32.mxu1 %vm601_vm1, %v1263_v30  ;;  %v4503_v16 = vpack.c.bf16 %v415_v15, %v413_v58  ;;  %v423_v28 = vld [vmem:[%s6143_s6 + $0x58] sm:$0xff]  ;;  %v420_v30 = vld [vmem:[%s6143_s6 + $0x40] sm:$0xff] }
 0x976   :  { %v4805_v34 = vpop.eup %4804  ;;  %v1536_v36 = vmul.f32 1.442695, %v1533_v31  ;;  %v4511_v29 = vpack.c.bf16 %v423_v28, %v421_v27  ;;  %v422_v31 = vld [vmem:[%s6143_s6 + $0x50] sm:$0xff]  ;;  %v444_v15 = vld [vmem:[%s6144_s7 + $0x80] sm:$0xff] }
 0x977   :  { %v1264_v40 = vmul.f32 %v4805_v34, %v4801_v14  ;;  %4504 = vmatprep.subr.bf16.mxu0 %v4503_v16  ;;  %v4513_v32 = vpack.c.bf16 %v422_v31, %v420_v30  ;;  %v427_v34 = vld [vmem:[%s6143_s6 + $0x78] sm:$0xff]  ;;  %v445_v16 = vld [vmem:[%s6144_s7 + $0x88] sm:$0xff]  ;;  %v448_v28 = vld [vmem:[%s6144_s7 + $0xa0] sm:$0xff] }
 0x978   :  { %4808 = vpow2.f32 %v1536_v36  ;;  %4506 = vmatpush1.bf16.msra.mxu0 %v4505_v22  ;;  %v424_v36 = vld [vmem:[%s6143_s6 + $0x60] sm:$0xff]  ;;  %v4519_v18 = vpack.c.bf16 %v445_v16, %v444_v15  ;;  %v429_v22 = vld [vmem:[%s6144_s7 + $0x8] sm:$0xff] }
 0x979   :  { %4202 = vmatmul.mubr.msk.f32.vlgmr.msra.gmra.mrb[14].mxu1 %vm601_vm1, %v1264_v40  ;;  %v4515_v40 = vpack.c.bf16 %v427_v34, %v425_v33  ;;  %v432_v31 = vld [vmem:[%s6144_s7 + $0x20] sm:$0xff]  ;;  %v450_v34 = vld [vmem:[%s6144_s7 + $0xb0] sm:$0xff] }
 0x97a   :  { %4488 = vmatpush3.bf16.msra.mxu1 %v4485_v2  ;;  %v417_v2 = vld [vmem:[%s6143_s6 + $0x28] sm:$0xff] }
 0x97b   :  { %4496 = vmatprep.subr.bf16.mxu1 %v4495_v41  ;;  %v4507_v24 = vpack.c.bf16 %v419_v23, %v417_v2  ;;  %v4521_v2 = vpack.c.bf16 %v429_v22, %v428_v21  ;;  %v446_v23 = vld [vmem:[%s6144_s7 + $0x90] sm:$0xff] }
 0x97d   :  { %4508 = vmatprep.subr.bf16.mxu0 %v4507_v24  ;;  %v447_v24 = vld [vmem:[%s6144_s7 + $0x98] sm:$0xff] }
 0x97e   :  { %v4807_v42 = vpop.eup %4806  ;;  %4510 = vmatpush1.bf16.msra.mxu0 %v4509_v26  ;;  %v4523_v62 = vpack.c.bf16 %v447_v24, %v446_v23  ;;  %v431_v26 = vld [vmem:[%s6144_s7 + $0x18] sm:$0xff] }
 0x97f   :  { %v1538_v43 = vsel %vm601_vm1, %v4807_v42, 0.0  ;;  %4512 = vmatprep.subr.bf16.mxu0 %v4511_v29  ;;  %v4525_v27 = vpack.c.bf16 %v431_v26, %v430_v25  ;;  %v449_v29 = vld [vmem:[%s6144_s7 + $0xa8] sm:$0xff] }
 0x980   :  { %1539 = vadd.xlane.f32.xlu0 %v1538_v43  ;;  %v4527_v30 = vpack.c.bf16 %v449_v29, %v448_v28 }
 0x982   :  { %v4809_v44 = vpop.eup %4808  ;;  %4514 = vmatpush1.bf16.msra.mxu0 %v4513_v32  ;;  %v433_v32 = vld [vmem:[%s6144_s7 + $0x28] sm:$0xff] }
 0x983   :  { %v1541_v45 = vsel %vm601_vm1, %v4809_v44, 0.0  ;;  %4516 = vmatprep.subr.bf16.mxu0 %v4515_v40  ;;  %v4529_v33 = vpack.c.bf16 %v433_v32, %v432_v31 }
 0x984   :  { %1542 = vadd.xlane.f32.xlu0 %v1541_v45 }
 0xa0d   :  { %v1540_v46 = vpop.xlane.xlu0 %1539 }
 0xa0e   :  { %4810 = vrcp.f32 %v1540_v46 }
 0xa11   :  { %v1543_v47 = vpop.xlane.xlu0 %1542 }
 0xa12   :  { %4812 = vrcp.f32 %v1543_v47 }
 0xa18   :  { %v4811_v51 = vpop.eup %4810 }
 0xa19   :  { %v1546_v63 = vmul.f32 %v4811_v51, %v4807_v42 }
 0xa1c   :  { %v4813_v61 = vpop.eup %4812 }
 0xa1d   :  { %v1547_v0 = vmul.f32 %v4813_v61, %v4809_v44 }
 0xa4c   :  { %v4203_v52 = vpop.f32.mrb[14].mxu1 }
 0xa4d   :  { %v1343_v59 = vpop.f32.mrb[15].mxu1 }
 0xa4e   :  { %4208 = vmatprep.mubr.msk.f32.mxu1 %vm601_vm1, %v1343_v59 }
 0xa4f   :  { %4209 = vmatmul.mubr.msk.f32.vlgmr.msra.gmra.mrb[12].mxu1 %vm601_vm1, %v4203_v52 }
 0xa50   :  { %4498 = vmatpush3.bf16.msra.mxu1 %v4495_v41  ;;  %4222 = vmatprep.mubr.msk.f32.mxu1 %vm601_vm1, %v1546_v63  ;;  %v426_v41 = vld [vmem:[%s6143_s6 + $0x70] sm:$0xff] }
 0xa51   :  { %4500 = vmatprep.subr.bf16.mxu1 %v4499_v60  ;;  %v4517_v42 = vpack.c.bf16 %v426_v41, %v424_v36  ;;  %v451_v36 = vld [vmem:[%s6144_s7 + $0xb8] sm:$0xff]  ;;  %v434_v41 = vld [vmem:[%s6144_s7 + $0x30] sm:$0xff] }
 0xa52   :  { %v4531_v40 = vpack.c.bf16 %v451_v36, %v450_v34 }
 0xa53   :  { %4223 = vmatmul.mubr.msk.f32.vlgmr.msra.gmra.mrb[16].mxu1 %vm601_vm1, %v1547_v0  ;;  %4518 = vmatpush1.bf16.msra.mxu0 %v4517_v42  ;;  %v435_v42 = vld [vmem:[%s6144_s7 + $0x38] sm:$0xff] }
 0xa54   :  { %4502 = vmatpush3.bf16.msra.mxu1 %v4499_v60 }
 0xa55   :  { %4520 = vmatprep.subr.bf16.mxu1 %v4519_v18 }
 0xb26   :  { %v4224_v54 = vpop.f32.mrb[16].mxu1 }
 0xb27   :  { %v1626_v57 = vpop.f32.mrb[17].mxu1 }
 0xb28   :  { %4229 = vmatprep.mubr.msk.f32.mxu1 %vm601_vm1, %v1626_v57  ;;  %v1764_v57 = vsub.s32 5, %v5330_v35 }
 0xb29   :  { %4230 = vmatmul.mubr.msk.f32.vlgmr.msra.gmra.mrb[12].mxu1 %vm601_vm1, %v4224_v54  ;;  %v1758_v54 = vsub.s32 4, %v5330_v35 }
 0xb2a   :  { %4522 = vmatpush3.bf16.msra.mxu1 %v4521_v2 }
 0xb2b   :  { %4524 = vmatprep.subr.bf16.mxu1 %v4523_v62 }
 0xb2e   :  { %4526 = vmatpush3.bf16.msra.mxu1 %v4525_v27 }
 0xb2f   :  { %4528 = vmatprep.subr.bf16.mxu1 %v4527_v30 }
 0xb32   :  { %4530 = vmatpush3.bf16.msra.mxu1 %v4529_v33 }
 0xb33   :  { %4532 = vmatprep.subr.bf16.mxu1 %v4531_v40 }
 0xbfc   :  { %v4231_v3 = vpop.f32.mrb[12].mxu1 }
 0xbfd   :  { %v1707_v6 = vpop.f32.mrb[13].mxu1  ;;  %v1719_v7 = vadd.f32 %v4231_v3, %v5273_v55 }
 0xbfe   :  { %v1718_v9 = vadd.f32 %v1707_v6, %v5267_v49 }
 0xbff   :  { %v5517_v11 = vadd.f32 %v1723_v5, %v1719_v7 }
 0xc00   :  { %v5515_v10 = vadd.f32 %v1723_v5, %v1718_v9  ;;  %v1759_v5 = vrot.slane %v5338_v38, %v1758_v54  ;;  %v1765_v9 = vrot.slane %v5338_v38, %v1764_v57 }
 0xc01   :  { %v1729_v4 = vsel %vm460_vm0, %v5517_v11, 0.0  ;;  %v1735_v49 = vmul.f32 %v5517_v11, %v5517_v11 }
 0xc02   :  { %v1726_v12 = vsel %vm460_vm0, %v5515_v10, 0.0  ;;  %v1734_v13 = vmul.f32 %v5515_v10, %v5515_v10 }
 0xc03   :  { %1727 = vadd.xlane.f32.xlu0 %v1726_v12  ;;  %v1739_v55 = vsel %vm460_vm0, %v1735_v49, 0.0 }
 0xc04   :  { %v1736_v14 = vsel %vm460_vm0, %v1734_v13, 0.0 }
 0xc05   :  { %1737 = vadd.xlane.f32.xlu1 %v1736_v14 }
 0xc07   :  { %1730 = vadd.xlane.f32.xlu0 %v1729_v4 }
 0xc0b   :  { %1740 = vadd.xlane.f32.xlu0 %v1739_v55 }
 0xc90   :  { %v1728_v43 = vpop.xlane.xlu0 %1727 }
 0xc91   :  { %v1732_v44 = vmul.f32 0.015625, %v1728_v43  ;;  %v4533_v43 = vpack.c.bf16 %v435_v42, %v434_v41 }
 0xc92   :  { %v1738_v45 = vpop.xlane.xlu1 %1737 }
 0xc93   :  { %v1744_v46 = vmul.f32 %v1732_v44, %v1732_v44  ;;  %v1742_v47 = vmul.f32 0.015625, %v1738_v45  ;;  %v1748_v3 = vsub.f32 %v5515_v10, %v1732_v44  ;;  %4534 = vmatpush3.bf16.msra.mxu1 %v4533_v43  ;;  %v452_v44 = vld [vmem:[%s6144_s7 + $0xc0] sm:$0xff]  ;;  %v453_v45 = vld [vmem:[%s6144_s7 + $0xc8] sm:$0xff] }
 0xc94   :  { %v1731_v48 = vpop.xlane.xlu0 %1730 }
 0xc95   :  { %v1746_v50 = vsub.f32 %v1742_v47, %v1744_v46  ;;  %v1733_v51 = vmul.f32 0.015625, %v1731_v48  ;;  %v4535_v46 = vpack.c.bf16 %v453_v45, %v452_v44  ;;  %v436_v47 = vld [vmem:[%s6144_s7 + $0x40] sm:$0xff]  ;;  %v437_v48 = vld [vmem:[%s6144_s7 + $0x48] sm:$0xff] }
 0xc97   :  { %v1750_v52 = vadd.f32 1e-06, %v1746_v50  ;;  %v1745_v60 = vmul.f32 %v1733_v51, %v1733_v51  ;;  %v1749_v13 = vsub.f32 %v5517_v11, %v1733_v51  ;;  %v4537_v50 = vpack.c.bf16 %v437_v48, %v436_v47  ;;  %4536 = vmatprep.subr.bf16.mxu1 %v4535_v46  ;;  %v454_v51 = vld [vmem:[%s6144_s7 + $0xd0] sm:$0xff] }
 0xc98   :  { %v1741_v59 = vpop.xlane.xlu0 %1740 }
 0xc99   :  { %4814 = vrsqrt.f32 %v1750_v52  ;;  %v1743_v61 = vmul.f32 0.015625, %v1741_v59  ;;  %4538 = vmatpush3.bf16.msra.mxu1 %v4537_v50  ;;  %v455_v52 = vld [vmem:[%s6144_s7 + $0xd8] sm:$0xff]  ;;  %v438_v59 = vld [vmem:[%s6144_s7 + $0x50] sm:$0xff] }
 0xc9b   :  { %v1747_v63 = vsub.f32 %v1743_v61, %v1745_v60  ;;  %v4539_v60 = vpack.c.bf16 %v455_v52, %v454_v51  ;;  %v439_v61 = vld [vmem:[%s6144_s7 + $0x58] sm:$0xff] }
 0xc9d   :  { %v1751_v0 = vadd.f32 1e-06, %v1747_v63  ;;  %v456_v63 = vld [vmem:[%s6144_s7 + $0xe0] sm:$0xff]  ;;  %4540 = vmatprep.subr.bf16.mxu1 %v4539_v60 }
 0xc9f   :  { %4816 = vrsqrt.f32 %v1751_v0  ;;  %v457_v0 = vld [vmem:[%s6144_s7 + $0xe8] sm:$0xff] }
 0xca3   :  { %v4815_v6 = vpop.eup %4814 }
 0xca4   :  { %v1754_v7 = vmul.f32 %v4815_v6, %v1748_v3  ;;  %v4541_v3 = vpack.c.bf16 %v439_v61, %v438_v59  ;;  %v440_v6 = vld [vmem:[%s6144_s7 + $0x60] sm:$0xff] }
 0xca6   :  { %v1760_v12 = vmul.f32 %v1759_v5, %v1754_v7  ;;  %v441_v7 = vld [vmem:[%s6144_s7 + $0x68] sm:$0xff]  ;;  %4542 = vmatpush3.bf16.msra.mxu1 %v4541_v3 }
 0xca8   :  { %v1766_v14 = vadd.f32 %v1765_v9, %v1760_v12  ;;  %v459_v12 = vld [vmem:[%s6144_s7 + $0xf8] sm:$0xff] }
 0xca9   :  { %v4817_v4 = vpop.eup %4816 }
 0xcaa   :  { %3740 = vmatmul.mubr.msk.f32.vlgmr.msra.gmra.mrb[16].mxu0 %vm460_vm0, %v1766_v14  ;;  %v1755_v49 = vmul.f32 %v4817_v4, %v1749_v13  ;;  %v4545_v13 = vpack.c.bf16 %v441_v7, %v440_v6  ;;  %v442_v4 = vld [vmem:[%s6144_s7 + $0x70] sm:$0xff] }
 0xcab   :  { %1852 = vmatprep.mubr.f32.mxu0 %v4878_v20 }
 0xcac   :  { %v1761_v55 = vmul.f32 %v1759_v5, %v1755_v49  ;;  %v4543_v5 = vpack.c.bf16 %v457_v0, %v456_v63  ;;  %v443_v49 = vld [vmem:[%s6144_s7 + $0x78] sm:$0xff] }
 0xcae   :  { %v1767_v58 = vadd.f32 %v1765_v9, %v1761_v55  ;;  %v458_v9 = vld [vmem:[%s6144_s7 + $0xf0] sm:$0xff]  ;;  %4544 = vmatprep.subr.bf16.mxu1 %v4543_v5  ;;  %v4549_v55 = vpack.c.bf16 %v443_v49, %v442_v4  ;;  %v1897_v4 = vsub.s32 7, %v5330_v35 }
 0xcaf   :  { %v4547_v14 = vpack.c.bf16 %v459_v12, %v458_v9  ;;  %4546 = vmatpush3.bf16.msra.mxu1 %v4545_v13 }
 0xcb0   :  { %3741 = vmatmul.mubr.msk.f32.gmra.mrb[18].mxu0 %vm460_vm0, %v1767_v58  ;;  %v5688_v58 = vsub.s32 6, %v5330_v35 }
 0xcb1   :  { %2172 = vmatprep.mubr.f32.mxu0 %v4878_v20  ;;  %4548 = vmatprep.subr.bf16.mxu1 %v4547_v14 }
 0xcb2   :  { %v1771_v15 = vrot.slane %v5338_v38, %v5688_v58  ;;  %v1775_v16 = vrot.slane %v5360_v56, %v5688_v58 }
 0xcb3   :  { %4550 = vmatpush3.bf16.msra.mxu1 %v4549_v55  ;;  %v1898_v55 = vrot.slane %v5338_v38, %v1897_v4 }
 0xd7d   :  { %v1848_v18 = vpop.f32.mrb[16].mxu0 }
 0xd7e   :  { %v1849_v21 = vadd.f32 %v1848_v18, %v1771_v15  ;;  %v1850_v22 = vpop.f32.mrb[17].mxu0 }
 0xd7f   :  { %v1851_v2 = vadd.f32 %v1850_v22, %v1775_v16 }
 0xd80   :  { %v1859_v23 = vmul.f32 %v1849_v21, %v1849_v21 }
 0xd81   :  { %v1860_v24 = vmul.f32 %v1851_v2, %v1851_v2 }
 0xd82   :  { %v1863_v62 = vmul.f32 %v1859_v23, %v1849_v21 }
 0xd83   :  { %v1864_v25 = vmul.f32 %v1860_v24, %v1851_v2  ;;  %v1854_v26 = vpop.f32.mrb[18].mxu0 }
 0xd84   :  { %v1867_v27 = vmul.f32 0.044715, %v1863_v62  ;;  %v1855_v28 = vadd.f32 %v1854_v26, %v1771_v15  ;;  %v1856_v29 = vpop.f32.mrb[19].mxu0 }
 0xd85   :  { %v1868_v30 = vmul.f32 0.044715, %v1864_v25  ;;  %v1857_v31 = vadd.f32 %v1856_v29, %v1775_v16  ;;  %v3743_v29 = vld [vmem:[%s6140_s4 + $0x88] sm:$0xff] }
 0xd86   :  { %v1871_v32 = vadd.f32 %v1867_v27, %v1849_v21  ;;  %v1861_v33 = vmul.f32 %v1855_v28, %v1855_v28 }
 0xd87   :  { %v1872_v34 = vadd.f32 %v1868_v30, %v1851_v2  ;;  %v1862_v36 = vmul.f32 %v1857_v31, %v1857_v31 }
 0xd88   :  { %v1875_v40 = vmul.f32 0.7978846, %v1871_v32  ;;  %v1865_v56 = vmul.f32 %v1861_v33, %v1855_v28  ;;  %v3744_v32 = vld [vmem:[%s6140_s4 + $0x90] sm:$0xff] }
 0xd89   :  { %v1876_v41 = vmul.f32 0.7978846, %v1872_v34  ;;  %v1866_v42 = vmul.f32 %v1862_v36, %v1857_v31  ;;  %v3747_v34 = vld [vmem:[%s6140_s4 + $0xa8] sm:$0xff]  ;;  %v3749_v36 = vld [vmem:[%s6140_s4 + $0xb8] sm:$0xff] }
 0xd8a   :  { %4818 = vtanh.f32 %v1875_v40  ;;  %v1869_v43 = vmul.f32 0.044715, %v1865_v56  ;;  %v4555_v40 = vpack.c.bf16 %v3749_v36, %v3747_v34  ;;  %v3746_v56 = vld [vmem:[%s6140_s4 + $0xa0] sm:$0xff]  ;;  %v5783_v34 = vld [vmem:[%s6141_s3 + $0x18] sm:$0xff] }
 0xd8b   :  { %v1870_v44 = vmul.f32 0.044715, %v1866_v42  ;;  %4820 = vtanh.f32 %v1876_v41  ;;  %v3748_v41 = vld [vmem:[%s6140_s4 + $0xb0] sm:$0xff]  ;;  %v2101_v36 = vrot.slane %v5783_v34, %v5353_v53 }
 0xd8c   :  { %v1873_v45 = vadd.f32 %v1869_v43, %v1855_v28  ;;  %v4557_v42 = vpack.c.bf16 %v3748_v41, %v3746_v56  ;;  %v3751_v43 = vld [vmem:[%s6140_s4 + $0xc8] sm:$0xff] }
 0xd8d   :  { %v1874_v46 = vadd.f32 %v1870_v44, %v1857_v31  ;;  %v3753_v44 = vld [vmem:[%s6140_s4 + $0xd8] sm:$0xff] }
 0xd8e   :  { %v1877_v47 = vmul.f32 0.7978846, %v1873_v45  ;;  %v4559_v45 = vpack.c.bf16 %v3753_v44, %v3751_v43 }
 0xd8f   :  { %v1878_v48 = vmul.f32 0.7978846, %v1874_v46  ;;  %v3750_v46 = vld [vmem:[%s6140_s4 + $0xc0] sm:$0xff] }
 0xd90   :  { %4822 = vtanh.f32 %v1877_v47  ;;  %v3752_v47 = vld [vmem:[%s6140_s4 + $0xd0] sm:$0xff] }
 0xd91   :  { %4824 = vtanh.f32 %v1878_v48  ;;  %v4561_v48 = vpack.c.bf16 %v3752_v47, %v3750_v46 }
 0xd94   :  { %v4819_v50 = vpop.eup %4818 }
 0xd95   :  { %v4821_v51 = vpop.eup %4820  ;;  %v1883_v52 = vadd.f32 1.0, %v4819_v50  ;;  %v3755_v50 = vld [vmem:[%s6140_s4 + $0xe8] sm:$0xff] }
 0xd96   :  { %v1884_v59 = vadd.f32 1.0, %v4821_v51  ;;  %v3757_v51 = vld [vmem:[%s6140_s4 + $0xf8] sm:$0xff] }
 0xd97   :  { %v1887_v60 = vmul.f32 0.5, %v1883_v52  ;;  %v4563_v52 = vpack.c.bf16 %v3757_v51, %v3755_v50 }
 0xd98   :  { %v1888_v61 = vmul.f32 0.5, %v1884_v59  ;;  %v3754_v59 = vld [vmem:[%s6140_s4 + $0xe0] sm:$0xff] }
 0xd99   :  { %v1891_v5 = vmul.f32 %v1887_v60, %v1849_v21  ;;  %v3756_v60 = vld [vmem:[%s6140_s4 + $0xf0] sm:$0xff] }
 0xd9a   :  { %v4823_v63 = vpop.eup %4822  ;;  %v1892_v0 = vmul.f32 %v1888_v61, %v1851_v2  ;;  %v4565_v61 = vpack.c.bf16 %v3756_v60, %v3754_v59 }
 0xd9b   :  { %v4825_v3 = vpop.eup %4824  ;;  %v1885_v6 = vadd.f32 1.0, %v4823_v63 }
 0xd9c   :  { %1963 = vmatprep.mubr.f32.mxu1 %v1892_v0  ;;  %v1886_v7 = vadd.f32 1.0, %v4825_v3 }
 0xd9d   :  { %1964 = vmatmul.mubr.f32.vlgmr.msra.gmra.mrb[18].mxu1 %v1891_v5  ;;  %v1889_v9 = vmul.f32 0.5, %v1885_v6 }
 0xd9e   :  { %v1890_v12 = vmul.f32 0.5, %v1886_v7 }
 0xd9f   :  { %v1893_v14 = vmul.f32 %v1889_v9, %v1855_v28 }
 0xda0   :  { %v1894_v13 = vmul.f32 %v1890_v12, %v1857_v31  ;;  %v3742_v31 = vld [vmem:[%s6140_s4 + $0x80] sm:$0xff] }
 0xda1   :  { %v4553_v33 = vpack.c.bf16 %v3744_v32, %v3742_v31 }
 0xda2   :  { %1968 = vmatprep.mubr.f32.mxu1 %v1894_v13 }
 0xda3   :  { %1969 = vmatmul.mubr.f32.gmra.mrb[20].mxu1 %v1893_v14 }
 0xe70   :  { %v4046_v49 = vpop.f32.mrb[18].mxu1 }
 0xe71   :  { %v4047_v15 = vpop.f32.mrb[19].mxu1 }
 0xe72   :  { %v4048_v16 = vadd.f32 %v4047_v15, %v4046_v49 }
 0xe74   :  { %v1966_v18 = vadd.f32 %v4048_v16, %v1898_v55  ;;  %v5765_v16 = vld [vmem:[%s6141_s3 + $0x10] sm:$0xff] }
 0xe76   :  { %v5699_v21 = vadd.f32 %v1966_v18, %v5515_v10  ;;  %v4049_v22 = vpop.f32.mrb[20].mxu1 }
 0xe77   :  { %v4050_v2 = vpop.f32.mrb[21].mxu1 }
 0xe78   :  { %v4051_v23 = vadd.f32 %v4050_v2, %v4049_v22  ;;  %v2052_v24 = vsel %vm460_vm0, %v5699_v21, 0.0  ;;  %v2060_v62 = vmul.f32 %v5699_v21, %v5699_v21  ;;  %v2085_v2 = vrot.slane %v5765_v16, %v5333_v37 }
 0xe79   :  { %2053 = vadd.xlane.f32.xlu0 %v2052_v24 }
 0xe7a   :  { %v1971_v25 = vadd.f32 %v4051_v23, %v1898_v55  ;;  %v2062_v38 = vsel %vm460_vm0, %v2060_v62, 0.0  ;;  %v2091_v62 = vrot.slane %v5765_v16, %v5341_v39 }
 0xe7c   :  { %v5706_v26 = vadd.f32 %v1971_v25, %v5517_v11  ;;  %v3745_v11 = vld [vmem:[%s6140_s4 + $0x98] sm:$0xff] }
 0xe7d   :  { %2063 = vadd.xlane.f32.xlu0 %v2062_v38  ;;  %v4551_v30 = vpack.c.bf16 %v3745_v11, %v3743_v29 }
 0xe7e   :  { %v2055_v10 = vsel %vm460_vm0, %v5706_v26, 0.0  ;;  %v2061_v27 = vmul.f32 %v5706_v26, %v5706_v26 }
 0xe7f   :  { %4552 = vmatprep.subr.bf16.mxu0 %v4551_v30  ;;  %v2097_v30 = vrot.slane %v5765_v16, %v5353_v53 }
 0xe80   :  { %v2065_v28 = vsel %vm460_vm0, %v2061_v27, 0.0  ;;  %4554 = vmatpush1.bf16.msra.mxu0 %v4553_v33 }
 0xe81   :  { %2056 = vadd.xlane.f32.xlu0 %v2055_v10  ;;  %4556 = vmatprep.subr.bf16.mxu0 %v4555_v40 }
 0xe84   :  { %4558 = vmatpush1.bf16.msra.mxu0 %v4557_v42 }
 0xe85   :  { %2066 = vadd.xlane.f32.xlu0 %v2065_v28  ;;  %4560 = vmatprep.subr.bf16.mxu0 %v4559_v45 }
 0xe88   :  { %4562 = vmatpush1.bf16.msra.mxu0 %v4561_v48 }
 0xe89   :  { %4564 = vmatprep.subr.bf16.mxu0 %v4563_v52 }
 0xe8c   :  { %4566 = vmatpush1.bf16.msra.mxu0 %v4565_v61 }
 0xf06   :  { %v2054_v63 = vpop.xlane.xlu0 %2053 }
 0xf07   :  { %v2058_v0 = vmul.f32 0.015625, %v2054_v63 }
 0xf09   :  { %v2070_v5 = vmul.f32 %v2058_v0, %v2058_v0  ;;  %v2074_v22 = vsub.f32 %v5699_v21, %v2058_v0 }
 0xf0a   :  { %v2064_v3 = vpop.xlane.xlu0 %2063 }
 0xf0b   :  { %v2068_v6 = vmul.f32 0.015625, %v2064_v3 }
 0xf0d   :  { %v2072_v7 = vsub.f32 %v2068_v6, %v2070_v5 }
 0xf0e   :  { %v2057_v9 = vpop.xlane.xlu0 %2056 }
 0xf0f   :  { %v2076_v12 = vadd.f32 1e-06, %v2072_v7  ;;  %v2059_v13 = vmul.f32 0.015625, %v2057_v9 }
 0xf11   :  { %4826 = vrsqrt.f32 %v2076_v12  ;;  %v2071_v49 = vmul.f32 %v2059_v13, %v2059_v13  ;;  %v2075_v10 = vsub.f32 %v5706_v26, %v2059_v13 }
 0xf12   :  { %v2067_v14 = vpop.xlane.xlu0 %2066 }
 0xf13   :  { %v2069_v55 = vmul.f32 0.015625, %v2067_v14 }
 0xf15   :  { %v2073_v15 = vsub.f32 %v2069_v55, %v2071_v49 }
 0xf17   :  { %v2077_v18 = vadd.f32 1e-06, %v2073_v15 }
 0xf19   :  { %4828 = vrsqrt.f32 %v2077_v18 }
 0xf1b   :  { %v4827_v23 = vpop.eup %4826 }
 0xf1c   :  { %v2080_v24 = vmul.f32 %v4827_v23, %v2074_v22 }
 0xf1e   :  { %v2086_v25 = vmul.f32 %v2085_v2, %v2080_v24 }
 0xf20   :  { %v2092_v38 = vadd.f32 %v2091_v62, %v2086_v25 }
 0xf22   :  { %3814 = vmatmul.mubr.msk.f32.vlgmr.msra.gmra.mrb[20].mxu0 %vm460_vm0, %v2092_v38 }
 0xf23   :  { %v4829_v27 = vpop.eup %4828  ;;  %2178 = vmatprep.mubr.f32.mxu0 %v4878_v20 }
 0xf24   :  { %v2081_v28 = vmul.f32 %v4829_v27, %v2075_v10 }
 0xf26   :  { %v2087_v29 = vmul.f32 %v2085_v2, %v2081_v28 }
 0xf28   :  { %v2093_v11 = vadd.f32 %v2091_v62, %v2087_v29 }
 0xf2a   :  { %3815 = vmatmul.mubr.msk.f32.gmra.mrb[22].mxu0 %vm460_vm0, %v2093_v11 }
 0xff5   :  { %v2174_v31 = vpop.f32.mrb[20].mxu0 }
 0xff6   :  { %v5778_v32 = vadd.f32 %v2174_v31, %v2097_v30  ;;  %v2176_v33 = vpop.f32.mrb[21].mxu0 }
 0xff7   :  { %v2177_v42 = vadd.f32 %v2176_v33, %v2101_v36 }
 0xff8   :  { %4236 = vmatprep.mubr.msk.f32.mxu0 %vm601_vm1, %v5778_v32 }
 0xffd   :  { %v2180_v40 = vpop.f32.mrb[22].mxu0 }
 0xffe   :  { %v5789_v56 = vadd.f32 %v2180_v40, %v2097_v30  ;;  %v2182_v41 = vpop.f32.mrb[23].mxu0 }
 0xfff   :  { %v2183_v43 = vadd.f32 %v2182_v41, %v2101_v36 }
0x1000   :  { %v5793_v44 = vpack.i.bf16 %v5789_v56, %v5778_v32 }
0x1001   :  { %v4573_v45 = vpack.c.bf16 %v2183_v43, %v2177_v42  ;;  %v5795_v46 = vpack.i.bf16 %v2183_v43, %v2177_v42 }
0x1002   :  { %4749 = vrot.lane.b32.xlu1 %v5793_v44, %s4882_s30  ;;  %4744 = vrot.lane.b32.xlu0 %v5793_v44, %s4879_s28 }
0x1006   :  { %2377 = vrot.lane.b32.xlu0 %v5778_v32, %s4880_s29 }
0x100a   :  { %2379 = vrot.lane.b32.xlu0 %v5789_v56, %s4880_s29 }
0x1074   :  { %v4750_v47 = vpop.permute.xlu1 %4749  ;;  %v4745_v48 = vpop.permute.xlu0 %4744 }
0x1075   :  { %v4752_v50 = vunpack.i.h.bf16 %v4750_v47  ;;  %v4751_v51 = vunpack.i.l.bf16 %v4750_v47  ;;  %v4747_v52 = vunpack.i.h.bf16 %v4745_v48  ;;  %v4746_v59 = vunpack.i.l.bf16 %v4745_v48 }
0x1077   :  { %v4577_v60 = vpack.c.bf16 %v4752_v50, %v4751_v51  ;;  %v4567_v61 = vpack.c.bf16 %v4747_v52, %v4746_v59 }
0x1078   :  { %v2378_v63 = vpop.permute.xlu0 %2377 }
0x1079   :  { %4569 = vmatprep.subr.msk.bf16.mxu0 %vm5384_vm2, %v4567_v61  ;;  %4579 = vmatprep.subr.msk.bf16.mxu1 %vm5384_vm2, %v4577_v60 }
0x107a   :  { %4250 = vmatprep.mubr.msk.f32.mxu1 %vm601_vm1, %v2378_v63  ;;  %4572 = vmatpush3.bf16.xpose.msk.msra.mxu0 %vm5384_vm2, %v4567_v61 }
0x107b   :  { %4582 = vmatpush3.bf16.xpose.msk.msra.mxu1 %vm5384_vm2, %v4577_v60  ;;  %4574 = vmatprep.subr.bf16.mxu0 %v4573_v45 }
0x107c   :  { %v2380_v0 = vpop.permute.xlu0 %2379 }
0x1081   :  { %4237 = vmatmul.mubr.msk.f32.vlgmr.msra.gmra.mrb[24].mxu0 %vm601_vm1, %v5789_v56 }
0x1082   :  { %4251 = vmatmul.mubr.msk.f32.vlgmr.msra.gmra.mrb[22].mxu1 %vm601_vm1, %v2380_v0  ;;  %4576 = vmatpush3.bf16.msra.mxu0 %v4573_v45 }
0x1154   :  { %v4238_v3 = vpop.f32.mrb[24].mxu0 }
0x1155   :  { %v2271_v5 = vadd.f32 %v4238_v3, %v5398_v19  ;;  %v4252_v6 = vpop.f32.mrb[22].mxu1  ;;  %v2265_v7 = vpop.f32.mrb[25].mxu0 }
0x1156   :  { %v2266_v9 = vadd.f32 %v2265_v7, %v5396_v17  ;;  %v2459_v12 = vpop.f32.mrb[23].mxu1  ;;  %v2465_v49 = vadd.f32 %v4252_v6, %v5398_v19 }
0x1157   :  { %v2460_v13 = vadd.f32 %v2459_v12, %v5396_v17  ;;  %v2277_v14 = vsel %vm601_vm1, %v2271_v5, -inf }
0x1158   :  { %2278 = vmax.xlane.f32.xlu0 %v2277_v14  ;;  %v2274_v55 = vsel %vm601_vm1, %v2266_v9, -inf  ;;  %v2471_v18 = vsel %vm601_vm1, %v2465_v49, -inf }
0x1159   :  { %2275 = vmax.xlane.f32.xlu1 %v2274_v55  ;;  %v2468_v15 = vsel %vm601_vm1, %v2460_v13, -inf }
0x115c   :  { %2469 = vmax.xlane.f32.xlu0 %v2468_v15 }
0x115d   :  { %2472 = vmax.xlane.f32.xlu1 %v2471_v18 }
0x11e5   :  { %v2279_v22 = vpop.xlane.xlu0 %2278 }
0x11e6   :  { %v2281_v2 = vsub.f32 %v2271_v5, %v2279_v22  ;;  %v2276_v23 = vpop.xlane.xlu1 %2275 }
0x11e7   :  { %v2280_v24 = vsub.f32 %v2266_v9, %v2276_v23  ;;  %v3760_v23 = vld [vmem:[%s6142_s5 + $0x50] sm:$0xff] }
0x11e8   :  { %v2284_v62 = vmul.f32 1.442695, %v2281_v2 }
0x11e9   :  { %v2282_v25 = vmul.f32 1.442695, %v2280_v24  ;;  %v2470_v38 = vpop.xlane.xlu0 %2469  ;;  %v3761_v24 = vld [vmem:[%s6142_s5 + $0x58] sm:$0xff] }
0x11ea   :  { %4830 = vpow2.f32 %v2284_v62  ;;  %v2474_v10 = vsub.f32 %v2460_v13, %v2470_v38  ;;  %v2473_v27 = vpop.xlane.xlu1 %2472  ;;  %v4587_v62 = vpack.c.bf16 %v3761_v24, %v3760_v23 }
0x11eb   :  { %4832 = vpow2.f32 %v2282_v25  ;;  %v2475_v28 = vsub.f32 %v2465_v49, %v2473_v27  ;;  %v3759_v25 = vld [vmem:[%s6142_s5 + $0x48] sm:$0xff] }
0x11ec   :  { %v2476_v29 = vmul.f32 1.442695, %v2474_v10  ;;  %4588 = vmatprep.subr.bf16.mxu1 %v4587_v62  ;;  %v4591_v38 = vpack.c.bf16 %v3759_v25, %v3758_v8 }
0x11ed   :  { %v2478_v11 = vmul.f32 1.442695, %v2475_v28  ;;  %4590 = vmatpush3.bf16.msra.mxu1 %v4587_v62 }
0x11ee   :  { %4834 = vpow2.f32 %v2476_v29  ;;  %4592 = vmatprep.subr.bf16.mxu1 %v4591_v38 }
0x11ef   :  { %4836 = vpow2.f32 %v2478_v11 }
0x11f4   :  { %v4831_v30 = vpop.eup %4830 }
0x11f5   :  { %v4833_v31 = vpop.eup %4832  ;;  %v2289_v33 = vsel %vm601_vm1, %v4831_v30, 0.0 }
0x11f6   :  { %2290 = vadd.xlane.f32.xlu1 %v2289_v33  ;;  %v2286_v36 = vsel %vm601_vm1, %v4833_v31, 0.0 }
0x11f7   :  { %2287 = vadd.xlane.f32.xlu0 %v2286_v36 }
0x11f8   :  { %v4835_v40 = vpop.eup %4834 }
0x11f9   :  { %v4837_v41 = vpop.eup %4836  ;;  %v2480_v42 = vsel %vm601_vm1, %v4835_v40, 0.0 }
0x11fa   :  { %v2483_v43 = vsel %vm601_vm1, %v4837_v41, 0.0 }
0x11fb   :  { %2481 = vadd.xlane.f32.xlu0 %v2480_v42  ;;  %2484 = vadd.xlane.f32.xlu1 %v2483_v43 }
0x120c   :  { %4759 = vrot.lane.b32.xlu1 %v5793_v44, %s4883_s10 }
0x1210   :  { %2741 = vrot.lane.b32.xlu1 %v5778_v32, %s4884_s11 }
0x1211   :  { %4754 = vrot.lane.b32.xlu0 %v5795_v46, %s4880_s29 }
0x1214   :  { %4764 = vrot.lane.b32.xlu1 %v5793_v44, %s4886_s13 }
0x1215   :  { %2743 = vrot.lane.b32.xlu0 %v5789_v56, %s4884_s11 }
0x1218   :  { %3026 = vrot.lane.b32.xlu1 %v5789_v56, %s4885_s12 }
0x1219   :  { %3024 = vrot.lane.b32.xlu0 %v5778_v32, %s4885_s12 }
0x1283   :  { %v2291_v45 = vpop.xlane.xlu1 %2290 }
0x1284   :  { %4838 = vrcp.f32 %v2291_v45  ;;  %v2288_v47 = vpop.xlane.xlu0 %2287 }
0x1285   :  { %4840 = vrcp.f32 %v2288_v47 }
0x1288   :  { %v2482_v48 = vpop.xlane.xlu0 %2481  ;;  %v2485_v50 = vpop.xlane.xlu1 %2484 }
0x1289   :  { %4842 = vrcp.f32 %v2482_v48 }
0x128a   :  { %4844 = vrcp.f32 %v2485_v50 }
0x128c   :  { %v4755_v51 = vpop.permute.xlu0 %4754  ;;  %v4760_v52 = vpop.permute.xlu1 %4759 }
0x128d   :  { %v4757_v44 = vunpack.i.h.bf16 %v4755_v51  ;;  %v4756_v59 = vunpack.i.l.bf16 %v4755_v51  ;;  %v4762_v0 = vunpack.i.h.bf16 %v4760_v52  ;;  %v4761_v56 = vunpack.i.l.bf16 %v4760_v52 }
0x128e   :  { %v4839_v60 = vpop.eup %4838 }
0x128f   :  { %v4841_v61 = vpop.eup %4840  ;;  %v4583_v63 = vpack.c.bf16 %v4757_v44, %v4756_v59  ;;  %v2295_v32 = vmul.f32 %v4839_v60, %v4831_v30  ;;  %v4595_v7 = vpack.c.bf16 %v4762_v0, %v4761_v56 }
0x1290   :  { %v2742_v3 = vpop.permute.xlu1 %2741  ;;  %v2294_v5 = vmul.f32 %v4841_v61, %v4833_v31  ;;  %v2744_v18 = vpop.permute.xlu0 %2743 }
0x1291   :  { %4584 = vmatprep.subr.bf16.mxu0 %v4583_v63 }
0x1292   :  { %4243 = vmatprep.mubr.msk.f32.mxu0 %vm601_vm1, %v2294_v5 }
0x1293   :  { %v4843_v6 = vpop.eup %4842  ;;  %4244 = vmatmul.mubr.msk.f32.vlgmr.msra.gmra.mrb[26].mxu0 %vm601_vm1, %v2295_v32 }
0x1294   :  { %v4845_v9 = vpop.eup %4844  ;;  %4586 = vmatpush3.bf16.msra.mxu0 %v4583_v63  ;;  %v2488_v12 = vmul.f32 %v4843_v6, %v4835_v40  ;;  %v4765_v14 = vpop.permute.xlu1 %4764  ;;  %v3762_v6 = vld [vmem:[%s6142_s5 + $0x60] sm:$0xff] }
0x1295   :  { %v2489_v13 = vmul.f32 %v4845_v9, %v4837_v41  ;;  %4597 = vmatprep.subr.msk.bf16.mxu0 %vm5384_vm2, %v4595_v7  ;;  %v4767_v49 = vunpack.i.h.bf16 %v4765_v14  ;;  %v4766_v55 = vunpack.i.l.bf16 %v4765_v14  ;;  %v3025_v22 = vpop.permute.xlu0 %3024 }
0x1296   :  { %4257 = vmatprep.mubr.msk.f32.mxu0 %vm601_vm1, %v2488_v12 }
0x1297   :  { %4258 = vmatmul.mubr.msk.f32.vlgmr.msra.gmra.mrb[28].mxu0 %vm601_vm1, %v2489_v13  ;;  %v4609_v15 = vpack.c.bf16 %v4767_v49, %v4766_v55 }
0x1298   :  { %4278 = vmatprep.mubr.msk.f32.mxu0 %vm601_vm1, %v2742_v3  ;;  %v3027_v2 = vpop.permute.xlu1 %3026 }
0x129d   :  { %4600 = vmatpush3.bf16.xpose.msk.msra.mxu0 %vm5384_vm2, %v4595_v7  ;;  %v3763_v7 = vld [vmem:[%s6142_s5 + $0x68] sm:$0xff] }
0x129e   :  { %4611 = vmatprep.subr.msk.bf16.mxu0 %vm5384_vm2, %v4609_v15 }
0x12a4   :  { %4279 = vmatmul.mubr.msk.f32.vlgmr.msra.gmra.mrb[30].mxu0 %vm601_vm1, %v2744_v18 }
0x12a5   :  { %4614 = vmatpush3.bf16.xpose.msk.msra.mxu0 %vm5384_vm2, %v4609_v15  ;;  %4299 = vmatprep.mubr.msk.f32.mxu0 %vm601_vm1, %v3025_v22 }
0x12ac   :  { %4300 = vmatmul.mubr.msk.f32.vlgmr.msra.gmra.mrb[32].mxu0 %vm601_vm1, %v3027_v2 }
0x12ad   :  { %3435 = vmatprep.mubr.f32.mxu0 %v4878_v20 }
0x1366   :  { %v4245_v10 = vpop.f32.mrb[26].mxu0 }
0x1367   :  { %v2368_v27 = vpop.f32.mrb[27].mxu0 }
0x136a   :  { %v4259_v28 = vpop.f32.mrb[28].mxu0 }
0x136b   :  { %v2570_v29 = vpop.f32.mrb[29].mxu0 }
0x136c   :  { %4264 = vmatprep.mubr.msk.f32.mxu1 %vm601_vm1, %v2570_v29 }
0x136d   :  { %4265 = vmatmul.mubr.msk.f32.vlgmr.msra.gmra.mrb[24].mxu1 %vm601_vm1, %v4259_v28 }
0x136e   :  { %4271 = vmatprep.mubr.msk.f32.mxu1 %vm601_vm1, %v2368_v27  ;;  %4594 = vmatpush3.bf16.msra.mxu1 %v4591_v38 }
0x1375   :  { %4272 = vmatmul.mubr.msk.f32.vlgmr.msra.gmra.mrb[24].mxu1 %vm601_vm1, %v4245_v10 }
0x1377   :  { %v4280_v11 = vpop.f32.mrb[30].mxu0 }
0x1378   :  { %v2829_v30 = vadd.f32 %v4280_v11, %v5398_v19  ;;  %v2823_v31 = vpop.f32.mrb[31].mxu0 }
0x1379   :  { %v2824_v33 = vadd.f32 %v2823_v31, %v5396_v17  ;;  %v3765_v31 = vld [vmem:[%s6142_s5 + $0x78] sm:$0xff] }
0x137a   :  { %v2835_v36 = vsel %vm601_vm1, %v2829_v30, -inf }
0x137b   :  { %2836 = vmax.xlane.f32.xlu1 %v2835_v36  ;;  %v2832_v40 = vsel %vm601_vm1, %v2824_v33, -inf }
0x137c   :  { %2833 = vmax.xlane.f32.xlu0 %v2832_v40 }
0x137f   :  { %v4301_v41 = vpop.f32.mrb[32].mxu0 }
0x1380   :  { %v3106_v42 = vpop.f32.mrb[33].mxu0  ;;  %v3112_v3 = vadd.f32 %v4301_v41, %v5398_v19 }
0x1382   :  { %v3118_v32 = vsel %vm601_vm1, %v3112_v3, -inf }
0x138c   :  { %4769 = vrot.lane.b32.xlu1 %v5795_v46, %s4884_s11 }
0x1390   :  { %4774 = vrot.lane.b32.xlu1 %v5795_v46, %s4885_s12  ;;  %v3107_v46 = vadd.f32 %v3106_v42, %v5396_v17  ;;  %v4605_v17 = vpack.c.bf16 %v3763_v7, %v3762_v6  ;;  %v3768_v6 = vld [vmem:[%s6143_s6 + $0x90] sm:$0xff] }
0x1392   :  { %v3115_v5 = vsel %vm601_vm1, %v3107_v46, -inf }
0x1408   :  { %v2837_v43 = vpop.xlane.xlu1 %2836 }
0x1409   :  { %v2839_v45 = vsub.f32 %v2829_v30, %v2837_v43  ;;  %v2834_v47 = vpop.xlane.xlu0 %2833  ;;  %v3764_v30 = vld [vmem:[%s6142_s5 + $0x70] sm:$0xff] }
0x140a   :  { %v2838_v48 = vsub.f32 %v2824_v33, %v2834_v47  ;;  %v4619_v41 = vpack.c.bf16 %v3765_v31, %v3764_v30 }
0x140b   :  { %v2842_v50 = vmul.f32 1.442695, %v2839_v45 }
0x140c   :  { %v2840_v51 = vmul.f32 1.442695, %v2838_v48  ;;  %v4770_v52 = vpop.permute.xlu1 %4769 }
0x140d   :  { %v4772_v44 = vunpack.i.h.bf16 %v4770_v52  ;;  %v4771_v59 = vunpack.i.l.bf16 %v4770_v52 }
0x140e   :  { %4846 = vpow2.f32 %v2840_v51  ;;  %v3312_v51 = vrot.slane %v5765_v16, %v1722_v1 }
0x140f   :  { %v4601_v60 = vpack.c.bf16 %v4772_v44, %v4771_v59  ;;  %4848 = vpow2.f32 %v2842_v50 }
0x1410   :  { %v4775_v49 = vpop.permute.xlu1 %4774 }
0x1411   :  { %4602 = vmatprep.subr.bf16.mxu1 %v4601_v60  ;;  %v4777_v2 = vunpack.i.h.bf16 %v4775_v49  ;;  %v4776_v23 = vunpack.i.l.bf16 %v4775_v49  ;;  %v3775_v49 = vld [vmem:[%s6143_s6 + $0xc8] sm:$0xff] }
0x1412   :  { %4604 = vmatpush3.bf16.msra.mxu1 %v4601_v60 }
0x1413   :  { %4606 = vmatprep.subr.bf16.mxu1 %v4605_v17  ;;  %v4615_v25 = vpack.c.bf16 %v4777_v2, %v4776_v23  ;;  %v3779_v23 = vld [vmem:[%s6143_s6 + $0xe8] sm:$0xff] }
0x1418   :  { %v4847_v61 = vpop.eup %4846 }
0x1419   :  { %v2844_v63 = vsel %vm601_vm1, %v4847_v61, 0.0  ;;  %v4849_v0 = vpop.eup %4848 }
0x141a   :  { %2845 = vadd.xlane.f32.xlu0 %v2844_v63  ;;  %v2847_v56 = vsel %vm601_vm1, %v4849_v0, 0.0 }
0x141e   :  { %2848 = vadd.xlane.f32.xlu0 %v2847_v56  ;;  %v3767_v56 = vld [vmem:[%s6143_s6 + $0x88] sm:$0xff] }
0x1422   :  { %3116 = vmax.xlane.f32.xlu0 %v3115_v5 }
0x1426   :  { %3119 = vmax.xlane.f32.xlu0 %v3118_v32  ;;  %v3766_v32 = vld [vmem:[%s6143_s6 + $0x80] sm:$0xff] }
0x1427   :  { %v4625_v7 = vpack.c.bf16 %v3768_v6, %v3766_v32  ;;  %v3801_v32 = vld [vmem:[%s6144_s7 + $0x198] sm:$0xff] }
0x14a7   :  { %v2846_v9 = vpop.xlane.xlu0 %2845 }
0x14a8   :  { %4850 = vrcp.f32 %v2846_v9  ;;  %v3773_v9 = vld [vmem:[%s6143_s6 + $0xb8] sm:$0xff] }
0x14ab   :  { %v2849_v12 = vpop.xlane.xlu0 %2848 }
0x14ac   :  { %4852 = vrcp.f32 %v2849_v12 }
0x14af   :  { %v3117_v19 = vpop.xlane.xlu0 %3116 }
0x14b0   :  { %v3121_v13 = vsub.f32 %v3107_v46, %v3117_v19  ;;  %v3770_v19 = vld [vmem:[%s6143_s6 + $0xa0] sm:$0xff] }
0x14b2   :  { %v4851_v14 = vpop.eup %4850  ;;  %v3123_v55 = vmul.f32 1.442695, %v3121_v13  ;;  %v3772_v13 = vld [vmem:[%s6143_s6 + $0xb0] sm:$0xff] }
0x14b3   :  { %v3120_v15 = vpop.xlane.xlu0 %3119  ;;  %v2852_v18 = vmul.f32 %v4851_v14, %v4847_v61  ;;  %v4629_v14 = vpack.c.bf16 %v3772_v13, %v3770_v19  ;;  %v3803_v19 = vld [vmem:[%s6144_s7 + $0x1a8] sm:$0xff] }
0x14b4   :  { %4854 = vpow2.f32 %v3123_v55  ;;  %v3122_v22 = vsub.f32 %v3112_v3, %v3120_v15  ;;  %v3769_v3 = vld [vmem:[%s6143_s6 + $0x98] sm:$0xff] }
0x14b5   :  { %4285 = vmatprep.mubr.msk.f32.mxu1 %vm601_vm1, %v2852_v18  ;;  %v4623_v5 = vpack.c.bf16 %v3769_v3, %v3767_v56  ;;  %v3777_v55 = vld [vmem:[%s6143_s6 + $0xd8] sm:$0xff]  ;;  %v3774_v18 = vld [vmem:[%s6143_s6 + $0xc0] sm:$0xff] }
0x14b6   :  { %v4853_v24 = vpop.eup %4852  ;;  %v3125_v62 = vmul.f32 1.442695, %v3122_v22  ;;  %v4631_v15 = vpack.c.bf16 %v3777_v55, %v3775_v49  ;;  %v3776_v22 = vld [vmem:[%s6143_s6 + $0xd0] sm:$0xff]  ;;  %v3782_v56 = vld [vmem:[%s6144_s7 + $0x100] sm:$0xff]  ;;  %v3787_v49 = vld [vmem:[%s6144_s7 + $0x128] sm:$0xff] }
0x14b7   :  { %v2853_v8 = vmul.f32 %v4853_v24, %v4849_v0  ;;  %4624 = vmatprep.subr.bf16.mxu0 %v4623_v5  ;;  %v4633_v2 = vpack.c.bf16 %v3776_v22, %v3774_v18  ;;  %v3781_v24 = vld [vmem:[%s6143_s6 + $0xf8] sm:$0xff]  ;;  %v3800_v5 = vld [vmem:[%s6144_s7 + $0x190] sm:$0xff] }
0x14b8   :  { %4856 = vpow2.f32 %v3125_v62  ;;  %4626 = vmatpush1.bf16.msra.mxu0 %v4625_v7  ;;  %v3778_v62 = vld [vmem:[%s6143_s6 + $0xe0] sm:$0xff]  ;;  %v4643_v6 = vpack.c.bf16 %v3801_v32, %v3800_v5  ;;  %v3784_v7 = vld [vmem:[%s6144_s7 + $0x110] sm:$0xff]  ;;  %v3805_v18 = vld [vmem:[%s6144_s7 + $0x1b8] sm:$0xff] }
0x14b9   :  { %4286 = vmatmul.mubr.msk.f32.vlgmr.msra.gmra.mrb[26].mxu1 %vm601_vm1, %v2853_v8  ;;  %v4635_v8 = vpack.c.bf16 %v3781_v24, %v3779_v23  ;;  %v3789_v23 = vld [vmem:[%s6144_s7 + $0x138] sm:$0xff] }
0x14ba   :  { %4608 = vmatpush3.bf16.msra.mxu1 %v4605_v17  ;;  %v3771_v17 = vld [vmem:[%s6143_s6 + $0xa8] sm:$0xff] }
0x14bb   :  { %4616 = vmatprep.subr.bf16.mxu1 %v4615_v25  ;;  %v4627_v12 = vpack.c.bf16 %v3773_v9, %v3771_v17  ;;  %v3785_v17 = vld [vmem:[%s6144_s7 + $0x118] sm:$0xff] }
0x14bc   :  { %v4645_v9 = vpack.c.bf16 %v3785_v17, %v3784_v7 }
0x14bd   :  { %4628 = vmatprep.subr.bf16.mxu0 %v4627_v12  ;;  %v3802_v12 = vld [vmem:[%s6144_s7 + $0x1a0] sm:$0xff] }
0x14be   :  { %v4855_v38 = vpop.eup %4854  ;;  %4630 = vmatpush1.bf16.msra.mxu0 %v4629_v14  ;;  %v4647_v13 = vpack.c.bf16 %v3803_v19, %v3802_v12  ;;  %v3786_v14 = vld [vmem:[%s6144_s7 + $0x120] sm:$0xff] }
0x14bf   :  { %v3127_v10 = vsel %vm601_vm1, %v4855_v38, 0.0  ;;  %4632 = vmatprep.subr.bf16.mxu0 %v4631_v15  ;;  %v4649_v55 = vpack.c.bf16 %v3787_v49, %v3786_v14  ;;  %v3804_v15 = vld [vmem:[%s6144_s7 + $0x1b0] sm:$0xff] }
0x14c0   :  { %3128 = vadd.xlane.f32.xlu0 %v3127_v10  ;;  %v4651_v22 = vpack.c.bf16 %v3805_v18, %v3804_v15 }
0x14c2   :  { %v4857_v27 = vpop.eup %4856  ;;  %4634 = vmatpush1.bf16.msra.mxu0 %v4633_v2  ;;  %v3788_v2 = vld [vmem:[%s6144_s7 + $0x130] sm:$0xff] }
0x14c3   :  { %v3130_v28 = vsel %vm601_vm1, %v4857_v27, 0.0  ;;  %4636 = vmatprep.subr.bf16.mxu0 %v4635_v8  ;;  %v4653_v24 = vpack.c.bf16 %v3789_v23, %v3788_v2  ;;  %v3807_v8 = vld [vmem:[%s6144_s7 + $0x1c8] sm:$0xff] }
0x14c4   :  { %3131 = vadd.xlane.f32.xlu0 %v3130_v28 }
0x154d   :  { %v3129_v29 = vpop.xlane.xlu0 %3128 }
0x154e   :  { %4858 = vrcp.f32 %v3129_v29 }
0x1551   :  { %v3132_v11 = vpop.xlane.xlu0 %3131 }
0x1552   :  { %4860 = vrcp.f32 %v3132_v11 }
0x1558   :  { %v4859_v33 = vpop.eup %4858 }
0x1559   :  { %v3135_v43 = vmul.f32 %v4859_v33, %v4855_v38 }
0x155c   :  { %v4861_v42 = vpop.eup %4860 }
0x155d   :  { %v3136_v45 = vmul.f32 %v4861_v42, %v4857_v27 }
0x158c   :  { %v4287_v36 = vpop.f32.mrb[26].mxu1 }
0x158d   :  { %v2932_v40 = vpop.f32.mrb[27].mxu1 }
0x158e   :  { %4292 = vmatprep.mubr.msk.f32.mxu1 %vm601_vm1, %v2932_v40 }
0x158f   :  { %4293 = vmatmul.mubr.msk.f32.vlgmr.msra.gmra.mrb[24].mxu1 %vm601_vm1, %v4287_v36 }
0x1590   :  { %4618 = vmatpush3.bf16.msra.mxu1 %v4615_v25  ;;  %4306 = vmatprep.mubr.msk.f32.mxu1 %vm601_vm1, %v3135_v43  ;;  %v3780_v25 = vld [vmem:[%s6143_s6 + $0xf0] sm:$0xff] }
0x1591   :  { %4620 = vmatprep.subr.bf16.mxu1 %v4619_v41  ;;  %v4637_v38 = vpack.c.bf16 %v3780_v25, %v3778_v62  ;;  %v3806_v62 = vld [vmem:[%s6144_s7 + $0x1c0] sm:$0xff] }
0x1592   :  { %v4655_v25 = vpack.c.bf16 %v3807_v8, %v3806_v62 }
0x1593   :  { %4307 = vmatmul.mubr.msk.f32.vlgmr.msra.gmra.mrb[28].mxu1 %vm601_vm1, %v3136_v45  ;;  %4638 = vmatpush1.bf16.msra.mxu0 %v4637_v38  ;;  %v3790_v38 = vld [vmem:[%s6144_s7 + $0x140] sm:$0xff] }
0x1594   :  { %4622 = vmatpush3.bf16.msra.mxu1 %v4619_v41 }
0x1666   :  { %v4308_v47 = vpop.f32.mrb[28].mxu1 }
0x1667   :  { %v3215_v48 = vpop.f32.mrb[29].mxu1 }
0x1668   :  { %4313 = vmatprep.mubr.msk.f32.mxu1 %vm601_vm1, %v3215_v48  ;;  %v3348_v48 = vrot.slane %v5765_v16, %v1758_v54  ;;  %v3798_v54 = vld [vmem:[%s6144_s7 + $0x180] sm:$0xff] }
0x1669   :  { %4314 = vmatmul.mubr.msk.f32.vlgmr.msra.gmra.mrb[24].mxu1 %vm601_vm1, %v4308_v47 }
0x173c   :  { %v4315_v50 = vpop.f32.mrb[24].mxu1 }
0x173d   :  { %v3296_v52 = vpop.f32.mrb[25].mxu1  ;;  %v3308_v44 = vadd.f32 %v4315_v50, %v5706_v26 }
0x173e   :  { %v3307_v59 = vadd.f32 %v3296_v52, %v5699_v21  ;;  %v3354_v52 = vrot.slane %v5765_v16, %v1764_v57  ;;  %v3799_v57 = vld [vmem:[%s6144_s7 + $0x188] sm:$0xff] }
0x173f   :  { %v5919_v61 = vadd.f32 %v3312_v51, %v3308_v44 }
0x1740   :  { %v5917_v60 = vadd.f32 %v3312_v51, %v3307_v59 }
0x1741   :  { %v3318_v1 = vsel %vm460_vm0, %v5919_v61, 0.0  ;;  %v3324_v21 = vmul.f32 %v5919_v61, %v5919_v61 }
0x1742   :  { %v3315_v63 = vsel %vm460_vm0, %v5917_v60, 0.0  ;;  %v3323_v0 = vmul.f32 %v5917_v60, %v5917_v60 }
0x1743   :  { %3316 = vadd.xlane.f32.xlu0 %v3315_v63  ;;  %v3328_v26 = vsel %vm460_vm0, %v3324_v21, 0.0 }
0x1744   :  { %v3325_v46 = vsel %vm460_vm0, %v3323_v0, 0.0 }
0x1745   :  { %3326 = vadd.xlane.f32.xlu1 %v3325_v46 }
0x1747   :  { %3319 = vadd.xlane.f32.xlu0 %v3318_v1 }
0x174b   :  { %3329 = vadd.xlane.f32.xlu0 %v3328_v26  ;;  %v4639_v26 = vpack.c.bf16 %v3799_v57, %v3798_v54 }
0x174d   :  { %4640 = vmatprep.subr.bf16.mxu1 %v4639_v26 }
0x17d0   :  { %v3317_v10 = vpop.xlane.xlu0 %3316 }
0x17d1   :  { %v3321_v27 = vmul.f32 0.015625, %v3317_v10  ;;  %v3791_v10 = vld [vmem:[%s6144_s7 + $0x148] sm:$0xff] }
0x17d2   :  { %v3327_v28 = vpop.xlane.xlu1 %3326 }
0x17d3   :  { %v3333_v29 = vmul.f32 %v3321_v27, %v3321_v27  ;;  %v3331_v11 = vmul.f32 0.015625, %v3327_v28  ;;  %v3337_v47 = vsub.f32 %v5917_v60, %v3321_v27  ;;  %v4657_v27 = vpack.c.bf16 %v3791_v10, %v3790_v38  ;;  %v3808_v28 = vld [vmem:[%s6144_s7 + $0x1d0] sm:$0xff] }
0x17d4   :  { %v3320_v30 = vpop.xlane.xlu0 %3319 }
0x17d5   :  { %v3335_v31 = vsub.f32 %v3331_v11, %v3333_v29  ;;  %v3322_v33 = vmul.f32 0.015625, %v3320_v30  ;;  %v3809_v29 = vld [vmem:[%s6144_s7 + $0x1d8] sm:$0xff]  ;;  %v3792_v11 = vld [vmem:[%s6144_s7 + $0x150] sm:$0xff] }
0x17d6   :  { %v4659_v30 = vpack.c.bf16 %v3809_v29, %v3808_v28 }
0x17d7   :  { %v3339_v36 = vadd.f32 1e-06, %v3335_v31  ;;  %v3334_v41 = vmul.f32 %v3322_v33, %v3322_v33  ;;  %v3338_v59 = vsub.f32 %v5919_v61, %v3322_v33  ;;  %v3793_v31 = vld [vmem:[%s6144_s7 + $0x158] sm:$0xff]  ;;  %v3810_v33 = vld [vmem:[%s6144_s7 + $0x1e0] sm:$0xff] }
0x17d8   :  { %v3330_v40 = vpop.xlane.xlu0 %3329 }
0x17d9   :  { %4862 = vrsqrt.f32 %v3339_v36  ;;  %v3332_v42 = vmul.f32 0.015625, %v3330_v40  ;;  %v3811_v36 = vld [vmem:[%s6144_s7 + $0x1e8] sm:$0xff]  ;;  %v4661_v40 = vpack.c.bf16 %v3793_v31, %v3792_v11 }
0x17db   :  { %v3336_v43 = vsub.f32 %v3332_v42, %v3334_v41  ;;  %v4663_v41 = vpack.c.bf16 %v3811_v36, %v3810_v33  ;;  %v3794_v42 = vld [vmem:[%s6144_s7 + $0x160] sm:$0xff] }
0x17dd   :  { %v3340_v45 = vadd.f32 1e-06, %v3336_v43  ;;  %v3795_v43 = vld [vmem:[%s6144_s7 + $0x168] sm:$0xff] }
0x17df   :  { %4864 = vrsqrt.f32 %v3340_v45  ;;  %v3812_v45 = vld [vmem:[%s6144_s7 + $0x1f0] sm:$0xff] }
0x17e3   :  { %v4863_v50 = vpop.eup %4862 }
0x17e4   :  { %v3343_v51 = vmul.f32 %v4863_v50, %v3337_v47  ;;  %v3813_v47 = vld [vmem:[%s6144_s7 + $0x1f8] sm:$0xff] }
0x17e5   :  { %v4667_v50 = vpack.c.bf16 %v3813_v47, %v3812_v45 }
0x17e6   :  { %v3349_v44 = vmul.f32 %v3348_v48, %v3343_v51  ;;  %v3796_v51 = vld [vmem:[%s6144_s7 + $0x170] sm:$0xff] }
0x17e8   :  { %v3355_v63 = vadd.f32 %v3354_v52, %v3349_v44 }
0x17e9   :  { %v4865_v0 = vpop.eup %4864 }
0x17ea   :  { %3848 = vmatmul.mubr.msk.f32.vlgmr.msra.gmra.mrb[34].mxu0 %vm460_vm0, %v3355_v63  ;;  %v3344_v46 = vmul.f32 %v4865_v0, %v3338_v59  ;;  %v3360_v59 = vrot.slane %v5765_v16, %v5688_v58  ;;  %v3364_v63 = vrot.slane %v5783_v34, %v5688_v58 }
0x17eb   :  { %3441 = vmatprep.mubr.f32.mxu0 %v4878_v20  ;;  %v3783_v20 = vld [vmem:[%s6144_s7 + $0x108] sm:$0xff] }
0x17ec   :  { %v3350_v1 = vmul.f32 %v3348_v48, %v3344_v46  ;;  %v4641_v3 = vpack.c.bf16 %v3783_v20, %v3782_v56  ;;  %v4665_v48 = vpack.c.bf16 %v3795_v43, %v3794_v42  ;;  %v3487_v42 = vrot.slane %v5765_v16, %v1897_v4 }
0x17ee   :  { %v3356_v21 = vadd.f32 %v3354_v52, %v3350_v1  ;;  %4642 = vmatpush3.bf16.msra.mxu1 %v4641_v3  ;;  %v3797_v52 = vld [vmem:[%s6144_s7 + $0x178] sm:$0xff] }
0x17ef   :  { %4644 = vmatprep.subr.bf16.mxu1 %v4643_v6  ;;  %v4669_v44 = vpack.c.bf16 %v3797_v52, %v3796_v51 }
0x17f0   :  { %3849 = vmatmul.mubr.msk.f32.gmra.mrb[36].mxu0 %vm460_vm0, %v3356_v21 }
0x17f2   :  { %4646 = vmatpush3.bf16.msra.mxu1 %v4645_v9 }
0x17f3   :  { %4648 = vmatprep.subr.bf16.mxu1 %v4647_v13 }
0x17f6   :  { %4650 = vmatpush3.bf16.msra.mxu1 %v4649_v55 }
0x17f7   :  { %4652 = vmatprep.subr.bf16.mxu1 %v4651_v22 }
0x17fa   :  { %4654 = vmatpush3.bf16.msra.mxu1 %v4653_v24 }
0x17fb   :  { %4656 = vmatprep.subr.bf16.mxu1 %v4655_v25 }
0x17fe   :  { %4658 = vmatpush3.bf16.msra.mxu1 %v4657_v27 }
0x17ff   :  { %4660 = vmatprep.subr.bf16.mxu1 %v4659_v30 }
0x1802   :  { %4662 = vmatpush3.bf16.msra.mxu1 %v4661_v40 }
0x1803   :  { %4664 = vmatprep.subr.bf16.mxu1 %v4663_v41 }
0x1806   :  { %4666 = vmatpush3.bf16.msra.mxu1 %v4665_v48 }
0x1807   :  { %4668 = vmatprep.subr.bf16.mxu1 %v4667_v50 }
0x180a   :  { %4670 = vmatpush3.bf16.msra.mxu1 %v4669_v44 }
0x18bd   :  { %v3437_v0 = vpop.f32.mrb[34].mxu0 }
0x18be   :  { %v3438_v46 = vadd.f32 %v3437_v0, %v3360_v59  ;;  %v3439_v1 = vpop.f32.mrb[35].mxu0 }
0x18bf   :  { %v3440_v21 = vadd.f32 %v3439_v1, %v3364_v63  ;;  %v3608_v1 = vld [vmem:[%s6145_s8 + $0x8] sm:$0xff] }
0x18c0   :  { %v3448_v54 = vmul.f32 %v3438_v46, %v3438_v46 }
0x18c1   :  { %v3449_v57 = vmul.f32 %v3440_v21, %v3440_v21 }
0x18c2   :  { %v3452_v26 = vmul.f32 %v3448_v54, %v3438_v46  ;;  %v3610_v54 = vld [vmem:[%s6145_s8 + $0x18] sm:$0xff] }
0x18c3   :  { %v3453_v56 = vmul.f32 %v3449_v57, %v3440_v21  ;;  %v3443_v20 = vpop.f32.mrb[36].mxu0 }
0x18c4   :  { %v3456_v3 = vmul.f32 0.044715, %v3452_v26  ;;  %v3444_v5 = vadd.f32 %v3443_v20, %v3360_v59  ;;  %v3445_v32 = vpop.f32.mrb[37].mxu0  ;;  %v3611_v26 = vld [vmem:[%s6145_s8 + $0x20] sm:$0xff] }
0x18c5   :  { %v3457_v6 = vmul.f32 0.044715, %v3453_v56  ;;  %v3446_v7 = vadd.f32 %v3445_v32, %v3364_v63  ;;  %v3612_v56 = vld [vmem:[%s6145_s8 + $0x28] sm:$0xff] }
0x18c6   :  { %v3460_v17 = vadd.f32 %v3456_v3, %v3438_v46  ;;  %v3450_v9 = vmul.f32 %v3444_v5, %v3444_v5  ;;  %v4679_v20 = vpack.c.bf16 %v3612_v56, %v3611_v26  ;;  %v3613_v3 = vld [vmem:[%s6145_s8 + $0x30] sm:$0xff] }
0x18c7   :  { %v3461_v12 = vadd.f32 %v3457_v6, %v3440_v21  ;;  %v3451_v19 = vmul.f32 %v3446_v7, %v3446_v7 }
0x18c8   :  { %v3464_v13 = vmul.f32 0.7978846, %v3460_v17  ;;  %v3454_v58 = vmul.f32 %v3450_v9, %v3444_v5 }
0x18c9   :  { %v3465_v34 = vmul.f32 0.7978846, %v3461_v12  ;;  %v3455_v14 = vmul.f32 %v3451_v19, %v3446_v7 }
0x18ca   :  { %4866 = vtanh.f32 %v3464_v13  ;;  %v3458_v49 = vmul.f32 0.044715, %v3454_v58 }
0x18cb   :  { %v3459_v55 = vmul.f32 0.044715, %v3455_v14  ;;  %4868 = vtanh.f32 %v3465_v34 }
0x18cc   :  { %v3462_v15 = vadd.f32 %v3458_v49, %v3444_v5 }
0x18cd   :  { %v3463_v18 = vadd.f32 %v3459_v55, %v3446_v7 }
0x18ce   :  { %v3466_v22 = vmul.f32 0.7978846, %v3462_v15 }
0x18cf   :  { %v3467_v2 = vmul.f32 0.7978846, %v3463_v18 }
0x18d0   :  { %4870 = vtanh.f32 %v3466_v22  ;;  %v36_v22 = vld [vmem:[%s6141_s3 + $0x20] sm:$0x7] }
0x18d1   :  { %4872 = vtanh.f32 %v3467_v2 }
0x18d4   :  { %v4867_v23 = vpop.eup %4866 }
0x18d5   :  { %v4869_v24 = vpop.eup %4868  ;;  %v3472_v62 = vadd.f32 1.0, %v4867_v23  ;;  %v3598_v23 = vrot.slane %v36_v22, %v5333_v37 }
0x18d6   :  { %v3473_v8 = vadd.f32 1.0, %v4869_v24 }
0x18d7   :  { %v3476_v25 = vmul.f32 0.5, %v3472_v62 }
0x18d8   :  { %v3477_v38 = vmul.f32 0.5, %v3473_v8  ;;  %v3604_v8 = vrot.slane %v36_v22, %v5341_v39 }
0x18d9   :  { %v3480_v29 = vmul.f32 %v3476_v25, %v3438_v46 }
0x18da   :  { %v4871_v10 = vpop.eup %4870  ;;  %v3481_v27 = vmul.f32 %v3477_v38, %v3440_v21 }
0x18db   :  { %v4873_v28 = vpop.eup %4872  ;;  %v3474_v11 = vadd.f32 1.0, %v4871_v10 }
0x18dc   :  { %3552 = vmatprep.mubr.f32.mxu1 %v3481_v27  ;;  %v3475_v30 = vadd.f32 1.0, %v4873_v28 }
0x18dd   :  { %3553 = vmatmul.mubr.f32.vlgmr.msra.gmra.mrb[30].mxu1 %v3480_v29  ;;  %v3478_v31 = vmul.f32 0.5, %v3474_v11 }
0x18de   :  { %v3479_v33 = vmul.f32 0.5, %v3475_v30  ;;  %v3618_v30 = vrot.slane %v36_v22, %v5353_v53 }
0x18df   :  { %v3482_v40 = vmul.f32 %v3478_v31, %v3444_v5  ;;  %v3614_v5 = vld [vmem:[%s6145_s8 + $0x38] sm:$0xff] }
0x18e0   :  { %v3483_v36 = vmul.f32 %v3479_v33, %v3446_v7  ;;  %v4683_v32 = vpack.c.bf16 %v3614_v5, %v3613_v3 }
0x18e2   :  { %3557 = vmatprep.mubr.f32.mxu1 %v3483_v36 }
0x18e3   :  { %3558 = vmatmul.mubr.f32.gmra.mrb[32].mxu1 %v3482_v40 }
0x19b0   :  { %v4132_v41 = vpop.f32.mrb[30].mxu1 }
0x19b1   :  { %v4133_v43 = vpop.f32.mrb[31].mxu1 }
0x19b2   :  { %v4134_v45 = vadd.f32 %v4133_v43, %v4132_v41 }
0x19b4   :  { %v3555_v47 = vadd.f32 %v4134_v45, %v3487_v42 }
0x19b6   :  { %v3563_v48 = vadd.f32 %v3555_v47, %v5917_v60  ;;  %v4135_v50 = vpop.f32.mrb[32].mxu1  ;;  %v3607_v60 = vld [vmem:[%s6145_s8] sm:$0xff] }
0x19b7   :  { %v4136_v51 = vpop.f32.mrb[33].mxu1  ;;  %v4671_v21 = vpack.c.bf16 %v3608_v1, %v3607_v60 }
0x19b8   :  { %v4137_v52 = vadd.f32 %v4136_v51, %v4135_v50  ;;  %v3565_v44 = vsel %vm460_vm0, %v3563_v48, 0.0  ;;  %v3573_v59 = vmul.f32 %v3563_v48, %v3563_v48 }
0x19b9   :  { %3566 = vadd.xlane.f32.xlu0 %v3565_v44  ;;  %4672 = vmatprep.subr.bf16.mxu0 %v4671_v21 }
0x19ba   :  { %v3560_v63 = vadd.f32 %v4137_v52, %v3487_v42  ;;  %v3575_v46 = vsel %vm460_vm0, %v3573_v59, 0.0  ;;  %4674 = vmatpush3.bf16.msra.mxu0 %v4671_v21 }
0x19bc   :  { %v3564_v0 = vadd.f32 %v3560_v63, %v5919_v61  ;;  %v3609_v61 = vld [vmem:[%s6145_s8 + $0x10] sm:$0xff] }
0x19bd   :  { %3576 = vadd.xlane.f32.xlu0 %v3575_v46  ;;  %v4675_v57 = vpack.c.bf16 %v3610_v54, %v3609_v61 }
0x19be   :  { %v3568_v35 = vsel %vm460_vm0, %v3564_v0, 0.0  ;;  %v3574_v4 = vmul.f32 %v3564_v0, %v3564_v0 }
0x19bf   :  { %4676 = vmatprep.subr.bf16.mxu0 %v4675_v57 }
0x19c0   :  { %v3578_v16 = vsel %vm460_vm0, %v3574_v4, 0.0  ;;  %4678 = vmatpush3.bf16.msra.mxu0 %v4675_v57 }
0x19c1   :  { %3569 = vadd.xlane.f32.xlu0 %v3568_v35  ;;  %4680 = vmatprep.subr.bf16.mxu0 %v4679_v20 }
0x19c4   :  { %4682 = vmatpush3.bf16.msra.mxu0 %v4679_v20 }
0x19c5   :  { %3579 = vadd.xlane.f32.xlu0 %v3578_v16  ;;  %4684 = vmatprep.subr.bf16.mxu0 %v4683_v32 }
0x19c8   :  { %4686 = vmatpush3.bf16.msra.mxu0 %v4683_v32 }
0x1a46   :  { %v3567_v6 = vpop.xlane.xlu0 %3566 }
0x1a47   :  { %v3571_v7 = vmul.f32 0.015625, %v3567_v6 }
0x1a49   :  { %v3583_v9 = vmul.f32 %v3571_v7, %v3571_v7  ;;  %v3587_v2 = vsub.f32 %v3563_v48, %v3571_v7 }
0x1a4a   :  { %v3577_v17 = vpop.xlane.xlu0 %3576 }
0x1a4b   :  { %v3581_v12 = vmul.f32 0.015625, %v3577_v17 }
0x1a4d   :  { %v3585_v19 = vsub.f32 %v3581_v12, %v3583_v9 }
0x1a4e   :  { %v3570_v13 = vpop.xlane.xlu0 %3569 }
0x1a4f   :  { %v3589_v58 = vadd.f32 1e-06, %v3585_v19  ;;  %v3572_v34 = vmul.f32 0.015625, %v3570_v13 }
0x1a51   :  { %4874 = vrsqrt.f32 %v3589_v58  ;;  %v3584_v49 = vmul.f32 %v3572_v34, %v3572_v34  ;;  %v3588_v10 = vsub.f32 %v3564_v0, %v3572_v34 }
0x1a52   :  { %v3580_v14 = vpop.xlane.xlu0 %3579 }
0x1a53   :  { %v3582_v55 = vmul.f32 0.015625, %v3580_v14 }
0x1a55   :  { %v3586_v15 = vsub.f32 %v3582_v55, %v3584_v49 }
0x1a57   :  { %v3590_v18 = vadd.f32 1e-06, %v3586_v15 }
0x1a59   :  { %4876 = vrsqrt.f32 %v3590_v18 }
0x1a5b   :  { %v4875_v24 = vpop.eup %4874 }
0x1a5c   :  { %v3593_v62 = vmul.f32 %v4875_v24, %v3587_v2 }
0x1a5e   :  { %v3599_v25 = vmul.f32 %v3598_v23, %v3593_v62 }
0x1a60   :  { %v3605_v38 = vadd.f32 %v3604_v8, %v3599_v25 }
0x1a62   :  { %4332 = vmatprep.mubr.msk.f32.mxu0 %vm460_vm0, %v3605_v38 }
0x1a63   :  { %v4877_v27 = vpop.eup %4876 }
0x1a64   :  { %v3594_v28 = vmul.f32 %v4877_v27, %v3588_v10 }
0x1a66   :  { %v3600_v29 = vmul.f32 %v3598_v23, %v3594_v28 }
0x1a68   :  { %v3606_v11 = vadd.f32 %v3604_v8, %v3600_v29 }
0x1a6a   :  { %4333 = vmatmul.mubr.msk.f32.vlgmr.msra.gmra.mrb[38].mxu0 %vm460_vm0, %v3606_v11 }
0x1b3d   :  { %v4334_v31 = vpop.f32.mrb[38].mxu0 }
0x1b3e   :  { %v3697_v33 = vadd.f32 %v4334_v31, %v3618_v30  ;;  %v3691_v37 = vpop.f32.mrb[39].mxu0 }
0x1b3f   :  { %v3692_v36 = vadd.f32 %v3691_v37, %v3618_v30 }
0x1b40   :  { %3701 = vst [vmem:[%s6146_s9 + $0x8] sm:$0xff] %v3697_v33 }
0x1b41   :  { %3700 = vst [vmem:[%s6146_s9] sm:$0xff] %v3692_v36 }

</bundles_post_ra>
